<compile_context>
chip_gen: v7x
topology: tpu7x:2x2x1
jax: 0.10.0
libtpu: 0.0.40
codegen_flags: <defaults>
</compile_context>

<pallas_src>
import functools

import jax
import jax.numpy as jnp
from jax import lax
from jax.experimental import pallas as pl
from jax.experimental.pallas import tpu as pltpu

KH = KW = 3
K = KH * KW          # 9 kernel taps
PAD = 1              # padding=1, stride=1, dilation=1


def _round_up(v, m):
    return (v + m - 1) // m * m


def _pick_tile(HWp):
    """Largest lane-aligned output-position tile that divides HWp (HWp % 128 == 0)."""
    for tq in (512, 256, 128):
        if HWp % tq == 0:
            return tq
    return 128


def _deform_sample_kernel(coords_ref, x_ref, wfold_ref, out_ref, samp_ref,
                          *, H, Wp, Cpad, TQ):
    """One (batch, output-tile) step of the deformable sampling.

    coords_ref : [2K, TQ]        absolute sampling coords (y,x per tap), f32
    x_ref      : [Cpad, H*Wp]    channel/width-padded input, bf16 (revisited)
    wfold_ref  : [C, K*Cpad]     folded block-diagonal grouped weights, f32
    out_ref    : [C, TQ]         NCHW-layout output tile (lane-dense)
    samp_ref   : [K*Cpad, TQ]    VMEM scratch holding the 9 per-tap samples
    """
    HWs = H * Wp

    # Source row / col coordinates (no // or %), loop-invariant.
    rows = lax.broadcasted_iota(jnp.int32, (H, 1), 0).astype(jnp.float32)   # [H, 1]
    cols = lax.broadcasted_iota(jnp.int32, (Wp, 1), 0).astype(jnp.float32)  # [Wp, 1]

    x = x_ref[...]              # [Cpad, HWs] bf16
    coords = coords_ref[...]    # [2K, TQ]    f32

    # Static Python loop: each iteration is independent and ends with a write
    # into the samp scratch ref, so no large values stay live across taps.
    for k in range(K):
        y = coords[2 * k:2 * k + 1, :]        # [1, TQ] sampling row
        xq = coords[2 * k + 1:2 * k + 2, :]   # [1, TQ] sampling col

        # Separable bilinear "tent".  Out-of-frame samples and invalid corners
        # get weight 0 automatically (torchvision border semantics); padded
        # source columns multiply zero-valued pixels so they contribute 0.
        ry = jnp.maximum(0.0, 1.0 - jnp.abs(rows - y))     # [H,  TQ]
        rx = jnp.maximum(0.0, 1.0 - jnp.abs(cols - xq))    # [Wp, TQ]
        s_t = (ry[:, None, :] * rx[None, :, :]).reshape(HWs, TQ)   # clean: Wp % 8 == 0
        s_t = s_t.astype(jnp.bfloat16)

        samp_ref[k * Cpad:(k + 1) * Cpad, :] = jnp.dot(
            x, s_t, preferred_element_type=jnp.float32)    # [Cpad, TQ]

    # One small mixing matmul applies the grouped per-tap CxC weights.
    out_ref[...] = jnp.dot(wfold_ref[...], samp_ref[...],
                           preferred_element_type=jnp.float32)


def deform_conv_3x3(x_nchw, w_off, b_off, w_def, groups):
    """Forward pass of DeformConv_3x3.  x_nchw: [B, C, H, W] float32."""
    B, C, H, W = x_nchw.shape
    HW = H * W
    f32 = jnp.float32
    x = x_nchw.astype(f32)

    # 3x3 offset conv (pad 1, stride 1, bias) -- dense conv, left to XLA.
    offs = lax.conv_general_dilated(
        x, w_off.astype(f32), window_strides=(1, 1),
        padding=((PAD, PAD), (PAD, PAD)),
        dimension_numbers=('NCHW', 'OIHW', 'NCHW'))
    offs = offs + b_off.astype(f32)[None, :, None, None]
    offs = offs.reshape(B, 2 * K, HW)

    # Fold output-pixel base coords + (kh-1, kw-1) tap shift into the offsets:
    # the kernel receives absolute sampling coordinates (no // or % in-kernel).
    hh = (jnp.arange(HW, dtype=jnp.int32) // W).astype(f32)          # [HW]
    ww = (jnp.arange(HW, dtype=jnp.int32) % W).astype(f32)           # [HW]
    kh = (jnp.arange(K, dtype=jnp.int32) // KW - PAD).astype(f32)    # [K]
    kw = (jnp.arange(K, dtype=jnp.int32) % KW - PAD).astype(f32)     # [K]
    base = jnp.stack([hh[None, :] + kh[:, None],
                      ww[None, :] + kw[:, None]], axis=1).reshape(2 * K, HW)
    coords = offs + base[None]                                        # [B, 2K, HW]

    # Lane-pad the output-position axis (lane-dense, unmasked output stores).
    HWp = _round_up(HW, 128)
    if HWp != HW:
        coords = jnp.pad(coords, ((0, 0), (0, 0), (0, HWp - HW)))

    # Channel- and width-padded bf16 input (sublane-aligned MXU operand; the
    # width padding keeps the in-kernel [H, Wp, TQ] -> [H*Wp, TQ] collapse clean).
    Cpad = _round_up(C, 8)
    Wp = _round_up(W, 8)
    HWs = H * Wp
    x_pad = jnp.zeros((B, Cpad, H, Wp), jnp.bfloat16)
    x_pad = x_pad.at[:, :C, :, :W].set(x.astype(jnp.bfloat16))
    x_pad = x_pad.reshape(B, Cpad, HWs)

    # Small folded grouped weight [C, K*Cpad] (block-diagonal over groups).
    Cg = C // groups
    w_g = w_def.astype(f32).reshape(groups, Cg, Cg, K)        # [g, o, i, k]
    eye_g = jnp.eye(groups, dtype=f32)
    wfull = jnp.einsum('goik,gh->gokhi', w_g, eye_g)          # [g, o, k, g', i]
    wfold = jnp.zeros((C, K, Cpad), f32).at[:, :, :C].set(
        wfull.reshape(C, K, C)).reshape(C, K * Cpad)

    TQ = _pick_tile(HWp)

    # Explicit VMEM budget from the actual block / scratch / temporary bytes.
    block_bytes = (
        2 * (2 * K) * TQ * 4          # coords (double-buffered)
        + 2 * Cpad * HWs * 2          # x_pad bf16 (double-buffered, revisited)
        + 2 * C * (K * Cpad) * 4      # wfold
        + 2 * C * TQ * 4              # output tile
        + (K * Cpad) * TQ * 4         # samp scratch
        + HWs * TQ * (4 + 2)          # s_t f32 build + bf16 copy
        + (H + Wp) * TQ * 4)          # ry / rx
    vmem_limit = int(min(max(2 * block_bytes + (2 << 20), 32 << 20), 64 << 20))

    kernel = functools.partial(_deform_sample_kernel, H=H, Wp=Wp, Cpad=Cpad, TQ=TQ)
    out = pl.pallas_call(
        kernel,
        out_shape=jax.ShapeDtypeStruct((B, C, HWp), jnp.float32),
        grid_spec=pltpu.PrefetchScalarGridSpec(
            num_scalar_prefetch=0,
            grid=(B, HWp // TQ),
            in_specs=[
                pl.BlockSpec((None, 2 * K, TQ), lambda b, t: (b, 0, t)),
                pl.BlockSpec((None, Cpad, HWs), lambda b, t: (b, 0, 0)),
                pl.BlockSpec((C, K * Cpad), lambda b, t: (0, 0)),
            ],
            out_specs=pl.BlockSpec((None, C, TQ), lambda b, t: (b, 0, t)),
            scratch_shapes=[pltpu.VMEM((K * Cpad, TQ), jnp.float32)],
        ),
        compiler_params=pltpu.CompilerParams(
            dimension_semantics=("parallel", "parallel"),
            vmem_limit_bytes=vmem_limit),
    )(coords, x_pad, wfold)

    return out[:, :, :HW].reshape(B, C, H, W)


def reference(x, w_off, b_off, w_def, groups):
    """Pure-JAX reference (torchvision DeformConv2d semantics), NCHW."""
    B, C, H, W = x.shape
    HW = H * W
    offsets = lax.conv_general_dilated(
        x, w_off, window_strides=(1, 1), padding=((1, 1), (1, 1)),
        dimension_numbers=('NCHW', 'OIHW', 'NCHW')) + b_off[None, :, None, None]
    x_flat = x.reshape(B, C, HW)
    hh = jnp.arange(H, dtype=jnp.float32)[None, :, None]
    ww = jnp.arange(W, dtype=jnp.float32)[None, None, :]
    Cg = C // groups
    out = jnp.zeros((B, C, HW), jnp.float32)
    for k in range(K):
        kh, kw = k // 3, k % 3
        dy = offsets[:, 2 * k]
        dx = offsets[:, 2 * k + 1]
        y = hh + (kh - 1) + dy
        xq = ww + (kw - 1) + dx
        gvalid = (y > -1) & (y < H) & (xq > -1) & (xq < W)
        y0 = jnp.floor(y)
        x0 = jnp.floor(xq)
        ly = y - y0
        lx = xq - x0
        sample = jnp.zeros((B, C, HW), jnp.float32)
        for oy, ox, wgt in ((0, 0, (1 - ly) * (1 - lx)), (0, 1, (1 - ly) * lx),
                            (1, 0, ly * (1 - lx)), (1, 1, ly * lx)):
            yy = y0 + oy
            xx = x0 + ox
            valid = gvalid & (yy >= 0) & (yy <= H - 1) & (xx >= 0) & (xx <= W - 1)
            idx = (jnp.clip(yy, 0, H - 1) * W
                   + jnp.clip(xx, 0, W - 1)).astype(jnp.int32).reshape(B, HW)
            vals = jnp.take_along_axis(x_flat, idx[:, None, :], axis=2)
            sample = sample + jnp.where(valid, wgt, 0.0).reshape(B, 1, HW) * vals
        for g in range(groups):
            sl = slice(g * Cg, (g + 1) * Cg)
            wk = w_def[sl, :, kh, kw]                       # [Cg, Cg]
            out = out.at[:, sl].add(jnp.einsum('oc,bcp->bop', wk, sample[:, sl]))
    return out.reshape(B, C, H, W)


if __name__ == "__main__":
    key = jax.random.PRNGKey(0)

    def run_case(case_key, B, C, H, W, groups, tol):
        k1, k2, k3, k4 = jax.random.split(case_key, 4)
        x = jax.random.normal(k1, (B, C, H, W), jnp.float32)
        # deterministic synthetic parameters (shapes from the module's __init__)
        w_off = jax.random.normal(k2, (2 * K, C, 3, 3), jnp.float32) * 0.1     # offset_net weight
        b_off = jax.random.normal(k3, (2 * K,), jnp.float32) * 0.1             # offset_net bias
        w_def = jax.random.normal(k4, (C, C // groups, 3, 3), jnp.float32) * 0.1  # deform weight (bias=False)

        out = jax.block_until_ready(deform_conv_3x3(x, w_off, b_off, w_def, groups))
        ref = reference(x, w_off, b_off, w_def, groups)
        assert out.shape == (B, C, H, W)
        err = float(jnp.max(jnp.abs(out - ref)))
        # tolerance covers the bf16 MXU operands (sampling matmul); algorithmic
        # bugs show up as O(0.3+) errors, bf16 rounding stays well below this.
        if err > tol:
            raise AssertionError(
                f"mismatch vs reference (B={B},C={C},H={H},W={W}): max abs err {err}")

    # primary case (lane-aligned spatial dims)
    run_case(jax.random.fold_in(key, 0), 2, 4, 16, 16, 2, 5e-2)
    # unaligned case: exercises HW->128 output padding and source-width padding
    run_case(jax.random.fold_in(key, 1), 1, 8, 14, 14, 2, 5e-2)

    print("KERNEL_OK")
</pallas_src>

<mosaic_0001>
module attributes {stable_mosaic.version = 11 : i64} {
  func.func @_deform_sample_kernel(%arg0: i32, %arg1: i32, %arg2: memref<1x18x256xf32, #tpu.memory_space<vmem>>, %arg3: memref<1x8x256xbf16, #tpu.memory_space<vmem>>, %arg4: memref<4x72xf32, #tpu.memory_space<vmem>>, %arg5: memref<1x4x256xf32, #tpu.memory_space<vmem>>, %arg6: memref<72x256xf32, #tpu.memory_space<vmem>>) attributes {dimension_semantics = [#tpu.dimension_semantics<parallel>, #tpu.dimension_semantics<parallel>], iteration_bounds = array<i64: 2, 1>, scalar_prefetch = 0 : i64, scratch_operands = 1 : i64, tpu.core_type = #tpu.core_type<tc>, window_params = [{transform_indices = @transform_0, window_bounds = array<i64: 1, 18, 256>}, {transform_indices = @transform_1, window_bounds = array<i64: 1, 8, 256>}, {pipeline_mode = #tpu.pipeline_mode<synchronous>, transform_indices = @transform_2, window_bounds = array<i64: 4, 72>}, {transform_indices = @transform_3, window_bounds = array<i64: 1, 4, 256>}]} {
    %0 = tpu.iota {dimensions = array<i32: 0>} : vector<16x1xi32>
    %1 = arith.sitofp %0 : vector<16x1xi32> to vector<16x1xf32>
    %2 = tpu.iota {dimensions = array<i32: 0>} : vector<16x1xi32>
    %3 = arith.sitofp %2 : vector<16x1xi32> to vector<16x1xf32>
    %c0 = arith.constant 0 : index
    %c0_0 = arith.constant 0 : index
    %c0_1 = arith.constant 0 : index
    %4 = vector.load %arg3[%c0, %c0_0, %c0_1] : memref<1x8x256xbf16, #tpu.memory_space<vmem>>, vector<1x8x256xbf16>
    %5 = vector.shape_cast %4 : vector<1x8x256xbf16> to vector<8x256xbf16>
    %c0_2 = arith.constant 0 : index
    %c0_3 = arith.constant 0 : index
    %c0_4 = arith.constant 0 : index
    %6 = vector.load %arg2[%c0_2, %c0_3, %c0_4] : memref<1x18x256xf32, #tpu.memory_space<vmem>>, vector<1x18x256xf32>
    %7 = vector.shape_cast %6 : vector<1x18x256xf32> to vector<18x256xf32>
    %8 = vector.extract_strided_slice %7 {offsets = [0, 0], sizes = [1, 256], strides = [1, 1]} : vector<18x256xf32> to vector<1x256xf32>
    %9 = vector.extract_strided_slice %7 {offsets = [1, 0], sizes = [1, 256], strides = [1, 1]} : vector<18x256xf32> to vector<1x256xf32>
    %10 = vector.broadcast %1 : vector<16x1xf32> to vector<16x256xf32>
    %11 = vector.broadcast %8 : vector<1x256xf32> to vector<16x256xf32>
    %12 = arith.subf %10, %11 : vector<16x256xf32>
    %13 = math.absf %12 : vector<16x256xf32>
    %cst = arith.constant 1.000000e+00 : f32
    %14 = vector.broadcast %cst : f32 to vector<16x256xf32>
    %15 = arith.subf %14, %13 : vector<16x256xf32>
    %cst_5 = arith.constant 0.000000e+00 : f32
    %16 = vector.broadcast %cst_5 : f32 to vector<16x256xf32>
    %17 = arith.maximumf %16, %15 : vector<16x256xf32>
    %18 = vector.broadcast %3 : vector<16x1xf32> to vector<16x256xf32>
    %19 = vector.broadcast %9 : vector<1x256xf32> to vector<16x256xf32>
    %20 = arith.subf %18, %19 : vector<16x256xf32>
    %21 = math.absf %20 : vector<16x256xf32>
    %cst_6 = arith.constant 1.000000e+00 : f32
    %22 = vector.broadcast %cst_6 : f32 to vector<16x256xf32>
    %23 = arith.subf %22, %21 : vector<16x256xf32>
    %cst_7 = arith.constant 0.000000e+00 : f32
    %24 = vector.broadcast %cst_7 : f32 to vector<16x256xf32>
    %25 = arith.maximumf %24, %23 : vector<16x256xf32>
    %26 = vector.shape_cast %17 : vector<16x256xf32> to vector<16x1x256xf32>
    %27 = vector.shape_cast %25 : vector<16x256xf32> to vector<1x16x256xf32>
    %28 = vector.broadcast %26 : vector<16x1x256xf32> to vector<16x16x256xf32>
    %29 = vector.broadcast %27 : vector<1x16x256xf32> to vector<16x16x256xf32>
    %30 = arith.mulf %28, %29 : vector<16x16x256xf32>
    %31 = vector.shape_cast %30 : vector<16x16x256xf32> to vector<256x256xf32>
    %32 = arith.truncf %31 : vector<256x256xf32> to vector<256x256xbf16>
    %cst_8 = arith.constant dense<0.000000e+00> : vector<8x256xf32>
    %33 = tpu.matmul %5, %32, %cst_8 {dimension_numbers = #tpu.dot_dimension_numbers<[1], [0], [0], [1], [0, 0, 1, 1], [], []>} : vector<8x256xbf16>, vector<256x256xbf16>, vector<8x256xf32> -> vector<8x256xf32>
    %c0_9 = arith.constant 0 : index
    %c0_10 = arith.constant 0 : index
    %34 = vector.load %arg6[%c0_9, %c0_10] : memref<72x256xf32, #tpu.memory_space<vmem>>, vector<8x256xf32>
    tpu.vector_store %arg6[%c0_9, %c0_10], %33 {strides = array<i32>} : memref<72x256xf32, #tpu.memory_space<vmem>>, vector<8x256xf32>,
    %35 = vector.extract_strided_slice %7 {offsets = [2, 0], sizes = [1, 256], strides = [1, 1]} : vector<18x256xf32> to vector<1x256xf32>
    %36 = vector.extract_strided_slice %7 {offsets = [3, 0], sizes = [1, 256], strides = [1, 1]} : vector<18x256xf32> to vector<1x256xf32>
    %37 = vector.broadcast %1 : vector<16x1xf32> to vector<16x256xf32>
    %38 = vector.broadcast %35 : vector<1x256xf32> to vector<16x256xf32>
    %39 = arith.subf %37, %38 : vector<16x256xf32>
    %40 = math.absf %39 : vector<16x256xf32>
    %cst_11 = arith.constant 1.000000e+00 : f32
    %41 = vector.broadcast %cst_11 : f32 to vector<16x256xf32>
    %42 = arith.subf %41, %40 : vector<16x256xf32>
    %cst_12 = arith.constant 0.000000e+00 : f32
    %43 = vector.broadcast %cst_12 : f32 to vector<16x256xf32>
    %44 = arith.maximumf %43, %42 : vector<16x256xf32>
    %45 = vector.broadcast %3 : vector<16x1xf32> to vector<16x256xf32>
    %46 = vector.broadcast %36 : vector<1x256xf32> to vector<16x256xf32>
    %47 = arith.subf %45, %46 : vector<16x256xf32>
    %48 = math.absf %47 : vector<16x256xf32>
    %cst_13 = arith.constant 1.000000e+00 : f32
    %49 = vector.broadcast %cst_13 : f32 to vector<16x256xf32>
    %50 = arith.subf %49, %48 : vector<16x256xf32>
    %cst_14 = arith.constant 0.000000e+00 : f32
    %51 = vector.broadcast %cst_14 : f32 to vector<16x256xf32>
    %52 = arith.maximumf %51, %50 : vector<16x256xf32>
    %53 = vector.shape_cast %44 : vector<16x256xf32> to vector<16x1x256xf32>
    %54 = vector.shape_cast %52 : vector<16x256xf32> to vector<1x16x256xf32>
    %55 = vector.broadcast %53 : vector<16x1x256xf32> to vector<16x16x256xf32>
    %56 = vector.broadcast %54 : vector<1x16x256xf32> to vector<16x16x256xf32>
    %57 = arith.mulf %55, %56 : vector<16x16x256xf32>
    %58 = vector.shape_cast %57 : vector<16x16x256xf32> to vector<256x256xf32>
    %59 = arith.truncf %58 : vector<256x256xf32> to vector<256x256xbf16>
    %cst_15 = arith.constant dense<0.000000e+00> : vector<8x256xf32>
    %60 = tpu.matmul %5, %59, %cst_15 {dimension_numbers = #tpu.dot_dimension_numbers<[1], [0], [0], [1], [0, 0, 1, 1], [], []>} : vector<8x256xbf16>, vector<256x256xbf16>, vector<8x256xf32> -> vector<8x256xf32>
    %c8 = arith.constant 8 : index
    %c0_16 = arith.constant 0 : index
    %61 = vector.load %arg6[%c8, %c0_16] : memref<72x256xf32, #tpu.memory_space<vmem>>, vector<8x256xf32>
    tpu.vector_store %arg6[%c8, %c0_16], %60 {strides = array<i32>} : memref<72x256xf32, #tpu.memory_space<vmem>>, vector<8x256xf32>,
    %62 = vector.extract_strided_slice %7 {offsets = [4, 0], sizes = [1, 256], strides = [1, 1]} : vector<18x256xf32> to vector<1x256xf32>
    %63 = vector.extract_strided_slice %7 {offsets = [5, 0], sizes = [1, 256], strides = [1, 1]} : vector<18x256xf32> to vector<1x256xf32>
    %64 = vector.broadcast %1 : vector<16x1xf32> to vector<16x256xf32>
    %65 = vector.broadcast %62 : vector<1x256xf32> to vector<16x256xf32>
    %66 = arith.subf %64, %65 : vector<16x256xf32>
    %67 = math.absf %66 : vector<16x256xf32>
    %cst_17 = arith.constant 1.000000e+00 : f32
    %68 = vector.broadcast %cst_17 : f32 to vector<16x256xf32>
    %69 = arith.subf %68, %67 : vector<16x256xf32>
    %cst_18 = arith.constant 0.000000e+00 : f32
    %70 = vector.broadcast %cst_18 : f32 to vector<16x256xf32>
    %71 = arith.maximumf %70, %69 : vector<16x256xf32>
    %72 = vector.broadcast %3 : vector<16x1xf32> to vector<16x256xf32>
    %73 = vector.broadcast %63 : vector<1x256xf32> to vector<16x256xf32>
    %74 = arith.subf %72, %73 : vector<16x256xf32>
    %75 = math.absf %74 : vector<16x256xf32>
    %cst_19 = arith.constant 1.000000e+00 : f32
    %76 = vector.broadcast %cst_19 : f32 to vector<16x256xf32>
    %77 = arith.subf %76, %75 : vector<16x256xf32>
    %cst_20 = arith.constant 0.000000e+00 : f32
    %78 = vector.broadcast %cst_20 : f32 to vector<16x256xf32>
    %79 = arith.maximumf %78, %77 : vector<16x256xf32>
    %80 = vector.shape_cast %71 : vector<16x256xf32> to vector<16x1x256xf32>
    %81 = vector.shape_cast %79 : vector<16x256xf32> to vector<1x16x256xf32>
    %82 = vector.broadcast %80 : vector<16x1x256xf32> to vector<16x16x256xf32>
    %83 = vector.broadcast %81 : vector<1x16x256xf32> to vector<16x16x256xf32>
    %84 = arith.mulf %82, %83 : vector<16x16x256xf32>
    %85 = vector.shape_cast %84 : vector<16x16x256xf32> to vector<256x256xf32>
    %86 = arith.truncf %85 : vector<256x256xf32> to vector<256x256xbf16>
    %cst_21 = arith.constant dense<0.000000e+00> : vector<8x256xf32>
    %87 = tpu.matmul %5, %86, %cst_21 {dimension_numbers = #tpu.dot_dimension_numbers<[1], [0], [0], [1], [0, 0, 1, 1], [], []>} : vector<8x256xbf16>, vector<256x256xbf16>, vector<8x256xf32> -> vector<8x256xf32>
    %c16 = arith.constant 16 : index
    %c0_22 = arith.constant 0 : index
    %88 = vector.load %arg6[%c16, %c0_22] : memref<72x256xf32, #tpu.memory_space<vmem>>, vector<8x256xf32>
    tpu.vector_store %arg6[%c16, %c0_22], %87 {strides = array<i32>} : memref<72x256xf32, #tpu.memory_space<vmem>>, vector<8x256xf32>,
    %89 = vector.extract_strided_slice %7 {offsets = [6, 0], sizes = [1, 256], strides = [1, 1]} : vector<18x256xf32> to vector<1x256xf32>
    %90 = vector.extract_strided_slice %7 {offsets = [7, 0], sizes = [1, 256], strides = [1, 1]} : vector<18x256xf32> to vector<1x256xf32>
    %91 = vector.broadcast %1 : vector<16x1xf32> to vector<16x256xf32>
    %92 = vector.broadcast %89 : vector<1x256xf32> to vector<16x256xf32>
    %93 = arith.subf %91, %92 : vector<16x256xf32>
    %94 = math.absf %93 : vector<16x256xf32>
    %cst_23 = arith.constant 1.000000e+00 : f32
    %95 = vector.broadcast %cst_23 : f32 to vector<16x256xf32>
    %96 = arith.subf %95, %94 : vector<16x256xf32>
    %cst_24 = arith.constant 0.000000e+00 : f32
    %97 = vector.broadcast %cst_24 : f32 to vector<16x256xf32>
    %98 = arith.maximumf %97, %96 : vector<16x256xf32>
    %99 = vector.broadcast %3 : vector<16x1xf32> to vector<16x256xf32>
    %100 = vector.broadcast %90 : vector<1x256xf32> to vector<16x256xf32>
    %101 = arith.subf %99, %100 : vector<16x256xf32>
    %102 = math.absf %101 : vector<16x256xf32>
    %cst_25 = arith.constant 1.000000e+00 : f32
    %103 = vector.broadcast %cst_25 : f32 to vector<16x256xf32>
    %104 = arith.subf %103, %102 : vector<16x256xf32>
    %cst_26 = arith.constant 0.000000e+00 : f32
    %105 = vector.broadcast %cst_26 : f32 to vector<16x256xf32>
    %106 = arith.maximumf %105, %104 : vector<16x256xf32>
    %107 = vector.shape_cast %98 : vector<16x256xf32> to vector<16x1x256xf32>
    %108 = vector.shape_cast %106 : vector<16x256xf32> to vector<1x16x256xf32>
    %109 = vector.broadcast %107 : vector<16x1x256xf32> to vector<16x16x256xf32>
    %110 = vector.broadcast %108 : vector<1x16x256xf32> to vector<16x16x256xf32>
    %111 = arith.mulf %109, %110 : vector<16x16x256xf32>
    %112 = vector.shape_cast %111 : vector<16x16x256xf32> to vector<256x256xf32>
    %113 = arith.truncf %112 : vector<256x256xf32> to vector<256x256xbf16>
    %cst_27 = arith.constant dense<0.000000e+00> : vector<8x256xf32>
    %114 = tpu.matmul %5, %113, %cst_27 {dimension_numbers = #tpu.dot_dimension_numbers<[1], [0], [0], [1], [0, 0, 1, 1], [], []>} : vector<8x256xbf16>, vector<256x256xbf16>, vector<8x256xf32> -> vector<8x256xf32>
    %c24 = arith.constant 24 : index
    %c0_28 = arith.constant 0 : index
    %115 = vector.load %arg6[%c24, %c0_28] : memref<72x256xf32, #tpu.memory_space<vmem>>, vector<8x256xf32>
    tpu.vector_store %arg6[%c24, %c0_28], %114 {strides = array<i32>} : memref<72x256xf32, #tpu.memory_space<vmem>>, vector<8x256xf32>,
    %116 = vector.extract_strided_slice %7 {offsets = [8, 0], sizes = [1, 256], strides = [1, 1]} : vector<18x256xf32> to vector<1x256xf32>
    %117 = vector.extract_strided_slice %7 {offsets = [9, 0], sizes = [1, 256], strides = [1, 1]} : vector<18x256xf32> to vector<1x256xf32>
    %118 = vector.broadcast %1 : vector<16x1xf32> to vector<16x256xf32>
    %119 = vector.broadcast %116 : vector<1x256xf32> to vector<16x256xf32>
    %120 = arith.subf %118, %119 : vector<16x256xf32>
    %121 = math.absf %120 : vector<16x256xf32>
    %cst_29 = arith.constant 1.000000e+00 : f32
    %122 = vector.broadcast %cst_29 : f32 to vector<16x256xf32>
    %123 = arith.subf %122, %121 : vector<16x256xf32>
    %cst_30 = arith.constant 0.000000e+00 : f32
    %124 = vector.broadcast %cst_30 : f32 to vector<16x256xf32>
    %125 = arith.maximumf %124, %123 : vector<16x256xf32>
    %126 = vector.broadcast %3 : vector<16x1xf32> to vector<16x256xf32>
    %127 = vector.broadcast %117 : vector<1x256xf32> to vector<16x256xf32>
    %128 = arith.subf %126, %127 : vector<16x256xf32>
    %129 = math.absf %128 : vector<16x256xf32>
    %cst_31 = arith.constant 1.000000e+00 : f32
    %130 = vector.broadcast %cst_31 : f32 to vector<16x256xf32>
    %131 = arith.subf %130, %129 : vector<16x256xf32>
    %cst_32 = arith.constant 0.000000e+00 : f32
    %132 = vector.broadcast %cst_32 : f32 to vector<16x256xf32>
    %133 = arith.maximumf %132, %131 : vector<16x256xf32>
    %134 = vector.shape_cast %125 : vector<16x256xf32> to vector<16x1x256xf32>
    %135 = vector.shape_cast %133 : vector<16x256xf32> to vector<1x16x256xf32>
    %136 = vector.broadcast %134 : vector<16x1x256xf32> to vector<16x16x256xf32>
    %137 = vector.broadcast %135 : vector<1x16x256xf32> to vector<16x16x256xf32>
    %138 = arith.mulf %136, %137 : vector<16x16x256xf32>
    %139 = vector.shape_cast %138 : vector<16x16x256xf32> to vector<256x256xf32>
    %140 = arith.truncf %139 : vector<256x256xf32> to vector<256x256xbf16>
    %cst_33 = arith.constant dense<0.000000e+00> : vector<8x256xf32>
    %141 = tpu.matmul %5, %140, %cst_33 {dimension_numbers = #tpu.dot_dimension_numbers<[1], [0], [0], [1], [0, 0, 1, 1], [], []>} : vector<8x256xbf16>, vector<256x256xbf16>, vector<8x256xf32> -> vector<8x256xf32>
    %c32 = arith.constant 32 : index
    %c0_34 = arith.constant 0 : index
    %142 = vector.load %arg6[%c32, %c0_34] : memref<72x256xf32, #tpu.memory_space<vmem>>, vector<8x256xf32>
    tpu.vector_store %arg6[%c32, %c0_34], %141 {strides = array<i32>} : memref<72x256xf32, #tpu.memory_space<vmem>>, vector<8x256xf32>,
    %143 = vector.extract_strided_slice %7 {offsets = [10, 0], sizes = [1, 256], strides = [1, 1]} : vector<18x256xf32> to vector<1x256xf32>
    %144 = vector.extract_strided_slice %7 {offsets = [11, 0], sizes = [1, 256], strides = [1, 1]} : vector<18x256xf32> to vector<1x256xf32>
    %145 = vector.broadcast %1 : vector<16x1xf32> to vector<16x256xf32>
    %146 = vector.broadcast %143 : vector<1x256xf32> to vector<16x256xf32>
    %147 = arith.subf %145, %146 : vector<16x256xf32>
    %148 = math.absf %147 : vector<16x256xf32>
    %cst_35 = arith.constant 1.000000e+00 : f32
    %149 = vector.broadcast %cst_35 : f32 to vector<16x256xf32>
    %150 = arith.subf %149, %148 : vector<16x256xf32>
    %cst_36 = arith.constant 0.000000e+00 : f32
    %151 = vector.broadcast %cst_36 : f32 to vector<16x256xf32>
    %152 = arith.maximumf %151, %150 : vector<16x256xf32>
    %153 = vector.broadcast %3 : vector<16x1xf32> to vector<16x256xf32>
    %154 = vector.broadcast %144 : vector<1x256xf32> to vector<16x256xf32>
    %155 = arith.subf %153, %154 : vector<16x256xf32>
    %156 = math.absf %155 : vector<16x256xf32>
    %cst_37 = arith.constant 1.000000e+00 : f32
    %157 = vector.broadcast %cst_37 : f32 to vector<16x256xf32>
    %158 = arith.subf %157, %156 : vector<16x256xf32>
    %cst_38 = arith.constant 0.000000e+00 : f32
    %159 = vector.broadcast %cst_38 : f32 to vector<16x256xf32>
    %160 = arith.maximumf %159, %158 : vector<16x256xf32>
    %161 = vector.shape_cast %152 : vector<16x256xf32> to vector<16x1x256xf32>
    %162 = vector.shape_cast %160 : vector<16x256xf32> to vector<1x16x256xf32>
    %163 = vector.broadcast %161 : vector<16x1x256xf32> to vector<16x16x256xf32>
    %164 = vector.broadcast %162 : vector<1x16x256xf32> to vector<16x16x256xf32>
    %165 = arith.mulf %163, %164 : vector<16x16x256xf32>
    %166 = vector.shape_cast %165 : vector<16x16x256xf32> to vector<256x256xf32>
    %167 = arith.truncf %166 : vector<256x256xf32> to vector<256x256xbf16>
    %cst_39 = arith.constant dense<0.000000e+00> : vector<8x256xf32>
    %168 = tpu.matmul %5, %167, %cst_39 {dimension_numbers = #tpu.dot_dimension_numbers<[1], [0], [0], [1], [0, 0, 1, 1], [], []>} : vector<8x256xbf16>, vector<256x256xbf16>, vector<8x256xf32> -> vector<8x256xf32>
    %c40 = arith.constant 40 : index
    %c0_40 = arith.constant 0 : index
    %169 = vector.load %arg6[%c40, %c0_40] : memref<72x256xf32, #tpu.memory_space<vmem>>, vector<8x256xf32>
    tpu.vector_store %arg6[%c40, %c0_40], %168 {strides = array<i32>} : memref<72x256xf32, #tpu.memory_space<vmem>>, vector<8x256xf32>,
    %170 = vector.extract_strided_slice %7 {offsets = [12, 0], sizes = [1, 256], strides = [1, 1]} : vector<18x256xf32> to vector<1x256xf32>
    %171 = vector.extract_strided_slice %7 {offsets = [13, 0], sizes = [1, 256], strides = [1, 1]} : vector<18x256xf32> to vector<1x256xf32>
    %172 = vector.broadcast %1 : vector<16x1xf32> to vector<16x256xf32>
    %173 = vector.broadcast %170 : vector<1x256xf32> to vector<16x256xf32>
    %174 = arith.subf %172, %173 : vector<16x256xf32>
    %175 = math.absf %174 : vector<16x256xf32>
    %cst_41 = arith.constant 1.000000e+00 : f32
    %176 = vector.broadcast %cst_41 : f32 to vector<16x256xf32>
    %177 = arith.subf %176, %175 : vector<16x256xf32>
    %cst_42 = arith.constant 0.000000e+00 : f32
    %178 = vector.broadcast %cst_42 : f32 to vector<16x256xf32>
    %179 = arith.maximumf %178, %177 : vector<16x256xf32>
    %180 = vector.broadcast %3 : vector<16x1xf32> to vector<16x256xf32>
    %181 = vector.broadcast %171 : vector<1x256xf32> to vector<16x256xf32>
    %182 = arith.subf %180, %181 : vector<16x256xf32>
    %183 = math.absf %182 : vector<16x256xf32>
    %cst_43 = arith.constant 1.000000e+00 : f32
    %184 = vector.broadcast %cst_43 : f32 to vector<16x256xf32>
    %185 = arith.subf %184, %183 : vector<16x256xf32>
    %cst_44 = arith.constant 0.000000e+00 : f32
    %186 = vector.broadcast %cst_44 : f32 to vector<16x256xf32>
    %187 = arith.maximumf %186, %185 : vector<16x256xf32>
    %188 = vector.shape_cast %179 : vector<16x256xf32> to vector<16x1x256xf32>
    %189 = vector.shape_cast %187 : vector<16x256xf32> to vector<1x16x256xf32>
    %190 = vector.broadcast %188 : vector<16x1x256xf32> to vector<16x16x256xf32>
    %191 = vector.broadcast %189 : vector<1x16x256xf32> to vector<16x16x256xf32>
    %192 = arith.mulf %190, %191 : vector<16x16x256xf32>
    %193 = vector.shape_cast %192 : vector<16x16x256xf32> to vector<256x256xf32>
    %194 = arith.truncf %193 : vector<256x256xf32> to vector<256x256xbf16>
    %cst_45 = arith.constant dense<0.000000e+00> : vector<8x256xf32>
    %195 = tpu.matmul %5, %194, %cst_45 {dimension_numbers = #tpu.dot_dimension_numbers<[1], [0], [0], [1], [0, 0, 1, 1], [], []>} : vector<8x256xbf16>, vector<256x256xbf16>, vector<8x256xf32> -> vector<8x256xf32>
    %c48 = arith.constant 48 : index
    %c0_46 = arith.constant 0 : index
    %196 = vector.load %arg6[%c48, %c0_46] : memref<72x256xf32, #tpu.memory_space<vmem>>, vector<8x256xf32>
    tpu.vector_store %arg6[%c48, %c0_46], %195 {strides = array<i32>} : memref<72x256xf32, #tpu.memory_space<vmem>>, vector<8x256xf32>,
    %197 = vector.extract_strided_slice %7 {offsets = [14, 0], sizes = [1, 256], strides = [1, 1]} : vector<18x256xf32> to vector<1x256xf32>
    %198 = vector.extract_strided_slice %7 {offsets = [15, 0], sizes = [1, 256], strides = [1, 1]} : vector<18x256xf32> to vector<1x256xf32>
    %199 = vector.broadcast %1 : vector<16x1xf32> to vector<16x256xf32>
    %200 = vector.broadcast %197 : vector<1x256xf32> to vector<16x256xf32>
    %201 = arith.subf %199, %200 : vector<16x256xf32>
    %202 = math.absf %201 : vector<16x256xf32>
    %cst_47 = arith.constant 1.000000e+00 : f32
    %203 = vector.broadcast %cst_47 : f32 to vector<16x256xf32>
    %204 = arith.subf %203, %202 : vector<16x256xf32>
    %cst_48 = arith.constant 0.000000e+00 : f32
    %205 = vector.broadcast %cst_48 : f32 to vector<16x256xf32>
    %206 = arith.maximumf %205, %204 : vector<16x256xf32>
    %207 = vector.broadcast %3 : vector<16x1xf32> to vector<16x256xf32>
    %208 = vector.broadcast %198 : vector<1x256xf32> to vector<16x256xf32>
    %209 = arith.subf %207, %208 : vector<16x256xf32>
    %210 = math.absf %209 : vector<16x256xf32>
    %cst_49 = arith.constant 1.000000e+00 : f32
    %211 = vector.broadcast %cst_49 : f32 to vector<16x256xf32>
    %212 = arith.subf %211, %210 : vector<16x256xf32>
    %cst_50 = arith.constant 0.000000e+00 : f32
    %213 = vector.broadcast %cst_50 : f32 to vector<16x256xf32>
    %214 = arith.maximumf %213, %212 : vector<16x256xf32>
    %215 = vector.shape_cast %206 : vector<16x256xf32> to vector<16x1x256xf32>
    %216 = vector.shape_cast %214 : vector<16x256xf32> to vector<1x16x256xf32>
    %217 = vector.broadcast %215 : vector<16x1x256xf32> to vector<16x16x256xf32>
    %218 = vector.broadcast %216 : vector<1x16x256xf32> to vector<16x16x256xf32>
    %219 = arith.mulf %217, %218 : vector<16x16x256xf32>
    %220 = vector.shape_cast %219 : vector<16x16x256xf32> to vector<256x256xf32>
    %221 = arith.truncf %220 : vector<256x256xf32> to vector<256x256xbf16>
    %cst_51 = arith.constant dense<0.000000e+00> : vector<8x256xf32>
    %222 = tpu.matmul %5, %221, %cst_51 {dimension_numbers = #tpu.dot_dimension_numbers<[1], [0], [0], [1], [0, 0, 1, 1], [], []>} : vector<8x256xbf16>, vector<256x256xbf16>, vector<8x256xf32> -> vector<8x256xf32>
    %c56 = arith.constant 56 : index
    %c0_52 = arith.constant 0 : index
    %223 = vector.load %arg6[%c56, %c0_52] : memref<72x256xf32, #tpu.memory_space<vmem>>, vector<8x256xf32>
    tpu.vector_store %arg6[%c56, %c0_52], %222 {strides = array<i32>} : memref<72x256xf32, #tpu.memory_space<vmem>>, vector<8x256xf32>,
    %224 = vector.extract_strided_slice %7 {offsets = [16, 0], sizes = [1, 256], strides = [1, 1]} : vector<18x256xf32> to vector<1x256xf32>
    %225 = vector.extract_strided_slice %7 {offsets = [17, 0], sizes = [1, 256], strides = [1, 1]} : vector<18x256xf32> to vector<1x256xf32>
    %226 = vector.broadcast %1 : vector<16x1xf32> to vector<16x256xf32>
    %227 = vector.broadcast %224 : vector<1x256xf32> to vector<16x256xf32>
    %228 = arith.subf %226, %227 : vector<16x256xf32>
    %229 = math.absf %228 : vector<16x256xf32>
    %cst_53 = arith.constant 1.000000e+00 : f32
    %230 = vector.broadcast %cst_53 : f32 to vector<16x256xf32>
    %231 = arith.subf %230, %229 : vector<16x256xf32>
    %cst_54 = arith.constant 0.000000e+00 : f32
    %232 = vector.broadcast %cst_54 : f32 to vector<16x256xf32>
    %233 = arith.maximumf %232, %231 : vector<16x256xf32>
    %234 = vector.broadcast %3 : vector<16x1xf32> to vector<16x256xf32>
    %235 = vector.broadcast %225 : vector<1x256xf32> to vector<16x256xf32>
    %236 = arith.subf %234, %235 : vector<16x256xf32>
    %237 = math.absf %236 : vector<16x256xf32>
    %cst_55 = arith.constant 1.000000e+00 : f32
    %238 = vector.broadcast %cst_55 : f32 to vector<16x256xf32>
    %239 = arith.subf %238, %237 : vector<16x256xf32>
    %cst_56 = arith.constant 0.000000e+00 : f32
    %240 = vector.broadcast %cst_56 : f32 to vector<16x256xf32>
    %241 = arith.maximumf %240, %239 : vector<16x256xf32>
    %242 = vector.shape_cast %233 : vector<16x256xf32> to vector<16x1x256xf32>
    %243 = vector.shape_cast %241 : vector<16x256xf32> to vector<1x16x256xf32>
    %244 = vector.broadcast %242 : vector<16x1x256xf32> to vector<16x16x256xf32>
    %245 = vector.broadcast %243 : vector<1x16x256xf32> to vector<16x16x256xf32>
    %246 = arith.mulf %244, %245 : vector<16x16x256xf32>
    %247 = vector.shape_cast %246 : vector<16x16x256xf32> to vector<256x256xf32>
    %248 = arith.truncf %247 : vector<256x256xf32> to vector<256x256xbf16>
    %cst_57 = arith.constant dense<0.000000e+00> : vector<8x256xf32>
    %249 = tpu.matmul %5, %248, %cst_57 {dimension_numbers = #tpu.dot_dimension_numbers<[1], [0], [0], [1], [0, 0, 1, 1], [], []>} : vector<8x256xbf16>, vector<256x256xbf16>, vector<8x256xf32> -> vector<8x256xf32>
    %c64 = arith.constant 64 : index
    %c0_58 = arith.constant 0 : index
    %250 = vector.load %arg6[%c64, %c0_58] : memref<72x256xf32, #tpu.memory_space<vmem>>, vector<8x256xf32>
    tpu.vector_store %arg6[%c64, %c0_58], %249 {strides = array<i32>} : memref<72x256xf32, #tpu.memory_space<vmem>>, vector<8x256xf32>,
    %c0_59 = arith.constant 0 : index
    %c0_60 = arith.constant 0 : index
    %251 = vector.load %arg4[%c0_59, %c0_60] : memref<4x72xf32, #tpu.memory_space<vmem>>, vector<4x72xf32>
    %c0_61 = arith.constant 0 : index
    %c0_62 = arith.constant 0 : index
    %252 = vector.load %arg6[%c0_61, %c0_62] : memref<72x256xf32, #tpu.memory_space<vmem>>, vector<72x256xf32>
    %cst_63 = arith.constant dense<0.000000e+00> : vector<4x256xf32>
    %253 = tpu.matmul %251, %252, %cst_63 {dimension_numbers = #tpu.dot_dimension_numbers<[1], [0], [0], [1], [0, 0, 1, 1], [], []>} : vector<4x72xf32>, vector<72x256xf32>, vector<4x256xf32> -> vector<4x256xf32>
    %c0_64 = arith.constant 0 : index
    %c0_65 = arith.constant 0 : index
    %c0_66 = arith.constant 0 : index
    %254 = vector.load %arg5[%c0_64, %c0_65, %c0_66] : memref<1x4x256xf32, #tpu.memory_space<vmem>>, vector<1x4x256xf32>
    %255 = vector.shape_cast %254 : vector<1x4x256xf32> to vector<4x256xf32>
    %256 = vector.shape_cast %253 : vector<4x256xf32> to vector<1x4x256xf32>
    tpu.vector_store %arg5[%c0_64, %c0_65, %c0_66], %256 {strides = array<i32>} : memref<1x4x256xf32, #tpu.memory_space<vmem>>, vector<1x4x256xf32>,
    return
  }
  func.func @transform_0(%arg0: i32, %arg1: i32) -> (i32, i32, i32) {
    %c0_i32 = arith.constant 0 : i32
    %c0_i32_0 = arith.constant 0 : i32
    return %arg0, %c0_i32, %arg1 : i32, i32, i32
  }
  func.func @transform_1(%arg0: i32, %arg1: i32) -> (i32, i32, i32) {
    %c0_i32 = arith.constant 0 : i32
    %c0_i32_0 = arith.constant 0 : i32
    %c0_i32_1 = arith.constant 0 : i32
    return %arg0, %c0_i32, %c0_i32_0 : i32, i32, i32
  }
  func.func @transform_2(%arg0: i32, %arg1: i32) -> (i32, i32) {
    %c0_i32 = arith.constant 0 : i32
    %c0_i32_0 = arith.constant 0 : i32
    %c0_i32_1 = arith.constant 0 : i32
    return %c0_i32, %c0_i32_0 : i32, i32
  }
  func.func @transform_3(%arg0: i32, %arg1: i32) -> (i32, i32, i32) {
    %c0_i32 = arith.constant 0 : i32
    %c0_i32_0 = arith.constant 0 : i32
    return %arg0, %c0_i32, %arg1 : i32, i32, i32
  }
}

</mosaic_0001>

<bundles_post_ra>
// kernel: tpu_custom_call.1
= control target key start
LH: loop header
LB: loop body
LE: loop exit
PB: predicated region body
PF: predicated region fallthrough
CT: control target
= control target key end

     0   :  { %8 = vsyncpa [#allocation4], 0  ;;  %s6483_s0 = inlined_call_operand.vmem [shape: f32[2,18,256], index: 0, kind: input, shape index: {}]   ;;  %s6484_s1 = inlined_call_operand.vmem [shape: bf16[2,8,256], index: 1, kind: input, shape index: {}]   ;;  %s6485_s2 = inlined_call_operand.vmem [shape: f32[4,72], index: 2, kind: input, shape index: {}]   ;;  %s6486_s3 = inlined_call_operand.hbm [shape: f32[2,4,256], index: 3, kind: output, shape index: {}]  }
   0x1   :  { %10 = vsyncpa [#allocation4 + $0x1], 0  ;;  %s4700_s12 = smov 0   ;;  %s4702_s13 = smov 0  }
   0x2   :  { %s4704_s14 = smov 0   ;;  %s4706_s15 = smov 0  }
   0x3   :  { %s4708_s16 = smov 0   ;;  %s4710_s17 = smov 0  }
   0x4 LB: > { %s4502_s18 = sadd.s32 4294967295, %s4675_s17   ;;  %s4503_s19 = sadd.s32 4294967294, %s4675_s17   ;;  %s4675_s17 = sphi %s4710_s17, %s16_s17   ;;  %s4671_s16 = sphi %s4708_s16, %s6514_s16   ;;  %s4667_s15 = sphi %s4706_s15, %s6513_s15   ;;  %s4663_s14 = sphi %s4704_s14, %s6512_s14   ;;  %s4659_s13 = sphi %s4702_s13, %s6511_s13   ;;  %s4655_s12 = sphi %s4700_s12, %s6510_s12  }
   0x5   : > { %s28_s20 = sadd.s32 1, %s4671_s16  ;;  %s112_s21 = sadd.s32 1, %s4663_s14 }
   0x6   : > { %p30_p0 = scmp.ge.s32.totalorder %s28_s20, 2  ;;  %p122_p1 = scmp.ne.s32.totalorder %s4663_s14, %s4659_s13 }
   0x7   : > { %p123_p2 = scmp.eq.s32.totalorder %s4502_s18, 1  ;;  %p128_p3 = scmp.ne.s32.totalorder %s4659_s13, %s4655_s12 }
   0x8   : > { %s6516_s20 = smov (%p30_p0, %s28_s20), 0  ;;  %p129_p5 = scmp.eq.s32.totalorder %s4503_s19, 1 }
   0x9   : > { %p4740_p4 = por %p123_p2, %p122_p1  ;;  %s107_s23 = ssub.s32 %s4671_s16, %s6516_s20 }
   0xa   : > { %p4506_p6 = scmp.ge.s32.totalorder %s4675_s17, 1  ;;  %p110_p7 = scmp.eq.s32.totalorder %s107_s23, 0 }
   0xb   : > { %p4747_p8 = por %p129_p5, %p128_p3  ;;  %p171_p9 = scmp.lt.s32.totalorder %s4675_s17, 3 }
   0xc   : > { %s4753_s25 = scalar_select %p110_p7, %s4663_s14, %s112_s21  }
   0xd   : > { %p172_p10 = pnand %p4506_p6, %p171_p9 }
   0xf   : > { %175 = sbr.rel (%p172_p10) target bundleno = 944 (0x3b0), region = 32 }
  0x16   : > { %p205_p11 = scmp.lt.s32.totalorder %s4667_s15, 1  ;;  %v220_v0 = vlaneseq  ;;  %v4677_v1 = vmov 1966171168   ;;  %vm4317_vm0 = vcmask 588800   ;;  %s201_s10 = sand.u32 1, %s4659_s13  }
  0x17   : > { %v287_v2 = vunpack.c.l.s4 %v4677_v1  ;;  %s4507_s11 = sshll.u32 %s201_s10, 3  ;;  %s4520_s18 = sshll.u32 %s4667_s15, 7 }
  0x18   : > { %s206_s26 = scalar_select %p205_p11, %s4667_s15, 1  ;;  %v221_v3 = vshrl.u32 %v220_v0, 7 }
  0x19   : > { %v288_v4 = vunpack.c.0.s8 %v287_v2  ;;  %s203_s19 = scalar_lea.vmem [#allocation3], %s4507_s11  ;;  %s4679_s15 = smov [#allocation3]  }
  0x1a   : > { %s4537_s27 = smul.u32 48, %s206_s26  ;;  %v222_v5 = vadd.s32 8, %v221_v3  ;;  %v4757_v6 = vsub.s32 0, %v221_v3  ;;  %v4759_v7 = vsub.s32 1, %v221_v3  ;;  %s4519_s28 = sshll.u32 %s206_s26, 3  ;;  %v4761_v8 = vsub.s32 3, %v221_v3 }
  0x1b   : > { %v4763_v9 = vsub.s32 5, %v221_v3  ;;  %s218_s4 = scalar_lea.vmem %s6484_s1, %s4519_s28  ;;  %v4773_v10 = vcvt.s32.f32 %v221_v3  ;;  %v4783_v15 = vsub.s32 %v288_v4, %v221_v3  ;;  %v4785_v16 = vsub.s32 7, %v221_v3  ;;  %s4414_s21 = sshll.u32 %s203_s19, 4  ;;  %s6438_s21 = int_to_ptr.vmem [resolvable:$true] %s4414_s21 }
  0x1c   : > { %s4771_s7 = scalar_lea.vmem %s6483_s0, %s4537_s27  ;;  %v225_v11 = vld [vmem:[%s218_s4] sm:$0xff]  ;;  %v4775_v12 = vcvt.s32.f32 %v222_v5  ;;  %v4807_v25 = vsub.s32 2, %v221_v3  ;;  %v4831_v56 = vsub.s32 4, %v221_v3  ;;  %v4833_v57 = vsub.s32 6, %v221_v3  ;;  %s6436_s27 = scalar_lea.hbm %s6486_s3, %s4520_s18 }
  0x1d   : > { %v4778_v13 = vld [vmem:[%s4771_s7] sm:$0xff]  ;;  %v4781_v14 = vld [vmem:[%s4771_s7 + $0x8] sm:$0xff]  ;;  %6497 = vst [vmem:[#allocation6_spill] sm:$0xff] %v4785_v16  ;;  %v4787_v17 = vcombine.high %v225_v11, %v225_v11  ;;  %v4829_v55 = vcombine.low %v225_v11, %v225_v11  ;;  %s4398_s28 = scalar_lea.sflag [#allocation4], %s201_s10  ;;  %s4597_s29 = scalar_lea.vmem %s6438_s21, 128 }
  0x1e   : > { %v4791_v18 = vrot.slane %v4778_v13, %v4757_v6  ;;  %v4795_v19 = vrot.slane %v4781_v14, %v4757_v6  ;;  %v259_v20 = vrot.slane %v4778_v13, %v4759_v7  ;;  %v263_v21 = vrot.slane %v4781_v14, %v4759_v7  ;;  %6498 = vst [vmem:[#allocation7_spill] sm:$0xff] %v4807_v25  ;;  %p4598_p12 = scmp.ne.s32.totalorder %s6438_s21, %s4597_s29  ;;  %s4601_s30 = sshll.u32 %s4679_s15, 4  ;;  %s4602_s30 = int_to_ptr.vmem [resolvable:$false] %s4601_s30 }
  0x1f   : > { %v717_v22 = vrot.slane %v4778_v13, %v4761_v8  ;;  %v721_v23 = vrot.slane %v4781_v14, %v4761_v8  ;;  %v1168_v24 = vrot.slane %v4778_v13, %v4763_v9  ;;  %679 = vmatprep.mubr.bf16.mxu0 %v4787_v17  ;;  %1130 = vmatprep.mubr.bf16.mxu1 %v4787_v17  ;;  %s4603_s4 = scalar_lea.vmem %s4602_s30, 256  ;;  %p4604_p1 = scmp.lt.s32.totalorder %s6438_s21, %s4602_s30 }
  0x20   : > { %v240_v26 = vsub.f32 %v4773_v10, %v4791_v18  ;;  %v241_v27 = vsub.f32 %v4773_v10, %v4795_v19  ;;  %v264_v28 = vsub.f32 %v4773_v10, %v259_v20  ;;  %v265_v29 = vsub.f32 %v4773_v10, %v263_v21  ;;  %6499 = vst [vmem:[#allocation8_spill] sm:$0xff] %v4831_v56  ;;  %p4599_p13 = pnand %p4598_p12, %p4740_p4  ;;  %p4605_p2 = scmp.lt.s32.totalorder %s4603_s4, %s4597_s29 }
  0x21   : > { %v266_v30 = vsub.f32 %v4775_v12, %v259_v20  ;;  %v267_v31 = vsub.f32 %v4775_v12, %v263_v21  ;;  %v722_v32 = vsub.f32 %v4773_v10, %v717_v22  ;;  %v723_v33 = vsub.f32 %v4773_v10, %v721_v23  ;;  %6500 = vst [vmem:[#allocation9_spill] sm:$0xff] %v4833_v57 }
  0x22   : > { %v244_v34 = vand.u32 2147483647, %v240_v26  ;;  %v245_v35 = vand.u32 2147483647, %v241_v27  ;;  %v268_v36 = vand.u32 2147483647, %v264_v28  ;;  %v724_v37 = vsub.f32 %v4775_v12, %v717_v22  ;;  %p4600_p0 = pneg %p4599_p13  ;;  %p4606_p3 = por %p4605_p2, %p4604_p1 }
  0x23   : > { %v269_v38 = vand.u32 2147483647, %v265_v29  ;;  %v270_v39 = vand.u32 2147483647, %v266_v30  ;;  %v271_v40 = vand.u32 2147483647, %v267_v31  ;;  %v725_v41 = vsub.f32 %v4775_v12, %v721_v23 }
  0x24   : > { %v248_v42 = vsub.f32 1.0, %v244_v34  ;;  %v249_v43 = vsub.f32 1.0, %v245_v35  ;;  %v272_v44 = vsub.f32 1.0, %v268_v36  ;;  %v726_v45 = vand.u32 2147483647, %v722_v32  ;;  %p4607_p5 = pnand %p4606_p3, %p4600_p0 }
  0x25   : > { %v273_v46 = vsub.f32 1.0, %v269_v38  ;;  %v274_v47 = vsub.f32 1.0, %v270_v39  ;;  %v727_v48 = vand.u32 2147483647, %v723_v33  ;;  %v1172_v49 = vrot.slane %v4781_v14, %v4763_v9 }
  0x26   : > { %v4825_v50 = vmax.f32 %v248_v42, 0.0  ;;  %v4827_v51 = vmax.f32 %v249_v43, 0.0  ;;  %v275_v52 = vsub.f32 1.0, %v271_v40  ;;  %v728_v53 = vand.u32 2147483647, %v724_v37 }
  0x27   : > { %v729_v54 = vand.u32 2147483647, %v725_v41  ;;  %v4835_v58 = vmax.f32 %v272_v44, 0.0  ;;  %v730_v60 = vsub.f32 1.0, %v726_v45  ;;  %v731_v61 = vsub.f32 1.0, %v727_v48 }
  0x28   : > { %v284_v59 = vcombine.low %v4825_v50, %v4827_v51  ;;  %v732_v62 = vsub.f32 1.0, %v728_v53  ;;  %v1173_v63 = vsub.f32 %v4773_v10, %v1168_v24  ;;  %v1174_v0 = vsub.f32 %v4773_v10, %v1172_v49 }
  0x29   : > { %v1175_v1 = vsub.f32 %v4775_v12, %v1168_v24  ;;  %v4842_v2 = vmax.f32 %v273_v46, 0.0  ;;  %v4844_v4 = vmax.f32 %v274_v47, 0.0  ;;  %v4846_v3 = vmax.f32 %v275_v52, 0.0 }
  0x2a   : > { %v292_v5 = vrot.slane %v284_v59, %v4783_v15  ;;  %v733_v11 = vsub.f32 1.0, %v729_v54  ;;  %v1176_v20 = vsub.f32 %v4775_v12, %v1172_v49  ;;  %v1177_v21 = vand.u32 2147483647, %v1173_v63 }
  0x2b   : > { %v1178_v22 = vand.u32 2147483647, %v1174_v0  ;;  %v4851_v26 = vmax.f32 %v730_v60, 0.0  ;;  %v1179_v27 = vand.u32 2147483647, %v1175_v1  ;;  %v1619_v24 = vrot.slane %v4778_v13, %v4785_v16 }
  0x2c   : > { %v308_v23 = vrot.slane %v292_v5, %v4783_v15  ;;  %v4855_v28 = vmax.f32 %v731_v61, 0.0  ;;  %v4857_v29 = vmax.f32 %v732_v62, 0.0  ;;  %v1180_v30 = vand.u32 2147483647, %v1176_v20 }
  0x2d   : > { %v1623_v31 = vrot.slane %v4781_v14, %v4785_v16  ;;  %v300_v32 = vcombine.high %v292_v5, %v292_v5  ;;  %v1624_v34 = vsub.f32 %v4773_v10, %v1619_v24  ;;  %v1626_v35 = vsub.f32 %v4775_v12, %v1619_v24 }
  0x2e   : > { %v391_v33 = vrot.slane %v308_v23, %v4759_v7  ;;  %v1181_v36 = vsub.f32 1.0, %v1177_v21  ;;  %v1182_v37 = vsub.f32 1.0, %v1178_v22  ;;  %v1183_v38 = vsub.f32 1.0, %v1179_v27 }
  0x2f   : > { %v1625_v39 = vsub.f32 %v4773_v10, %v1623_v31  ;;  %v1184_v42 = vsub.f32 1.0, %v1180_v30  ;;  %v1627_v43 = vsub.f32 %v4775_v12, %v1623_v31  ;;  %v4868_v44 = vmax.f32 %v733_v11, 0.0 }
  0x30   : > { %v545_v40 = vmul.f32 %v391_v33, %v4842_v2  ;;  %v547_v41 = vmul.f32 %v391_v33, %v4846_v3  ;;  %v4870_v45 = vand.u32 2147483647, %v1624_v34  ;;  %v4876_v47 = vrot.slane %v4778_v13, %v4807_v25 }
  0x31   : > { %v4872_v46 = vand.u32 2147483647, %v1625_v39  ;;  %v4878_v49 = vand.u32 2147483647, %v1626_v35  ;;  %v4880_v52 = vand.u32 2147483647, %v1627_v43  ;;  %v4884_v53 = vrot.slane %v4781_v14, %v4807_v25 }
  0x32   : > { %v609_v48 = vpack.c.bf16 %v547_v41, %v545_v40  ;;  %v4886_v54 = vmax.f32 %v1181_v36, 0.0  ;;  %v4888_v59 = vmax.f32 %v1182_v37, 0.0  ;;  %v698_v60 = vsub.f32 %v4773_v10, %v4876_v47 }
  0x33   : > { %v387_v61 = vrot.slane %v308_v23, %v4757_v6  ;;  %v4893_v62 = vmax.f32 %v1183_v38, 0.0  ;;  %v4895_v63 = vmax.f32 %v1184_v42, 0.0  ;;  %v699_v0 = vsub.f32 %v4773_v10, %v4884_v53 }
  0x34   : > { %647 = vmatprep.subr.bf16.mxu0 %v609_v48  ;;  %v322_v1 = vrot.slane %v300_v32, %v4783_v15  ;;  %v702_v20 = vand.u32 2147483647, %v698_v60  ;;  %v330_v32 = vcombine.high %v308_v23, %v308_v23  ;;  %v285_v38 = vcombine.high %v4825_v50, %v4827_v51 }
  0x35   : > { %v544_v21 = vmul.f32 %v387_v61, %v4835_v58  ;;  %v703_v24 = vand.u32 2147483647, %v699_v0  ;;  %v546_v30 = vmul.f32 %v387_v61, %v4844_v4 }
  0x36   : > { %v706_v31 = vsub.f32 1.0, %v702_v20  ;;  %v399_v33 = vrot.slane %v322_v1, %v4759_v7  ;;  %v395_v34 = vrot.slane %v322_v1, %v4757_v6  ;;  %v332_v37 = vcombine.high %v322_v1, %v322_v1 }
  0x37   : > { %v707_v35 = vsub.f32 1.0, %v703_v24  ;;  %v608_v36 = vpack.c.bf16 %v546_v30, %v544_v21  ;;  %v407_v60 = vrot.slane %v330_v32, %v4759_v7  ;;  %v403_v23 = vrot.slane %v330_v32, %v4757_v6 }
  0x38   : > { %v710_v39 = vmax.f32 %v706_v31, 0.0  ;;  %v549_v40 = vmul.f32 %v399_v33, %v4842_v2  ;;  %v551_v41 = vmul.f32 %v399_v33, %v4846_v3  ;;  %v548_v42 = vmul.f32 %v395_v34, %v4835_v58 }
  0x39   : > { %v711_v43 = vmax.f32 %v707_v35, 0.0  ;;  %648 = vmatpush1.bf16.msra.mxu0 %v608_v36  ;;  %v550_v48 = vmul.f32 %v395_v34, %v4844_v4  ;;  %v415_v0 = vrot.slane %v332_v37, %v4759_v7  ;;  %v411_v50 = vrot.slane %v332_v37, %v4757_v6 }
  0x3a   : > { %v611_v61 = vpack.c.bf16 %v551_v41, %v549_v40  ;;  %v4919_v51 = vrot.slane %v285_v38, %v4783_v15  ;;  %v553_v21 = vmul.f32 %v407_v60, %v4842_v2  ;;  %v555_v24 = vmul.f32 %v407_v60, %v4846_v3 }
  0x3b   : > { %v742_v1 = vcombine.low %v710_v39, %v711_v43  ;;  %v610_v20 = vpack.c.bf16 %v550_v48, %v548_v42  ;;  %v552_v30 = vmul.f32 %v403_v23, %v4835_v58  ;;  %v554_v31 = vmul.f32 %v403_v23, %v4844_v4 }
  0x3c   : > { %649 = vmatprep.subr.bf16.mxu0 %v611_v61  ;;  %v557_v33 = vmul.f32 %v415_v0, %v4842_v2  ;;  %v559_v34 = vmul.f32 %v415_v0, %v4846_v3  ;;  %v613_v35 = vpack.c.bf16 %v555_v24, %v553_v21  ;;  %v556_v36 = vmul.f32 %v411_v50, %v4835_v58 }
  0x3d   : > { %v750_v32 = vrot.slane %v742_v1, %v4783_v15  ;;  %650 = vmatpush1.bf16.msra.mxu0 %v610_v20  ;;  %v558_v37 = vmul.f32 %v411_v50, %v4844_v4  ;;  %v612_v38 = vpack.c.bf16 %v554_v31, %v552_v30  ;;  %v315_v41 = vrot.slane %v4919_v51, %v4783_v15 }
  0x3e   : > { %v615_v40 = vpack.c.bf16 %v559_v34, %v557_v33  ;;  %v743_v42 = vcombine.high %v710_v39, %v711_v43  ;;  %651 = vmatprep.subr.bf16.mxu0 %v613_v35  ;;  %v301_v61 = vcombine.high %v4919_v51, %v4919_v51 }
  0x3f   : > { %v758_v48 = vcombine.high %v750_v32, %v750_v32  ;;  %v766_v60 = vrot.slane %v750_v32, %v4783_v15  ;;  %v614_v23 = vpack.c.bf16 %v558_v37, %v556_v36  ;;  %v423_v0 = vrot.slane %v315_v41, %v4759_v7 }
  0x40   : > { %v4937_v1 = vrot.slane %v743_v42, %v4783_v15  ;;  %v419_v50 = vrot.slane %v315_v41, %v4757_v6  ;;  %v4940_v20 = vcombine.high %v315_v41, %v315_v41 }
  0x41   : > { %v849_v21 = vrot.slane %v766_v60, %v4759_v7  ;;  %v845_v39 = vrot.slane %v766_v60, %v4757_v6  ;;  %v780_v43 = vrot.slane %v758_v48, %v4783_v15  ;;  %v788_v24 = vcombine.high %v766_v60, %v766_v60  ;;  %652 = vmatpush1.bf16.msra.mxu0 %v612_v38 }
  0x42   : > { %653 = vmatprep.subr.bf16.mxu0 %v615_v40  ;;  %v561_v51 = vmul.f32 %v423_v0, %v4842_v2  ;;  %v563_v30 = vmul.f32 %v423_v0, %v4846_v3  ;;  %v773_v31 = vrot.slane %v4937_v1, %v4783_v15  ;;  %v560_v33 = vmul.f32 %v419_v50, %v4835_v58 }
  0x43   : > { %v1003_v34 = vmul.f32 %v849_v21, %v4855_v28  ;;  %v1005_v32 = vmul.f32 %v849_v21, %v4868_v44  ;;  %v1002_v35 = vmul.f32 %v845_v39, %v4851_v26  ;;  %v1004_v36 = vmul.f32 %v845_v39, %v4857_v29 }
  0x44   : > { %v857_v37 = vrot.slane %v780_v43, %v4759_v7  ;;  %v853_v38 = vrot.slane %v780_v43, %v4757_v6  ;;  %v865_v40 = vrot.slane %v788_v24, %v4759_v7  ;;  %v861_v41 = vrot.slane %v788_v24, %v4757_v6 }
  0x45   : > { %v1067_v42 = vpack.c.bf16 %v1005_v32, %v1003_v34  ;;  %v1066_v48 = vpack.c.bf16 %v1004_v36, %v1002_v35  ;;  %v790_v60 = vcombine.high %v780_v43, %v780_v43  ;;  %654 = vmatpush1.bf16.msra.mxu0 %v614_v23  ;;  %v617_v0 = vpack.c.bf16 %v563_v30, %v561_v51 }
  0x46   : > { %v1007_v27 = vmul.f32 %v857_v37, %v4855_v28  ;;  %v1009_v21 = vmul.f32 %v857_v37, %v4868_v44  ;;  %v1006_v22 = vmul.f32 %v853_v38, %v4851_v26  ;;  %v1008_v39 = vmul.f32 %v853_v38, %v4857_v29 }
  0x47   : > { %1098 = vmatprep.subr.bf16.mxu1 %v1067_v42  ;;  %v1011_v11 = vmul.f32 %v865_v40, %v4855_v28  ;;  %v1013_v5 = vmul.f32 %v865_v40, %v4868_v44  ;;  %v1010_v24 = vmul.f32 %v861_v41, %v4851_v26  ;;  %v1012_v34 = vmul.f32 %v861_v41, %v4857_v29 }
  0x48   : > { %1099 = vmatpush1.bf16.msra.mxu1 %v1066_v48  ;;  %v1069_v23 = vpack.c.bf16 %v1009_v21, %v1007_v27  ;;  %v1068_v43 = vpack.c.bf16 %v1008_v39, %v1006_v22  ;;  %v873_v51 = vrot.slane %v790_v60, %v4759_v7  ;;  %v869_v30 = vrot.slane %v790_v60, %v4757_v6 }
  0x49   : > { %v1071_v32 = vpack.c.bf16 %v1013_v5, %v1011_v11  ;;  %v1070_v35 = vpack.c.bf16 %v1012_v34, %v1010_v24  ;;  %655 = vmatprep.subr.bf16.mxu0 %v617_v0  ;;  %v881_v36 = vrot.slane %v773_v31, %v4759_v7  ;;  %v562_v37 = vmul.f32 %v419_v50, %v4844_v4 }
  0x4a   : > { %1100 = vmatprep.subr.bf16.mxu1 %v1069_v23  ;;  %v1015_v38 = vmul.f32 %v873_v51, %v4855_v28  ;;  %v1017_v40 = vmul.f32 %v873_v51, %v4868_v44  ;;  %v1014_v41 = vmul.f32 %v869_v30, %v4851_v26  ;;  %v1016_v22 = vmul.f32 %v869_v30, %v4857_v29 }
  0x4b   : > { %v1019_v27 = vmul.f32 %v881_v36, %v4855_v28  ;;  %v1021_v42 = vmul.f32 %v881_v36, %v4868_v44  ;;  %v616_v5 = vpack.c.bf16 %v562_v37, %v560_v33  ;;  %v877_v11 = vrot.slane %v773_v31, %v4757_v6 }
  0x4c   : > { %1101 = vmatpush1.bf16.msra.mxu1 %v1068_v43  ;;  %v1073_v48 = vpack.c.bf16 %v1017_v40, %v1015_v38  ;;  %v1072_v60 = vpack.c.bf16 %v1016_v22, %v1014_v41  ;;  %v329_v50 = vrot.slane %v301_v61, %v4783_v15  ;;  %v759_v0 = vcombine.high %v4937_v1, %v4937_v1 }
  0x4d   : > { %v6501_v21 = vsub.f32 1.0, %v4870_v45  ;;  %1102 = vmatprep.subr.bf16.mxu1 %v1071_v32  ;;  %v1075_v24 = vpack.c.bf16 %v1021_v42, %v1019_v27  ;;  %656 = vmatpush1.bf16.msra.mxu0 %v616_v5  ;;  %v1018_v34 = vmul.f32 %v877_v11, %v4851_v26  ;;  %v1020_v33 = vmul.f32 %v877_v11, %v4857_v29 }
  0x4e   : > { %v431_v23 = vrot.slane %v329_v50, %v4759_v7  ;;  %v787_v43 = vrot.slane %v759_v0, %v4783_v15  ;;  %v427_v61 = vrot.slane %v329_v50, %v4757_v6  ;;  %v439_v1 = vrot.slane %v4940_v20, %v4759_v7 }
  0x4f   : > { %v4982_v39 = vmax.f32 %v6501_v21, 0.0  ;;  %v1074_v51 = vpack.c.bf16 %v1020_v33, %v1018_v34  ;;  %v789_v45 = vcombine.high %v773_v31, %v773_v31  ;;  %v435_v30 = vrot.slane %v4940_v20, %v4757_v6 }
  0x50   : > { %v333_v32 = vcombine.high %v329_v50, %v329_v50  ;;  %1103 = vmatpush1.bf16.msra.mxu1 %v1070_v35  ;;  %v565_v36 = vmul.f32 %v431_v23, %v4842_v2  ;;  %v567_v37 = vmul.f32 %v431_v23, %v4846_v3  ;;  %v889_v38 = vrot.slane %v787_v43, %v4759_v7 }
  0x51   : > { %v564_v40 = vmul.f32 %v427_v61, %v4835_v58  ;;  %1104 = vmatprep.subr.bf16.mxu1 %v1073_v48  ;;  %v566_v41 = vmul.f32 %v427_v61, %v4844_v4  ;;  %v885_v22 = vrot.slane %v787_v43, %v4757_v6  ;;  %v569_v31 = vmul.f32 %v439_v1, %v4842_v2 }
  0x52   : > { %v571_v27 = vmul.f32 %v439_v1, %v4846_v3  ;;  %v619_v20 = vpack.c.bf16 %v567_v37, %v565_v36  ;;  %v1023_v35 = vmul.f32 %v889_v38, %v4855_v28  ;;  %v1025_v42 = vmul.f32 %v889_v38, %v4868_v44 }
  0x53   : > { %v897_v5 = vrot.slane %v789_v45, %v4759_v7  ;;  %v618_v11 = vpack.c.bf16 %v566_v41, %v564_v40  ;;  %v1022_v50 = vmul.f32 %v885_v22, %v4851_v26  ;;  %v1024_v48 = vmul.f32 %v885_v22, %v4857_v29 }
  0x54   : > { %v621_v0 = vpack.c.bf16 %v571_v27, %v569_v31  ;;  %v6502_v21 = vsub.f32 1.0, %v4872_v46  ;;  %1105 = vmatpush1.bf16.msra.mxu1 %v1072_v60  ;;  %657 = vmatprep.subr.bf16.mxu0 %v619_v20  ;;  %v1077_v33 = vpack.c.bf16 %v1025_v42, %v1023_v35  ;;  %v6503_v1 = vsub.f32 1.0, %v4878_v49 }
  0x55   : > { %v1027_v23 = vmul.f32 %v897_v5, %v4855_v28  ;;  %v1029_v61 = vmul.f32 %v897_v5, %v4868_v44  ;;  %1106 = vmatprep.subr.bf16.mxu1 %v1075_v24  ;;  %658 = vmatpush1.bf16.msra.mxu0 %v618_v11  ;;  %v1076_v37 = vpack.c.bf16 %v1024_v48, %v1022_v50 }
  0x56   : > { %v5008_v34 = vmax.f32 %v6502_v21, 0.0  ;;  %v5014_v36 = vmax.f32 %v6503_v1, 0.0  ;;  %v568_v38 = vmul.f32 %v435_v30, %v4835_v58  ;;  %v570_v46 = vmul.f32 %v435_v30, %v4844_v4  ;;  %659 = vmatprep.subr.bf16.mxu0 %v621_v0 }
  0x57   : > { %v1079_v40 = vpack.c.bf16 %v1029_v61, %v1027_v23  ;;  %v893_v60 = vrot.slane %v789_v45, %v4757_v6  ;;  %v447_v41 = vrot.slane %v333_v32, %v4759_v7  ;;  %v791_v22 = vcombine.high %v787_v43, %v787_v43 }
  0x58   : > { %v620_v31 = vpack.c.bf16 %v570_v46, %v568_v38  ;;  %v443_v27 = vrot.slane %v333_v32, %v4757_v6  ;;  %v242_v49 = vsub.f32 %v4775_v12, %v4791_v18  ;;  %v243_v24 = vsub.f32 %v4775_v12, %v4795_v19  ;;  %1107 = vmatpush1.bf16.msra.mxu1 %v1074_v51 }
  0x59   : > { %v1026_v20 = vmul.f32 %v893_v60, %v4851_v26  ;;  %v1028_v30 = vmul.f32 %v893_v60, %v4857_v29  ;;  %v573_v35 = vmul.f32 %v447_v41, %v4842_v2  ;;  %v575_v45 = vmul.f32 %v447_v41, %v4846_v3  ;;  %1108 = vmatprep.subr.bf16.mxu1 %v1077_v33 }
  0x5a   : > { %660 = vmatpush1.bf16.msra.mxu0 %v620_v31  ;;  %v905_v43 = vrot.slane %v791_v22, %v4759_v7  ;;  %v572_v32 = vmul.f32 %v443_v27, %v4835_v58  ;;  %v574_v18 = vmul.f32 %v443_v27, %v4844_v4  ;;  %v246_v42 = vand.u32 2147483647, %v242_v49 }
  0x5b   : > { %v1078_v5 = vpack.c.bf16 %v1028_v30, %v1026_v20  ;;  %v623_v19 = vpack.c.bf16 %v575_v45, %v573_v35  ;;  %v901_v51 = vrot.slane %v791_v22, %v4757_v6  ;;  %v247_v11 = vand.u32 2147483647, %v243_v24 }
  0x5c   : > { %v1031_v50 = vmul.f32 %v905_v43, %v4855_v28  ;;  %v1033_v48 = vmul.f32 %v905_v43, %v4868_v44  ;;  %v622_v0 = vpack.c.bf16 %v574_v18, %v572_v32  ;;  %v250_v21 = vsub.f32 1.0, %v246_v42  ;;  %1109 = vmatpush1.bf16.msra.mxu1 %v1076_v37 }
  0x5d   : > { %661 = vmatprep.subr.bf16.mxu0 %v623_v19  ;;  %v1030_v33 = vmul.f32 %v901_v51, %v4851_v26  ;;  %v1032_v23 = vmul.f32 %v901_v51, %v4857_v29  ;;  %v251_v61 = vsub.f32 1.0, %v247_v11  ;;  %v700_v1 = vsub.f32 %v4775_v12, %v4876_v47  ;;  %1110 = vmatprep.subr.bf16.mxu1 %v1079_v40 }
  0x5e   : > { %v1081_v38 = vpack.c.bf16 %v1033_v48, %v1031_v50  ;;  %662 = vmatpush1.bf16.msra.mxu0 %v622_v0  ;;  %v254_v46 = vmax.f32 %v250_v21, 0.0  ;;  %v701_v60 = vsub.f32 %v4775_v12, %v4884_v53  ;;  %v5043_v41 = vrot.slane %v4778_v13, %v4831_v56 }
  0x5f   : > { %v1080_v37 = vpack.c.bf16 %v1032_v23, %v1030_v33  ;;  %v255_v22 = vmax.f32 %v251_v61, 0.0  ;;  %v704_v31 = vand.u32 2147483647, %v700_v1  ;;  %v5047_v27 = vrot.slane %v4781_v14, %v4831_v56 }
  0x60   : > { %v705_v49 = vand.u32 2147483647, %v701_v60  ;;  %v1149_v47 = vsub.f32 %v4773_v10, %v5043_v41  ;;  %v5053_v40 = vrot.slane %v4778_v13, %v4833_v57  ;;  %v5057_v53 = vrot.slane %v4781_v14, %v4833_v57  ;;  %1111 = vmatpush1.bf16.msra.mxu1 %v1078_v5 }
  0x61   : > { %v334_v24 = vcombine.low %v254_v46, %v255_v22  ;;  %v708_v20 = vsub.f32 1.0, %v704_v31  ;;  %v335_v30 = vcombine.high %v254_v46, %v255_v22  ;;  %v1150_v35 = vsub.f32 %v4773_v10, %v5047_v27  ;;  %1112 = vmatprep.subr.bf16.mxu1 %v1081_v38 }
  0x62   : > { %v709_v45 = vsub.f32 1.0, %v705_v49  ;;  %v1153_v43 = vand.u32 2147483647, %v1149_v47  ;;  %v1600_v32 = vsub.f32 %v4773_v10, %v5053_v40  ;;  %v1601_v13 = vsub.f32 %v4773_v10, %v5057_v53 }
  0x63   : > { %v342_v18 = vrot.slane %v334_v24, %v4783_v15  ;;  %v712_v14 = vmax.f32 %v708_v20, 0.0  ;;  %v5067_v42 = vrot.slane %v335_v30, %v4783_v15  ;;  %v5069_v5 = vand.u32 2147483647, %v1150_v35 }
  0x64   : > { %v713_v19 = vmax.f32 %v709_v45, 0.0  ;;  %v1157_v51 = vsub.f32 1.0, %v1153_v43  ;;  %v5071_v11 = vand.u32 2147483647, %v1600_v32  ;;  %v5073_v50 = vand.u32 2147483647, %v1601_v13  ;;  %1113 = vmatpush1.bf16.msra.mxu1 %v1080_v37 }
  0x65   : > { %v358_v48 = vrot.slane %v342_v18, %v4783_v15  ;;  %v350_v0 = vcombine.high %v342_v18, %v342_v18  ;;  %v5078_v21 = vrot.slane %v5067_v42, %v4783_v15  ;;  %v1158_v1 = vsub.f32 1.0, %v5069_v5 }
  0x66   : > { %v792_v23 = vcombine.low %v712_v14, %v713_v19  ;;  %v793_v61 = vcombine.high %v712_v14, %v713_v19  ;;  %v5083_v38 = vmax.f32 %v1157_v51, 0.0 }
  0x67   : > { %v455_v46 = vrot.slane %v358_v48, %v4759_v7  ;;  %v451_v60 = vrot.slane %v358_v48, %v4757_v6  ;;  %v372_v37 = vrot.slane %v350_v0, %v4783_v15  ;;  %v380_v22 = vcombine.high %v358_v48, %v358_v48 }
  0x68   : > { %v800_v31 = vrot.slane %v792_v23, %v4783_v15  ;;  %v5091_v49 = vrot.slane %v5078_v21, %v4759_v7  ;;  %v5094_v47 = vrot.slane %v793_v61, %v4783_v15  ;;  %v5098_v24 = vrot.slane %v5078_v21, %v4757_v6 }
  0x69   : > { %v577_v20 = vmul.f32 %v455_v46, %v4842_v2  ;;  %v579_v30 = vmul.f32 %v455_v46, %v4846_v3  ;;  %v576_v35 = vmul.f32 %v451_v60, %v4835_v58  ;;  %v578_v45 = vmul.f32 %v451_v60, %v4844_v4 }
  0x6a   : > { %v816_v43 = vrot.slane %v800_v31, %v4783_v15  ;;  %v463_v32 = vrot.slane %v372_v37, %v4759_v7  ;;  %v808_v13 = vcombine.high %v800_v31, %v800_v31  ;;  %v459_v18 = vrot.slane %v372_v37, %v4757_v6 }
  0x6b   : > { %v625_v14 = vpack.c.bf16 %v579_v30, %v577_v20  ;;  %v624_v5 = vpack.c.bf16 %v578_v45, %v576_v35  ;;  %v471_v19 = vrot.slane %v380_v22, %v4759_v7  ;;  %v467_v51 = vrot.slane %v380_v22, %v4757_v6 }
  0x6c   : > { %v913_v48 = vrot.slane %v816_v43, %v4759_v7  ;;  %v909_v0 = vrot.slane %v816_v43, %v4757_v6  ;;  %v581_v23 = vmul.f32 %v463_v32, %v4842_v2  ;;  %v583_v61 = vmul.f32 %v463_v32, %v4846_v3 }
  0x6d   : > { %663 = vmatprep.subr.bf16.mxu0 %v625_v14  ;;  %v830_v46 = vrot.slane %v808_v13, %v4783_v15  ;;  %v580_v60 = vmul.f32 %v459_v18, %v4835_v58  ;;  %v582_v31 = vmul.f32 %v459_v18, %v4844_v4  ;;  %v585_v20 = vmul.f32 %v471_v19, %v4842_v2 }
  0x6e   : > { %v1035_v30 = vmul.f32 %v913_v48, %v4855_v28  ;;  %v1037_v22 = vmul.f32 %v913_v48, %v4868_v44  ;;  %664 = vmatpush1.bf16.msra.mxu0 %v624_v5  ;;  %v1034_v35 = vmul.f32 %v909_v0, %v4851_v26  ;;  %v1036_v45 = vmul.f32 %v909_v0, %v4857_v29 }
  0x6f   : > { %v627_v33 = vpack.c.bf16 %v583_v61, %v581_v23  ;;  %v921_v32 = vrot.slane %v830_v46, %v4759_v7  ;;  %v626_v14 = vpack.c.bf16 %v582_v31, %v580_v60  ;;  %v917_v13 = vrot.slane %v830_v46, %v4757_v6 }
  0x70   : > { %v1083_v57 = vpack.c.bf16 %v1037_v22, %v1035_v30  ;;  %v1082_v56 = vpack.c.bf16 %v1036_v45, %v1034_v35  ;;  %v587_v18 = vmul.f32 %v471_v19, %v4846_v3  ;;  %v838_v25 = vcombine.high %v816_v43, %v816_v43 }
  0x71   : > { %665 = vmatprep.subr.bf16.mxu0 %v627_v33  ;;  %v1039_v16 = vmul.f32 %v921_v32, %v4855_v28  ;;  %v1041_v5 = vmul.f32 %v921_v32, %v4868_v44  ;;  %v1038_v48 = vmul.f32 %v917_v13, %v4851_v26  ;;  %v1040_v0 = vmul.f32 %v917_v13, %v4857_v29 }
  0x72   : > { %1114 = vmatprep.subr.bf16.mxu1 %v1083_v57  ;;  %666 = vmatpush1.bf16.msra.mxu0 %v626_v14  ;;  %v629_v23 = vpack.c.bf16 %v587_v18, %v585_v20  ;;  %v929_v61 = vrot.slane %v838_v25, %v4759_v7  ;;  %v584_v60 = vmul.f32 %v467_v51, %v4835_v58  ;;  %v5130_v31 = vmax.f32 %v1158_v1, 0.0 }
  0x73   : > { %1115 = vmatpush1.bf16.msra.mxu1 %v1082_v56  ;;  %v1085_v43 = vpack.c.bf16 %v1041_v5, %v1039_v16  ;;  %v1084_v33 = vpack.c.bf16 %v1040_v0, %v1038_v48  ;;  %v586_v19 = vmul.f32 %v467_v51, %v4844_v4  ;;  %v925_v30 = vrot.slane %v838_v25, %v4757_v6 }
  0x74   : > { %667 = vmatprep.subr.bf16.mxu0 %v629_v23  ;;  %v1043_v22 = vmul.f32 %v929_v61, %v4855_v28  ;;  %v1045_v57 = vmul.f32 %v929_v61, %v4868_v44  ;;  %v382_v35 = vcombine.high %v372_v37, %v372_v37  ;;  %v840_v20 = vcombine.high %v830_v46, %v830_v46 }
  0x75   : > { %1116 = vmatprep.subr.bf16.mxu1 %v1085_v43  ;;  %v628_v45 = vpack.c.bf16 %v586_v19, %v584_v60  ;;  %v1042_v32 = vmul.f32 %v925_v30, %v4851_v26  ;;  %v1044_v1 = vmul.f32 %v925_v30, %v4857_v29  ;;  %v593_v16 = vmul.f32 %v5091_v49, %v4842_v2 }
  0x76   : > { %v1087_v56 = vpack.c.bf16 %v1045_v57, %v1043_v22  ;;  %v479_v51 = vrot.slane %v382_v35, %v4759_v7  ;;  %v937_v25 = vrot.slane %v840_v20, %v4759_v7  ;;  %v475_v14 = vrot.slane %v382_v35, %v4757_v6 }
  0x77   : > { %1117 = vmatpush1.bf16.msra.mxu1 %v1084_v33  ;;  %668 = vmatpush1.bf16.msra.mxu0 %v628_v45  ;;  %v1086_v37 = vpack.c.bf16 %v1044_v1, %v1042_v32  ;;  %v933_v46 = vrot.slane %v840_v20, %v4757_v6  ;;  %v595_v13 = vmul.f32 %v5091_v49, %v4846_v3  ;;  %v1608_v18 = vsub.f32 1.0, %v5071_v11 }
  0x78   : > { %1118 = vmatprep.subr.bf16.mxu1 %v1087_v56  ;;  %v589_v5 = vmul.f32 %v479_v51, %v4842_v2  ;;  %v591_v48 = vmul.f32 %v479_v51, %v4846_v3  ;;  %v1047_v0 = vmul.f32 %v937_v25, %v4855_v28  ;;  %v1049_v23 = vmul.f32 %v937_v25, %v4868_v44 }
  0x79   : > { %v588_v61 = vmul.f32 %v475_v14, %v4835_v58  ;;  %v590_v60 = vmul.f32 %v475_v14, %v4844_v4  ;;  %v1046_v43 = vmul.f32 %v933_v46, %v4851_v26  ;;  %v1048_v33 = vmul.f32 %v933_v46, %v4857_v29 }
  0x7a   : > { %v631_v49 = vpack.c.bf16 %v591_v48, %v589_v5  ;;  %v1089_v19 = vpack.c.bf16 %v1049_v23, %v1047_v0  ;;  %v633_v30 = vpack.c.bf16 %v595_v13, %v593_v16  ;;  %v823_v22 = vrot.slane %v5094_v47, %v4783_v15 }
  0x7b   : > { %1119 = vmatpush1.bf16.msra.mxu1 %v1086_v37  ;;  %v630_v57 = vpack.c.bf16 %v590_v60, %v588_v61  ;;  %v1088_v35 = vpack.c.bf16 %v1048_v33, %v1046_v43  ;;  %v592_v20 = vmul.f32 %v5098_v24, %v4835_v58  ;;  %v594_v45 = vmul.f32 %v5098_v24, %v4844_v4 }
  0x7c   : > { %669 = vmatprep.subr.bf16.mxu0 %v631_v49  ;;  %1120 = vmatprep.subr.bf16.mxu1 %v1089_v19  ;;  %v945_v32 = vrot.slane %v823_v22, %v4759_v7  ;;  %v941_v1 = vrot.slane %v823_v22, %v4757_v6  ;;  %v6504_v16 = vcombine.high %v5067_v42, %v5067_v42  ;;  %v1609_v51 = vsub.f32 1.0, %v5073_v50 }
  0x7d   : > { %670 = vmatpush1.bf16.msra.mxu0 %v630_v57  ;;  %v632_v25 = vpack.c.bf16 %v594_v45, %v592_v20  ;;  %v809_v14 = vcombine.high %v5094_v47, %v5094_v47  ;;  %v381_v24 = vcombine.high %v5078_v21, %v5078_v21  ;;  %v839_v37 = vcombine.high %v823_v22, %v823_v22 }
  0x7e   : > { %v379_v56 = vrot.slane %v6504_v16, %v4783_v15  ;;  %671 = vmatprep.subr.bf16.mxu0 %v633_v30  ;;  %v1051_v46 = vmul.f32 %v945_v32, %v4855_v28  ;;  %v1053_v13 = vmul.f32 %v945_v32, %v4868_v44  ;;  %v1050_v5 = vmul.f32 %v941_v1, %v4851_v26 }
  0x7f   : > { %v1052_v42 = vmul.f32 %v941_v1, %v4857_v29  ;;  %1121 = vmatpush1.bf16.msra.mxu1 %v1088_v35  ;;  %v837_v0 = vrot.slane %v809_v14, %v4783_v15  ;;  %v503_v23 = vrot.slane %v381_v24, %v4759_v7  ;;  %v961_v60 = vrot.slane %v839_v37, %v4759_v7 }
  0x80   : > { %v495_v48 = vrot.slane %v379_v56, %v4759_v7  ;;  %v491_v47 = vrot.slane %v379_v56, %v4757_v6  ;;  %v1091_v21 = vpack.c.bf16 %v1053_v13, %v1051_v46  ;;  %v499_v43 = vrot.slane %v381_v24, %v4757_v6 }
  0x81   : > { %v1090_v61 = vpack.c.bf16 %v1052_v42, %v1050_v5  ;;  %672 = vmatpush1.bf16.msra.mxu0 %v632_v25  ;;  %v953_v19 = vrot.slane %v837_v0, %v4759_v7  ;;  %v949_v57 = vrot.slane %v837_v0, %v4757_v6  ;;  %v601_v35 = vmul.f32 %v503_v23, %v4842_v2 }
  0x82   : > { %v597_v33 = vmul.f32 %v495_v48, %v4842_v2  ;;  %v599_v49 = vmul.f32 %v495_v48, %v4846_v3  ;;  %v596_v30 = vmul.f32 %v491_v47, %v4835_v58  ;;  %1122 = vmatprep.subr.bf16.mxu1 %v1091_v21  ;;  %v598_v22 = vmul.f32 %v491_v47, %v4844_v4 }
  0x83   : > { %v603_v20 = vmul.f32 %v503_v23, %v4846_v3  ;;  %1123 = vmatpush1.bf16.msra.mxu1 %v1090_v61  ;;  %v1055_v32 = vmul.f32 %v953_v19, %v4855_v28  ;;  %v1057_v1 = vmul.f32 %v953_v19, %v4868_v44  ;;  %v1059_v16 = vmul.f32 %v961_v60, %v4855_v28 }
  0x84   : > { %v635_v45 = vpack.c.bf16 %v599_v49, %v597_v33  ;;  %v634_v25 = vpack.c.bf16 %v598_v22, %v596_v30  ;;  %v1054_v14 = vmul.f32 %v949_v57, %v4851_v26  ;;  %v1056_v24 = vmul.f32 %v949_v57, %v4857_v29 }
  0x85   : > { %v637_v46 = vpack.c.bf16 %v603_v20, %v601_v35  ;;  %v1093_v13 = vpack.c.bf16 %v1057_v1, %v1055_v32  ;;  %v1061_v5 = vmul.f32 %v961_v60, %v4868_v44  ;;  %v600_v42 = vmul.f32 %v499_v43, %v4835_v58 }
  0x86   : > { %673 = vmatprep.subr.bf16.mxu0 %v635_v45  ;;  %v602_v48 = vmul.f32 %v499_v43, %v4844_v4  ;;  %v1092_v47 = vpack.c.bf16 %v1056_v24, %v1054_v14  ;;  %v957_v23 = vrot.slane %v839_v37, %v4757_v6  ;;  %v383_v21 = vcombine.high %v379_v56, %v379_v56 }
  0x87   : > { %674 = vmatpush1.bf16.msra.mxu0 %v634_v25  ;;  %v841_v61 = vcombine.high %v837_v0, %v837_v0  ;;  %1124 = vmatprep.subr.bf16.mxu1 %v1093_v13  ;;  %v1095_v33 = vpack.c.bf16 %v1061_v5, %v1059_v16  ;;  %v1193_v19 = vcombine.low %v5083_v38, %v5130_v31  ;;  %v5203_v60 = vmax.f32 %v1608_v18, 0.0 }
  0x88   : > { %675 = vmatprep.subr.bf16.mxu0 %v637_v46  ;;  %v636_v49 = vpack.c.bf16 %v602_v48, %v600_v42  ;;  %1125 = vmatpush1.bf16.msra.mxu1 %v1092_v47  ;;  %v1058_v43 = vmul.f32 %v957_v23, %v4851_v26  ;;  %v1060_v30 = vmul.f32 %v957_v23, %v4857_v29  ;;  %v5214_v11 = vmax.f32 %v1609_v51, 0.0 }
  0x89   : > { %v511_v37 = vrot.slane %v383_v21, %v4759_v7  ;;  %v969_v56 = vrot.slane %v841_v61, %v4759_v7  ;;  %1126 = vmatprep.subr.bf16.mxu1 %v1095_v33  ;;  %v507_v0 = vrot.slane %v383_v21, %v4757_v6  ;;  %v965_v22 = vrot.slane %v841_v61, %v4757_v6 }
  0x8a   : > { %v1201_v57 = vrot.slane %v1193_v19, %v4783_v15  ;;  %v1094_v18 = vpack.c.bf16 %v1060_v30, %v1058_v43 }
  0x8b   : > { %676 = vmatpush1.bf16.msra.mxu0 %v636_v49  ;;  %v605_v35 = vmul.f32 %v511_v37, %v4842_v2  ;;  %v607_v20 = vmul.f32 %v511_v37, %v4846_v3  ;;  %v1063_v45 = vmul.f32 %v969_v56, %v4855_v28  ;;  %v1065_v32 = vmul.f32 %v969_v56, %v4868_v44 }
  0x8c   : > { %v604_v1 = vmul.f32 %v507_v0, %v4835_v58  ;;  %v606_v16 = vmul.f32 %v507_v0, %v4844_v4  ;;  %v1062_v25 = vmul.f32 %v965_v22, %v4851_v26  ;;  %1127 = vmatpush1.bf16.msra.mxu1 %v1094_v18  ;;  %v1064_v51 = vmul.f32 %v965_v22, %v4857_v29 }
  0x8d   : > { %v639_v50 = vpack.c.bf16 %v607_v20, %v605_v35  ;;  %v1217_v14 = vrot.slane %v1201_v57, %v4783_v15  ;;  %v1644_v2 = vcombine.low %v5203_v60, %v5214_v11  ;;  %v1097_v3 = vpack.c.bf16 %v1065_v32, %v1063_v45 }
  0x8e   : > { %v638_v24 = vpack.c.bf16 %v606_v16, %v604_v1  ;;  %v1209_v28 = vcombine.high %v1201_v57, %v1201_v57  ;;  %v1194_v44 = vcombine.high %v5083_v38, %v5130_v31  ;;  %v1096_v58 = vpack.c.bf16 %v1064_v51, %v1062_v25 }
  0x8f   : > { %677 = vmatprep.subr.bf16.mxu0 %v639_v50  ;;  %v1300_v4 = vrot.slane %v1217_v14, %v4759_v7  ;;  %v1652_v26 = vrot.slane %v1644_v2, %v4783_v15  ;;  %v1296_v46 = vrot.slane %v1217_v14, %v4757_v6  ;;  %v6505_v29 = vsub.f32 1.0, %v4880_v52  ;;  %1128 = vmatprep.subr.bf16.mxu1 %v1097_v3 }
  0x90   : > { %678 = vmatpush1.bf16.msra.mxu0 %v638_v24  ;;  %v1231_v5 = vrot.slane %v1209_v28, %v4783_v15  ;;  %v1239_v42 = vcombine.high %v1217_v14, %v1217_v14  ;;  %v5238_v48 = vrot.slane %v1194_v44, %v4783_v15  ;;  %1129 = vmatpush1.bf16.msra.mxu1 %v1096_v58 }
  0x91   : > { %v5234_v13 = vmax.f32 %v6505_v29, 0.0  ;;  %v1454_v38 = vmul.f32 %v1300_v4, %v4888_v59  ;;  %v1456_v31 = vmul.f32 %v1300_v4, %v4895_v63  ;;  %v1668_v47 = vrot.slane %v1652_v26, %v4783_v15 }
  0x92   : > { %v1453_v23 = vmul.f32 %v1296_v46, %v4886_v54  ;;  %v1455_v52 = vmul.f32 %v1296_v46, %v4893_v62  ;;  %v1308_v21 = vrot.slane %v1231_v5, %v4759_v7  ;;  %v1660_v61 = vcombine.high %v1652_v26, %v1652_v26 }
  0x93   : > { %v1304_v33 = vrot.slane %v1231_v5, %v4757_v6  ;;  %680 = vmatmul.mubr.bf16.vlgmr.msra.gmra.mrb[0].mxu0 %v4829_v55  ;;  %v1518_v49 = vpack.c.bf16 %v1456_v31, %v1454_v38  ;;  %v1751_v19 = vrot.slane %v1668_v47, %v4759_v7  ;;  %v1747_v43 = vrot.slane %v1668_v47, %v4757_v6 }
  0x94   : > { %v1316_v30 = vrot.slane %v1239_v42, %v4759_v7  ;;  %1131 = vmatmul.mubr.bf16.vlgmr.msra.gmra.mrb[0].mxu1 %v4829_v55  ;;  %v1517_v37 = vpack.c.bf16 %v1455_v52, %v1453_v23  ;;  %v1458_v56 = vmul.f32 %v1308_v21, %v4888_v59  ;;  %v1460_v0 = vmul.f32 %v1308_v21, %v4895_v63 }
  0x95   : > { %v1682_v22 = vrot.slane %v1660_v61, %v4783_v15  ;;  %1549 = vmatprep.subr.bf16.mxu0 %v1518_v49  ;;  %v1905_v57 = vmul.f32 %v1751_v19, %v5008_v34  ;;  %v1907_v18 = vmul.f32 %v1751_v19, %v5234_v13  ;;  %v1904_v35 = vmul.f32 %v1747_v43, %v4982_v39 }
  0x96   : > { %v1906_v20 = vmul.f32 %v1747_v43, %v5014_v36  ;;  %1550 = vmatpush1.bf16.msra.mxu0 %v1517_v37  ;;  %v1520_v45 = vpack.c.bf16 %v1460_v0, %v1458_v56  ;;  %v1457_v1 = vmul.f32 %v1304_v33, %v4886_v54  ;;  %v1459_v16 = vmul.f32 %v1304_v33, %v4893_v62 }
  0x97   : > { %v1759_v32 = vrot.slane %v1682_v22, %v4759_v7  ;;  %v1969_v25 = vpack.c.bf16 %v1907_v18, %v1905_v57  ;;  %v1755_v51 = vrot.slane %v1682_v22, %v4757_v6  ;;  %v1462_v14 = vmul.f32 %v1316_v30, %v4888_v59  ;;  %1581 = vmatprep.mubr.bf16.mxu0 %v4787_v17 }
  0x98   : > { %v1968_v50 = vpack.c.bf16 %v1906_v20, %v1904_v35  ;;  %1551 = vmatprep.subr.bf16.mxu0 %v1520_v45  ;;  %v1519_v24 = vpack.c.bf16 %v1459_v16, %v1457_v1  ;;  %v1464_v28 = vmul.f32 %v1316_v30, %v4895_v63  ;;  %v1690_v4 = vcombine.high %v1668_v47, %v1668_v47 }
  0x99   : > { %v1909_v2 = vmul.f32 %v1759_v32, %v5008_v34  ;;  %v1911_v3 = vmul.f32 %v1759_v32, %v5234_v13  ;;  %2000 = vmatprep.subr.bf16.mxu1 %v1969_v25  ;;  %v1908_v44 = vmul.f32 %v1755_v51, %v4982_v39  ;;  %v1910_v58 = vmul.f32 %v1755_v51, %v5014_v36 }
  0x9a   : > { %v1312_v26 = vrot.slane %v1239_v42, %v4757_v6  ;;  %2001 = vmatpush1.bf16.msra.mxu1 %v1968_v50  ;;  %1552 = vmatpush1.bf16.msra.mxu0 %v1519_v24  ;;  %v1522_v29 = vpack.c.bf16 %v1464_v28, %v1462_v14  ;;  %v1241_v38 = vcombine.high %v1231_v5, %v1231_v5 }
  0x9b   : > { %v1971_v46 = vpack.c.bf16 %v1911_v3, %v1909_v2  ;;  %v1970_v31 = vpack.c.bf16 %v1910_v58, %v1908_v44  ;;  %v1767_v23 = vrot.slane %v1690_v4, %v4759_v7  ;;  %2032 = vmatprep.mubr.bf16.mxu1 %v4787_v17  ;;  %v1763_v47 = vrot.slane %v1690_v4, %v4757_v6 }
  0x9c   : > { %v1461_v52 = vmul.f32 %v1312_v26, %v4886_v54  ;;  %v1463_v21 = vmul.f32 %v1312_v26, %v4893_v62  ;;  %1553 = vmatprep.subr.bf16.mxu0 %v1522_v29  ;;  %v1324_v42 = vrot.slane %v1241_v38, %v4759_v7  ;;  %v1692_v61 = vcombine.high %v1682_v22, %v1682_v22 }
  0x9d   : > { %2002 = vmatprep.subr.bf16.mxu1 %v1971_v46  ;;  %v1913_v33 = vmul.f32 %v1767_v23, %v5008_v34  ;;  %v1915_v5 = vmul.f32 %v1767_v23, %v5234_v13  ;;  %v1320_v19 = vrot.slane %v1241_v38, %v4757_v6  ;;  %v1912_v43 = vmul.f32 %v1763_v47, %v4982_v39 }
  0x9e   : > { %v1521_v49 = vpack.c.bf16 %v1463_v21, %v1461_v52  ;;  %2003 = vmatpush1.bf16.msra.mxu1 %v1970_v31  ;;  %v1914_v30 = vmul.f32 %v1763_v47, %v5014_v36  ;;  %v1466_v37 = vmul.f32 %v1324_v42, %v4888_v59  ;;  %v1468_v56 = vmul.f32 %v1324_v42, %v4895_v63 }
  0x9f   : > { %v1973_v0 = vpack.c.bf16 %v1915_v5, %v1913_v33  ;;  %v1775_v22 = vrot.slane %v1692_v61, %v4759_v7  ;;  %v1465_v57 = vmul.f32 %v1320_v19, %v4886_v54  ;;  %v1467_v18 = vmul.f32 %v1320_v19, %v4893_v62 }
  0xa0   : > { %1554 = vmatpush1.bf16.msra.mxu0 %v1521_v49  ;;  %v1972_v35 = vpack.c.bf16 %v1914_v30, %v1912_v43  ;;  %v1524_v20 = vpack.c.bf16 %v1468_v56, %v1466_v37  ;;  %v1771_v45 = vrot.slane %v1692_v61, %v4757_v6  ;;  %v1224_v32 = vrot.slane %v5238_v48, %v4783_v15 }
  0xa1   : > { %2004 = vmatprep.subr.bf16.mxu1 %v1973_v0  ;;  %v1917_v1 = vmul.f32 %v1775_v22, %v5008_v34  ;;  %v1919_v16 = vmul.f32 %v1775_v22, %v5234_v13  ;;  %v1523_v25 = vpack.c.bf16 %v1467_v18, %v1465_v57  ;;  %v1645_v50 = vcombine.high %v5203_v60, %v5214_v11 }
  0xa2   : > { %2005 = vmatpush1.bf16.msra.mxu1 %v1972_v35  ;;  %1555 = vmatprep.subr.bf16.mxu0 %v1524_v20  ;;  %v1916_v51 = vmul.f32 %v1771_v45, %v4982_v39  ;;  %v1918_v14 = vmul.f32 %v1771_v45, %v5014_v36  ;;  %v1332_v2 = vrot.slane %v1224_v32, %v4759_v7 }
  0xa3   : > { %v1975_v3 = vpack.c.bf16 %v1919_v16, %v1917_v1  ;;  %v1659_v24 = vrot.slane %v1645_v50, %v4783_v15  ;;  %v1328_v28 = vrot.slane %v1224_v32, %v4757_v6  ;;  %v1210_v44 = vcombine.high %v5238_v48, %v5238_v48 }
  0xa4   : > { %1556 = vmatpush1.bf16.msra.mxu0 %v1523_v25  ;;  %v1974_v58 = vpack.c.bf16 %v1918_v14, %v1916_v51  ;;  %v1470_v60 = vmul.f32 %v1332_v2, %v4888_v59  ;;  %v1472_v11 = vmul.f32 %v1332_v2, %v4895_v63  ;;  %v1240_v4 = vcombine.high %v1224_v32, %v1224_v32 }
  0xa5   : > { %2006 = vmatprep.subr.bf16.mxu1 %v1975_v3  ;;  %v1675_v26 = vrot.slane %v1659_v24, %v4783_v15  ;;  %v1469_v46 = vmul.f32 %v1328_v28, %v4886_v54  ;;  %v1471_v29 = vmul.f32 %v1328_v28, %v4893_v62  ;;  %v1238_v38 = vrot.slane %v1210_v44, %v4783_v15 }
  0xa6   : > { %2007 = vmatpush1.bf16.msra.mxu1 %v1974_v58  ;;  %v1526_v31 = vpack.c.bf16 %v1472_v11, %v1470_v60  ;;  %v1661_v23 = vcombine.high %v1659_v24, %v1659_v24  ;;  %v1348_v48 = vrot.slane %v1240_v4, %v4759_v7  ;;  %v1344_v52 = vrot.slane %v1240_v4, %v4757_v6 }
  0xa7   : > { %v1783_v21 = vrot.slane %v1675_v26, %v4759_v7  ;;  %v1525_v47 = vpack.c.bf16 %v1471_v29, %v1469_v46  ;;  %v1779_v42 = vrot.slane %v1675_v26, %v4757_v6  ;;  %v1340_v61 = vrot.slane %v1238_v38, %v4759_v7 }
  0xa8   : > { %1557 = vmatprep.subr.bf16.mxu0 %v1526_v31  ;;  %v1689_v33 = vrot.slane %v1661_v23, %v4783_v15  ;;  %v1336_v5 = vrot.slane %v1238_v38, %v4757_v6  ;;  %v1478_v49 = vmul.f32 %v1348_v48, %v4888_v59  ;;  %v1480_v19 = vmul.f32 %v1348_v48, %v4895_v63 }
  0xa9   : > { %v1921_v43 = vmul.f32 %v1783_v21, %v5008_v34  ;;  %v1923_v30 = vmul.f32 %v1783_v21, %v5234_v13  ;;  %1558 = vmatpush1.bf16.msra.mxu0 %v1525_v47  ;;  %v1920_v37 = vmul.f32 %v1779_v42, %v4982_v39  ;;  %v1922_v56 = vmul.f32 %v1779_v42, %v5014_v36 }
  0xaa   : > { %v1474_v0 = vmul.f32 %v1340_v61, %v4888_v59  ;;  %v1476_v22 = vmul.f32 %v1340_v61, %v4895_v63  ;;  %v1791_v57 = vrot.slane %v1689_v33, %v4759_v7  ;;  %v1473_v18 = vmul.f32 %v1336_v5, %v4886_v54 }
  0xab   : > { %v1977_v35 = vpack.c.bf16 %v1923_v30, %v1921_v43  ;;  %v1976_v20 = vpack.c.bf16 %v1922_v56, %v1920_v37  ;;  %v1475_v45 = vmul.f32 %v1336_v5, %v4893_v62  ;;  %v1787_v32 = vrot.slane %v1689_v33, %v4757_v6 }
  0xac   : > { %v1528_v1 = vpack.c.bf16 %v1476_v22, %v1474_v0  ;;  %v1925_v16 = vmul.f32 %v1791_v57, %v5008_v34  ;;  %v1927_v25 = vmul.f32 %v1791_v57, %v5234_v13  ;;  %v1530_v50 = vpack.c.bf16 %v1480_v19, %v1478_v49  ;;  %v5355_v57 = vld [vmem:[%s4771_s7 + $0x10] sm:$0xff] }
  0xad   : > { %2008 = vmatprep.subr.bf16.mxu1 %v1977_v35  ;;  %v1527_v51 = vpack.c.bf16 %v1475_v45, %v1473_v18  ;;  %v1924_v14 = vmul.f32 %v1787_v32, %v4982_v39  ;;  %v1926_v2 = vmul.f32 %v1787_v32, %v5014_v36  ;;  %v1691_v3 = vcombine.high %v1675_v26, %v1675_v26 }
  0xae   : > { %2009 = vmatpush1.bf16.msra.mxu1 %v1976_v20  ;;  %1559 = vmatprep.subr.bf16.mxu0 %v1528_v1  ;;  %v1979_v24 = vpack.c.bf16 %v1927_v25, %v1925_v16  ;;  %v1477_v28 = vmul.f32 %v1344_v52, %v4886_v54  ;;  %v1479_v44 = vmul.f32 %v1344_v52, %v4893_v62 }
  0xaf   : > { %1560 = vmatpush1.bf16.msra.mxu0 %v1527_v51  ;;  %v1978_v58 = vpack.c.bf16 %v1926_v2, %v1924_v14  ;;  %v1799_v60 = vrot.slane %v1691_v3, %v4759_v7  ;;  %v1795_v11 = vrot.slane %v1691_v3, %v4757_v6  ;;  %v1242_v4 = vcombine.high %v1238_v38, %v1238_v38 }
  0xb0   : > { %2010 = vmatprep.subr.bf16.mxu1 %v1979_v24  ;;  %1561 = vmatprep.subr.bf16.mxu0 %v1530_v50  ;;  %v1529_v46 = vpack.c.bf16 %v1479_v44, %v1477_v28  ;;  %v1693_v29 = vcombine.high %v1689_v33, %v1689_v33  ;;  %v1151_v26 = vsub.f32 %v4775_v12, %v5043_v41 }
  0xb1   : > { %v1929_v31 = vmul.f32 %v1799_v60, %v5008_v34  ;;  %v1931_v23 = vmul.f32 %v1799_v60, %v5234_v13  ;;  %v1928_v48 = vmul.f32 %v1795_v11, %v4982_v39  ;;  %v1930_v52 = vmul.f32 %v1795_v11, %v5014_v36 }
  0xb2   : > { %2011 = vmatpush1.bf16.msra.mxu1 %v1978_v58  ;;  %v1356_v21 = vrot.slane %v1242_v4, %v4759_v7  ;;  %v1807_v38 = vrot.slane %v1693_v29, %v4759_v7  ;;  %v1352_v47 = vrot.slane %v1242_v4, %v4757_v6  ;;  %v1803_v42 = vrot.slane %v1693_v29, %v4757_v6 }
  0xb3   : > { %v1981_v41 = vpack.c.bf16 %v1931_v23, %v1929_v31  ;;  %1562 = vmatpush1.bf16.msra.mxu0 %v1529_v46  ;;  %v1980_v61 = vpack.c.bf16 %v1930_v52, %v1928_v48  ;;  %v1152_v33 = vsub.f32 %v4775_v12, %v5047_v27  ;;  %v1155_v5 = vand.u32 2147483647, %v1151_v26  ;;  %v5358_v27 = vld [vmem:[%s4771_s7 + $0x18] sm:$0xff] }
  0xb4   : > { %v1482_v49 = vmul.f32 %v1356_v21, %v4888_v59  ;;  %v1484_v19 = vmul.f32 %v1356_v21, %v4895_v63  ;;  %v1933_v43 = vmul.f32 %v1807_v38, %v5008_v34  ;;  %v1935_v30 = vmul.f32 %v1807_v38, %v5234_v13 }
  0xb5   : > { %2012 = vmatprep.subr.bf16.mxu1 %v1981_v41  ;;  %v1481_v37 = vmul.f32 %v1352_v47, %v4886_v54  ;;  %v1483_v56 = vmul.f32 %v1352_v47, %v4893_v62  ;;  %v1932_v0 = vmul.f32 %v1803_v42, %v4982_v39  ;;  %v1934_v22 = vmul.f32 %v1803_v42, %v5014_v36 }
  0xb6   : > { %2013 = vmatpush1.bf16.msra.mxu1 %v1980_v61  ;;  %v1532_v18 = vpack.c.bf16 %v1484_v19, %v1482_v49  ;;  %v1983_v35 = vpack.c.bf16 %v1935_v30, %v1933_v43  ;;  %v1156_v20 = vand.u32 2147483647, %v1152_v33  ;;  %v1159_v45 = vsub.f32 1.0, %v1155_v5 }
  0xb7   : > { %v1531_v32 = vpack.c.bf16 %v1483_v56, %v1481_v37  ;;  %v1982_v1 = vpack.c.bf16 %v1934_v22, %v1932_v0  ;;  %v1602_v16 = vsub.f32 %v4775_v12, %v5053_v40  ;;  %v1603_v25 = vsub.f32 %v4775_v12, %v5057_v53 }
  0xb8   : > { %1563 = vmatprep.subr.bf16.mxu0 %v1532_v18  ;;  %2014 = vmatprep.subr.bf16.mxu1 %v1983_v35  ;;  %v1160_v50 = vsub.f32 1.0, %v1156_v20  ;;  %v1163_v51 = vmax.f32 %v1159_v45, 0.0  ;;  %v5366_v14 = vrot.slane %v5355_v57, %v4757_v6  ;;  %v5370_v2 = vrot.slane %v5358_v27, %v4757_v6 }
  0xb9   : > { %1564 = vmatpush1.bf16.msra.mxu0 %v1531_v32  ;;  %v1606_v3 = vand.u32 2147483647, %v1602_v16  ;;  %v1607_v24 = vand.u32 2147483647, %v1603_v25  ;;  %v5374_v40 = vrot.slane %v5355_v57, %v4759_v7  ;;  %v5378_v53 = vrot.slane %v5358_v27, %v4759_v7 }
  0xba   : > { %2015 = vmatpush1.bf16.msra.mxu1 %v1982_v1  ;;  %v1164_v28 = vmax.f32 %v1160_v50, 0.0  ;;  %v2051_v44 = vsub.f32 %v4773_v10, %v5366_v14  ;;  %v2052_v58 = vsub.f32 %v4773_v10, %v5370_v2  ;;  %v5394_v21 = vrot.slane %v5355_v57, %v4761_v8 }
  0xbb   : > { %v1610_v60 = vsub.f32 1.0, %v1606_v3  ;;  %v1611_v11 = vsub.f32 1.0, %v1607_v24  ;;  %v2075_v4 = vsub.f32 %v4773_v10, %v5374_v40  ;;  %v2076_v52 = vsub.f32 %v4773_v10, %v5378_v53 }
  0xbc   : > { %v1243_v46 = vcombine.low %v1163_v51, %v1164_v28  ;;  %v1244_v29 = vcombine.high %v1163_v51, %v1164_v28  ;;  %v5386_v26 = vand.u32 2147483647, %v2051_v44  ;;  %v5388_v31 = vand.u32 2147483647, %v2052_v58 }
  0xbd   : > { %v1614_v23 = vmax.f32 %v1610_v60, 0.0  ;;  %v1615_v48 = vmax.f32 %v1611_v11, 0.0  ;;  %v2077_v42 = vsub.f32 %v4775_v12, %v5374_v40  ;;  %v2078_v41 = vsub.f32 %v4775_v12, %v5378_v53 }
  0xbe   : > { %v1251_v38 = vrot.slane %v1243_v46, %v4783_v15  ;;  %v5398_v47 = vrot.slane %v1244_v29, %v4783_v15  ;;  %v2059_v5 = vsub.f32 1.0, %v5386_v26  ;;  %v2060_v49 = vsub.f32 1.0, %v5388_v31 }
  0xbf   : > { %v1694_v61 = vcombine.low %v1614_v23, %v1615_v48  ;;  %v1695_v33 = vcombine.high %v1614_v23, %v1615_v48  ;;  %v5411_v37 = vand.u32 2147483647, %v2075_v4  ;;  %v5419_v18 = vand.u32 2147483647, %v2076_v52 }
  0xc0   : > { %v1267_v19 = vrot.slane %v1251_v38, %v4783_v15  ;;  %v1259_v43 = vcombine.high %v1251_v38, %v1251_v38  ;;  %v5409_v30 = vrot.slane %v5398_v47, %v4783_v15  ;;  %v1260_v22 = vcombine.high %v5398_v47, %v5398_v47 }
  0xc1   : > { %v1702_v56 = vrot.slane %v1694_v61, %v4783_v15  ;;  %v5415_v0 = vrot.slane %v1695_v33, %v4783_v15 }
  0xc2   : > { %v1364_v35 = vrot.slane %v1267_v19, %v4759_v7  ;;  %v1360_v20 = vrot.slane %v1267_v19, %v4757_v6  ;;  %v1281_v45 = vrot.slane %v1259_v43, %v4783_v15  ;;  %v1289_v32 = vcombine.high %v1267_v19, %v1267_v19 }
  0xc3   : > { %v1718_v1 = vrot.slane %v1702_v56, %v4783_v15  ;;  %v1710_v16 = vcombine.high %v1702_v56, %v1702_v56  ;;  %v5427_v25 = vrot.slane %v5409_v30, %v4759_v7  ;;  %v5431_v50 = vrot.slane %v5415_v0, %v4783_v15 }
  0xc4   : > { %v1486_v51 = vmul.f32 %v1364_v35, %v4888_v59  ;;  %v1488_v3 = vmul.f32 %v1364_v35, %v4895_v63  ;;  %v1485_v24 = vmul.f32 %v1360_v20, %v4886_v54  ;;  %v1487_v28 = vmul.f32 %v1360_v20, %v4893_v62 }
  0xc5   : > { %v1815_v44 = vrot.slane %v1718_v1, %v4759_v7  ;;  %v1811_v58 = vrot.slane %v1718_v1, %v4757_v6  ;;  %v1372_v60 = vrot.slane %v1281_v45, %v4759_v7  ;;  %v1732_v11 = vrot.slane %v1710_v16, %v4783_v15 }
  0xc6   : > { %v1534_v4 = vpack.c.bf16 %v1488_v3, %v1486_v51  ;;  %v1533_v46 = vpack.c.bf16 %v1487_v28, %v1485_v24  ;;  %v1368_v29 = vrot.slane %v1281_v45, %v4757_v6  ;;  %v1380_v26 = vrot.slane %v1289_v32, %v4759_v7 }
  0xc7   : > { %v1937_v23 = vmul.f32 %v1815_v44, %v5008_v34  ;;  %v1939_v48 = vmul.f32 %v1815_v44, %v5234_v13  ;;  %v1936_v52 = vmul.f32 %v1811_v58, %v4982_v39  ;;  %v1938_v38 = vmul.f32 %v1811_v58, %v5014_v36 }
  0xc8   : > { %1565 = vmatprep.subr.bf16.mxu0 %v1534_v4  ;;  %v1490_v61 = vmul.f32 %v1372_v60, %v4888_v59  ;;  %v1492_v33 = vmul.f32 %v1372_v60, %v4895_v63  ;;  %v1823_v19 = vrot.slane %v1732_v11, %v4759_v7  ;;  %v1489_v43 = vmul.f32 %v1368_v29, %v4886_v54 }
  0xc9   : > { %v1985_v56 = vpack.c.bf16 %v1939_v48, %v1937_v23  ;;  %1566 = vmatpush1.bf16.msra.mxu0 %v1533_v46  ;;  %v1984_v35 = vpack.c.bf16 %v1938_v38, %v1936_v52  ;;  %v1491_v20 = vmul.f32 %v1368_v29, %v4893_v62  ;;  %v1819_v16 = vrot.slane %v1732_v11, %v4757_v6 }
  0xca   : > { %v1536_v51 = vpack.c.bf16 %v1492_v33, %v1490_v61  ;;  %v1941_v3 = vmul.f32 %v1823_v19, %v5008_v34  ;;  %v1943_v24 = vmul.f32 %v1823_v19, %v5234_v13  ;;  %v1494_v28 = vmul.f32 %v1380_v26, %v4888_v59 }
  0xcb   : > { %2016 = vmatprep.subr.bf16.mxu1 %v1985_v56  ;;  %v1535_v44 = vpack.c.bf16 %v1491_v20, %v1489_v43  ;;  %v1940_v58 = vmul.f32 %v1819_v16, %v4982_v39  ;;  %v1942_v60 = vmul.f32 %v1819_v16, %v5014_v36  ;;  %v1496_v4 = vmul.f32 %v1380_v26, %v4895_v63 }
  0xcc   : > { %2017 = vmatpush1.bf16.msra.mxu1 %v1984_v35  ;;  %1567 = vmatprep.subr.bf16.mxu0 %v1536_v51  ;;  %v1987_v46 = vpack.c.bf16 %v1943_v24, %v1941_v3  ;;  %v1740_v29 = vcombine.high %v1718_v1, %v1718_v1  ;;  %v1376_v23 = vrot.slane %v1289_v32, %v4757_v6  ;;  %v5460_v48 = vmax.f32 %v2059_v5, 0.0 }
  0xcd   : > { %1568 = vmatpush1.bf16.msra.mxu0 %v1535_v44  ;;  %v1986_v52 = vpack.c.bf16 %v1942_v60, %v1940_v58  ;;  %v1538_v38 = vpack.c.bf16 %v1496_v4, %v1494_v28  ;;  %v1291_v61 = vcombine.high %v1281_v45, %v1281_v45  ;;  %v1742_v33 = vcombine.high %v1732_v11, %v1732_v11 }
  0xce   : > { %2018 = vmatprep.subr.bf16.mxu1 %v1987_v46  ;;  %v1831_v19 = vrot.slane %v1740_v29, %v4759_v7  ;;  %v1493_v43 = vmul.f32 %v1376_v23, %v4886_v54  ;;  %v1495_v26 = vmul.f32 %v1376_v23, %v4893_v62  ;;  %v1827_v56 = vrot.slane %v1740_v29, %v4757_v6 }
  0xcf   : > { %1569 = vmatprep.subr.bf16.mxu0 %v1538_v38  ;;  %v1388_v1 = vrot.slane %v1291_v61, %v4759_v7  ;;  %v1839_v5 = vrot.slane %v1742_v33, %v4759_v7  ;;  %v1384_v32 = vrot.slane %v1291_v61, %v4757_v6  ;;  %v1835_v35 = vrot.slane %v1742_v33, %v4757_v6 }
  0xd0   : > { %2019 = vmatpush1.bf16.msra.mxu1 %v1986_v52  ;;  %v1945_v45 = vmul.f32 %v1831_v19, %v5008_v34  ;;  %v1947_v11 = vmul.f32 %v1831_v19, %v5234_v13  ;;  %v1537_v20 = vpack.c.bf16 %v1495_v26, %v1493_v43  ;;  %v1944_v16 = vmul.f32 %v1827_v56, %v4982_v39 }
  0xd1   : > { %v1946_v51 = vmul.f32 %v1827_v56, %v5014_v36  ;;  %v1498_v3 = vmul.f32 %v1388_v1, %v4888_v59  ;;  %v1500_v24 = vmul.f32 %v1388_v1, %v4895_v63  ;;  %v1949_v28 = vmul.f32 %v1839_v5, %v5008_v34 }
  0xd2   : > { %v1989_v44 = vpack.c.bf16 %v1947_v11, %v1945_v45  ;;  %1570 = vmatpush1.bf16.msra.mxu0 %v1537_v20  ;;  %v1951_v58 = vmul.f32 %v1839_v5, %v5234_v13  ;;  %v1497_v60 = vmul.f32 %v1384_v32, %v4886_v54  ;;  %v1499_v4 = vmul.f32 %v1384_v32, %v4893_v62 }
  0xd3   : > { %v1988_v46 = vpack.c.bf16 %v1946_v51, %v1944_v16  ;;  %v1540_v29 = vpack.c.bf16 %v1500_v24, %v1498_v3  ;;  %v1948_v23 = vmul.f32 %v1835_v35, %v4982_v39  ;;  %v1950_v52 = vmul.f32 %v1835_v35, %v5014_v36 }
  0xd4   : > { %2020 = vmatprep.subr.bf16.mxu1 %v1989_v44  ;;  %v1991_v38 = vpack.c.bf16 %v1951_v58, %v1949_v28  ;;  %v1539_v61 = vpack.c.bf16 %v1499_v4, %v1497_v60  ;;  %v1502_v33 = vmul.f32 %v5427_v25, %v4888_v59  ;;  %v1504_v19 = vmul.f32 %v5427_v25, %v4895_v63 }
  0xd5   : > { %2021 = vmatpush1.bf16.msra.mxu1 %v1988_v46  ;;  %1571 = vmatprep.subr.bf16.mxu0 %v1540_v29  ;;  %v1990_v43 = vpack.c.bf16 %v1950_v52, %v1948_v23  ;;  %v1847_v26 = vrot.slane %v5431_v50, %v4759_v7  ;;  %v1392_v56 = vrot.slane %v5409_v30, %v4757_v6  ;;  %v5492_v1 = vmax.f32 %v2060_v49, 0.0 }
  0xd6   : > { %2022 = vmatprep.subr.bf16.mxu1 %v1991_v38  ;;  %1572 = vmatpush1.bf16.msra.mxu0 %v1539_v61  ;;  %v1542_v5 = vpack.c.bf16 %v1504_v19, %v1502_v33  ;;  %v1843_v32 = vrot.slane %v5431_v50, %v4757_v6  ;;  %v1288_v25 = vrot.slane %v1260_v22, %v4783_v15  ;;  %v5503_v35 = vand.u32 2147483647, %v2077_v42 }
  0xd7   : > { %v1953_v31 = vmul.f32 %v1847_v26, %v5008_v34  ;;  %v1955_v49 = vmul.f32 %v1847_v26, %v5234_v13  ;;  %v1501_v45 = vmul.f32 %v1392_v56, %v4886_v54  ;;  %v1503_v11 = vmul.f32 %v1392_v56, %v4893_v62 }
  0xd8   : > { %1573 = vmatprep.subr.bf16.mxu0 %v1542_v5  ;;  %v1952_v20 = vmul.f32 %v1843_v32, %v4982_v39  ;;  %v1954_v16 = vmul.f32 %v1843_v32, %v5014_v36  ;;  %v1404_v47 = vrot.slane %v1288_v25, %v4759_v7  ;;  %v1711_v40 = vcombine.high %v5415_v0, %v5415_v0 }
  0xd9   : > { %2023 = vmatpush1.bf16.msra.mxu1 %v1990_v43  ;;  %v1993_v42 = vpack.c.bf16 %v1955_v49, %v1953_v31  ;;  %v1541_v22 = vpack.c.bf16 %v1503_v11, %v1501_v45  ;;  %v1400_v51 = vrot.slane %v1288_v25, %v4757_v6  ;;  %v1290_v3 = vcombine.high %v5409_v30, %v5409_v30 }
  0xda   : > { %v1992_v24 = vpack.c.bf16 %v1954_v16, %v1952_v20  ;;  %v1506_v28 = vmul.f32 %v1404_v47, %v4888_v59  ;;  %v1508_v44 = vmul.f32 %v1404_v47, %v4895_v63  ;;  %v1739_v58 = vrot.slane %v1711_v40, %v4783_v15 }
  0xdb   : > { %2024 = vmatprep.subr.bf16.mxu1 %v1993_v42  ;;  %1574 = vmatpush1.bf16.msra.mxu0 %v1541_v22  ;;  %v1505_v60 = vmul.f32 %v1400_v51, %v4886_v54  ;;  %v1507_v0 = vmul.f32 %v1400_v51, %v4893_v62  ;;  %v1412_v4 = vrot.slane %v1290_v3, %v4759_v7  ;;  %v5526_v46 = vand.u32 2147483647, %v2078_v41 }
  0xdc   : > { %v1544_v30 = vpack.c.bf16 %v1508_v44, %v1506_v28  ;;  %v1855_v29 = vrot.slane %v1739_v58, %v4759_v7  ;;  %v1851_v23 = vrot.slane %v1739_v58, %v4757_v6  ;;  %v1741_v52 = vcombine.high %v5431_v50, %v5431_v50 }
  0xdd   : > { %2025 = vmatpush1.bf16.msra.mxu1 %v1992_v24  ;;  %v1543_v38 = vpack.c.bf16 %v1507_v0, %v1505_v60  ;;  %v1510_v61 = vmul.f32 %v1412_v4, %v4888_v59  ;;  %v1512_v33 = vmul.f32 %v1412_v4, %v4895_v63  ;;  %v1408_v19 = vrot.slane %v1290_v3, %v4757_v6 }
  0xde   : > { %1575 = vmatprep.subr.bf16.mxu0 %v1544_v30  ;;  %v1957_v53 = vmul.f32 %v1855_v29, %v5008_v34  ;;  %v1959_v41 = vmul.f32 %v1855_v29, %v5234_v13  ;;  %v1956_v43 = vmul.f32 %v1851_v23, %v4982_v39  ;;  %v1958_v26 = vmul.f32 %v1851_v23, %v5014_v36 }
  0xdf   : > { %1576 = vmatpush1.bf16.msra.mxu0 %v1543_v38  ;;  %v1546_v56 = vpack.c.bf16 %v1512_v33, %v1510_v61  ;;  %v1863_v50 = vrot.slane %v1741_v52, %v4759_v7  ;;  %v1509_v5 = vmul.f32 %v1408_v19, %v4886_v54  ;;  %v1511_v32 = vmul.f32 %v1408_v19, %v4893_v62 }
  0xe0   : > { %v1995_v31 = vpack.c.bf16 %v1959_v41, %v1957_v53  ;;  %v1994_v49 = vpack.c.bf16 %v1958_v26, %v1956_v43  ;;  %v1859_v45 = vrot.slane %v1741_v52, %v4757_v6  ;;  %v1292_v11 = vcombine.high %v1288_v25, %v1288_v25 }
  0xe1   : > { %1577 = vmatprep.subr.bf16.mxu0 %v1546_v56  ;;  %v1961_v20 = vmul.f32 %v1863_v50, %v5008_v34  ;;  %v1963_v16 = vmul.f32 %v1863_v50, %v5234_v13  ;;  %v1545_v47 = vpack.c.bf16 %v1511_v32, %v1509_v5  ;;  %v1743_v40 = vcombine.high %v1739_v58, %v1739_v58 }
  0xe2   : > { %2026 = vmatprep.subr.bf16.mxu1 %v1995_v31  ;;  %v1960_v42 = vmul.f32 %v1859_v45, %v4982_v39  ;;  %v1962_v22 = vmul.f32 %v1859_v45, %v5014_v36  ;;  %v1420_v51 = vrot.slane %v1292_v11, %v4759_v7  ;;  %v1416_v3 = vrot.slane %v1292_v11, %v4757_v6 }
  0xe3   : > { %2027 = vmatpush1.bf16.msra.mxu1 %v1994_v49  ;;  %v1997_v24 = vpack.c.bf16 %v1963_v16, %v1961_v20  ;;  %1578 = vmatpush1.bf16.msra.mxu0 %v1545_v47  ;;  %v1871_v25 = vrot.slane %v1743_v40, %v4759_v7  ;;  %v1867_v28 = vrot.slane %v1743_v40, %v4757_v6  ;;  %v2084_v44 = vsub.f32 1.0, %v5419_v18 }
  0xe4   : > { %v1996_v60 = vpack.c.bf16 %v1962_v22, %v1960_v42  ;;  %v1514_v58 = vmul.f32 %v1420_v51, %v4888_v59  ;;  %v1516_v0 = vmul.f32 %v1420_v51, %v4895_v63  ;;  %v1513_v4 = vmul.f32 %v1416_v3, %v4886_v54 }
  0xe5   : > { %2028 = vmatprep.subr.bf16.mxu1 %v1997_v24  ;;  %v1965_v30 = vmul.f32 %v1871_v25, %v5008_v34  ;;  %v1967_v29 = vmul.f32 %v1871_v25, %v5234_v13  ;;  %v1515_v23 = vmul.f32 %v1416_v3, %v4893_v62  ;;  %v1964_v52 = vmul.f32 %v1867_v28, %v4982_v39 }
  0xe6   : > { %v1548_v38 = vpack.c.bf16 %v1516_v0, %v1514_v58  ;;  %v1966_v61 = vmul.f32 %v1867_v28, %v5014_v36  ;;  %v2086_v18 = vsub.f32 1.0, %v5526_v46  ;;  %v2083_v63 = vsub.f32 1.0, %v5411_v37 }
  0xe7   : > { %2029 = vmatpush1.bf16.msra.mxu1 %v1996_v60  ;;  %v1999_v59 = vpack.c.bf16 %v1967_v29, %v1965_v30  ;;  %v1547_v33 = vpack.c.bf16 %v1515_v23, %v1513_v4  ;;  %v2085_v54 = vsub.f32 1.0, %v5503_v35  ;;  %v5563_v19 = vmax.f32 %v2084_v44, 0.0  ;;  %v6506_v30 = vld [vmem:[#allocation6_spill] sm:$0xff] }
  0xe8   : > { %1579 = vmatprep.subr.bf16.mxu0 %v1548_v38  ;;  %v1998_v34 = vpack.c.bf16 %v1966_v61, %v1964_v52  ;;  %v2095_v62 = vcombine.low %v5460_v48, %v5492_v1  ;;  %v2525_v39 = vrot.slane %v5358_v27, %v4761_v8  ;;  %v5569_v36 = vmax.f32 %v2086_v18, 0.0  ;;  %v6507_v52 = vld [vmem:[#allocation7_spill] sm:$0xff] }
  0xe9   : > { %2030 = vmatprep.subr.bf16.mxu1 %v1999_v59  ;;  %1580 = vmatpush1.bf16.msra.mxu0 %v1547_v33  ;;  %v2526_v13 = vsub.f32 %v4773_v10, %v5394_v21  ;;  %v2528_v37 = vsub.f32 %v4775_v12, %v5394_v21  ;;  %v2972_v35 = vrot.slane %v5355_v57, %v4763_v9  ;;  %v5593_v20 = vmax.f32 %v2083_v63, 0.0 }
  0xea   : > { %v5578_v46 = vrot.slane %v2095_v62, %v4783_v15  ;;  %v2527_v53 = vsub.f32 %v4773_v10, %v2525_v39  ;;  %v2529_v8 = vsub.f32 %v4775_v12, %v2525_v39  ;;  %v2976_v41 = vrot.slane %v5358_v27, %v4763_v9 }
  0xeb   : > { %2031 = vmatpush1.bf16.msra.mxu1 %v1998_v34  ;;  %v2530_v43 = vand.u32 2147483647, %v2526_v13  ;;  %v2532_v26 = vand.u32 2147483647, %v2528_v37  ;;  %v2977_v56 = vsub.f32 %v4773_v10, %v2972_v35  ;;  %v2979_v21 = vsub.f32 %v4775_v12, %v2972_v35 }
  0xec   : > { %1582 = vmatmul.mubr.bf16.vlgmr.msra.gmra.mrb[4].mxu0 %v4829_v55  ;;  %v2119_v50 = vrot.slane %v5578_v46, %v4783_v15  ;;  %v2531_v5 = vand.u32 2147483647, %v2527_v53  ;;  %v2533_v32 = vand.u32 2147483647, %v2529_v8  ;;  %v2978_v31 = vsub.f32 %v4773_v10, %v2976_v41 }
  0xed   : > { %v2534_v49 = vsub.f32 1.0, %v2530_v43  ;;  %v2536_v45 = vsub.f32 1.0, %v2532_v26  ;;  %v2980_v9 = vsub.f32 %v4775_v12, %v2976_v41  ;;  %v2981_v11 = vand.u32 2147483647, %v2977_v56  ;;  %2483 = vmatprep.mubr.bf16.mxu0 %v4787_v17 }
  0xee   : > { %2033 = vmatmul.mubr.bf16.vlgmr.msra.gmra.mrb[4].mxu1 %v4829_v55  ;;  %v2202_v16 = vrot.slane %v2119_v50, %v4759_v7  ;;  %v2535_v47 = vsub.f32 1.0, %v2531_v5  ;;  %v2537_v40 = vsub.f32 1.0, %v2533_v32  ;;  %v2982_v42 = vand.u32 2147483647, %v2978_v31 }
  0xef   : > { %v2983_v22 = vand.u32 2147483647, %v2979_v21  ;;  %v2984_v51 = vand.u32 2147483647, %v2980_v9  ;;  %2934 = vmatprep.mubr.bf16.mxu1 %v4787_v17  ;;  %v5597_v3 = vmax.f32 %v2085_v54, 0.0  ;;  %v5601_v28 = vmax.f32 %v2534_v49, 0.0 }
  0xf0   : > { %v2356_v24 = vmul.f32 %v2202_v16, %v5563_v19  ;;  %v2358_v25 = vmul.f32 %v2202_v16, %v5569_v36  ;;  %v5603_v44 = vmax.f32 %v2535_v47, 0.0  ;;  %v5605_v60 = vmax.f32 %v2536_v45, 0.0 }
  0xf1   : > { %v5607_v58 = vmax.f32 %v2537_v40, 0.0  ;;  %v2985_v0 = vsub.f32 1.0, %v2981_v11  ;;  %v3423_v29 = vrot.slane %v5355_v57, %v6506_v30  ;;  %v3427_v23 = vrot.slane %v5358_v27, %v6506_v30 }
  0xf2   : > { %v2420_v4 = vpack.c.bf16 %v2358_v25, %v2356_v24  ;;  %v5615_v38 = vrot.slane %v5355_v57, %v6507_v52  ;;  %v2986_v61 = vsub.f32 1.0, %v2982_v42  ;;  %v2987_v18 = vsub.f32 1.0, %v2983_v22 }
  0xf3   : > { %v2988_v59 = vsub.f32 1.0, %v2984_v51  ;;  %v5617_v33 = vmax.f32 %v2985_v0, 0.0  ;;  %v3428_v63 = vsub.f32 %v4773_v10, %v3423_v29  ;;  %v3429_v54 = vsub.f32 %v4773_v10, %v3427_v23 }
  0xf4   : > { %2451 = vmatprep.subr.bf16.mxu0 %v2420_v4  ;;  %v3430_v34 = vsub.f32 %v4775_v12, %v3423_v29  ;;  %v3431_v62 = vsub.f32 %v4775_v12, %v3427_v23  ;;  %v5625_v39 = vrot.slane %v5358_v27, %v6507_v52  ;;  %v2502_v13 = vsub.f32 %v4773_v10, %v5615_v38 }
  0xf5   : > { %v2198_v37 = vrot.slane %v2119_v50, %v4757_v6  ;;  %v2111_v35 = vcombine.high %v5578_v46, %v5578_v46  ;;  %v5632_v53 = vand.u32 2147483647, %v3428_v63  ;;  %v5634_v8 = vand.u32 2147483647, %v3429_v54 }
  0xf6   : > { %v5636_v41 = vand.u32 2147483647, %v3430_v34  ;;  %v5638_v43 = vand.u32 2147483647, %v3431_v62  ;;  %v2503_v26 = vsub.f32 %v4773_v10, %v5625_v39  ;;  %v2506_v56 = vand.u32 2147483647, %v2502_v13 }
  0xf7   : > { %v2355_v21 = vmul.f32 %v2198_v37, %v5593_v20  ;;  %v5643_v5 = vmax.f32 %v2986_v61, 0.0  ;;  %v5645_v32 = vmax.f32 %v2987_v18, 0.0  ;;  %v2357_v46 = vmul.f32 %v2198_v37, %v5597_v3 }
  0xf8   : > { %v2141_v31 = vcombine.high %v2119_v50, %v2119_v50  ;;  %v5648_v49 = vmax.f32 %v2988_v59, 0.0  ;;  %v2507_v45 = vand.u32 2147483647, %v2503_v26  ;;  %v2510_v9 = vsub.f32 1.0, %v2506_v56 }
  0xf9   : > { %v2133_v11 = vrot.slane %v2111_v35, %v4783_v15  ;;  %v3436_v16 = vsub.f32 1.0, %v5632_v53  ;;  %v3437_v47 = vsub.f32 1.0, %v5634_v8  ;;  %v3438_v40 = vsub.f32 1.0, %v5636_v41 }
  0xfa   : > { %v2419_v42 = vpack.c.bf16 %v2357_v46, %v2355_v21  ;;  %v3439_v22 = vsub.f32 1.0, %v5638_v43  ;;  %v2511_v51 = vsub.f32 1.0, %v2507_v45  ;;  %v2514_v24 = vmax.f32 %v2510_v9, 0.0 }
  0xfb   : > { %v2210_v25 = vrot.slane %v2133_v11, %v4759_v7  ;;  %v2206_v50 = vrot.slane %v2133_v11, %v4757_v6  ;;  %v2218_v0 = vrot.slane %v2141_v31, %v4759_v7  ;;  %v2214_v4 = vrot.slane %v2141_v31, %v4757_v6 }
  0xfc   : > { %2452 = vmatpush1.bf16.msra.mxu0 %v2419_v42  ;;  %v2143_v30 = vcombine.high %v2133_v11, %v2133_v11  ;;  %v2515_v29 = vmax.f32 %v2511_v51, 0.0  ;;  %v2096_v61 = vcombine.high %v5460_v48, %v5492_v1 }
  0xfd   : > { %v2360_v23 = vmul.f32 %v2210_v25, %v5563_v19  ;;  %v2362_v52 = vmul.f32 %v2210_v25, %v5569_v36  ;;  %v2359_v18 = vmul.f32 %v2206_v50, %v5593_v20  ;;  %v2361_v59 = vmul.f32 %v2206_v50, %v5597_v3 }
  0xfe   : > { %v2364_v63 = vmul.f32 %v2218_v0, %v5563_v19  ;;  %v2366_v54 = vmul.f32 %v2218_v0, %v5569_v36  ;;  %v2546_v34 = vcombine.low %v2514_v24, %v2515_v29  ;;  %v2363_v13 = vmul.f32 %v2214_v4, %v5593_v20 }
  0xff   : > { %v2422_v62 = vpack.c.bf16 %v2362_v52, %v2360_v23  ;;  %v2365_v37 = vmul.f32 %v2214_v4, %v5597_v3  ;;  %v2421_v35 = vpack.c.bf16 %v2361_v59, %v2359_v18  ;;  %v2226_v56 = vrot.slane %v2143_v30, %v4759_v7 }
 0x100   : > { %v2424_v26 = vpack.c.bf16 %v2366_v54, %v2364_v63  ;;  %v2222_v48 = vrot.slane %v2143_v30, %v4757_v6  ;;  %v2554_v1 = vrot.slane %v2546_v34, %v4783_v15  ;;  %v2110_v46 = vrot.slane %v2096_v61, %v4783_v15 }
 0x101   : > { %2453 = vmatprep.subr.bf16.mxu0 %v2422_v62  ;;  %v2423_v21 = vpack.c.bf16 %v2365_v37, %v2363_v13  ;;  %v2547_v31 = vcombine.high %v2514_v24, %v2515_v29  ;;  %v2368_v45 = vmul.f32 %v2226_v56, %v5563_v19  ;;  %v2370_v9 = vmul.f32 %v2226_v56, %v5569_v36 }
 0x102   : > { %2454 = vmatpush1.bf16.msra.mxu0 %v2421_v35  ;;  %v2367_v11 = vmul.f32 %v2222_v48, %v5593_v20  ;;  %v2369_v42 = vmul.f32 %v2222_v48, %v5597_v3  ;;  %v2570_v51 = vrot.slane %v2554_v1, %v4783_v15  ;;  %v2562_v25 = vcombine.high %v2554_v1, %v2554_v1 }
 0x103   : > { %2455 = vmatprep.subr.bf16.mxu0 %v2424_v26  ;;  %v5679_v50 = vrot.slane %v2110_v46, %v4783_v15  ;;  %v5682_v0 = vrot.slane %v2547_v31, %v4783_v15  ;;  %v2426_v24 = vpack.c.bf16 %v2370_v9, %v2368_v45  ;;  %v2112_v30 = vcombine.high %v2110_v46, %v2110_v46 }
 0x104   : > { %v2425_v4 = vpack.c.bf16 %v2369_v42, %v2367_v11  ;;  %v2053_v29 = vsub.f32 %v4775_v12, %v5366_v14  ;;  %v2653_v23 = vrot.slane %v2570_v51, %v4759_v7  ;;  %v2649_v52 = vrot.slane %v2570_v51, %v4757_v6 }
 0x105   : > { %v2584_v61 = vrot.slane %v2562_v25, %v4783_v15  ;;  %v2592_v18 = vcombine.high %v2570_v51, %v2570_v51  ;;  %v2234_v59 = vrot.slane %v5679_v50, %v4759_v7  ;;  %v5693_v63 = vrot.slane %v5682_v0, %v4783_v15 }
 0x106   : > { %2456 = vmatpush1.bf16.msra.mxu0 %v2423_v21  ;;  %v2230_v54 = vrot.slane %v5679_v50, %v4757_v6  ;;  %v5698_v34 = vrot.slane %v2112_v30, %v4783_v15  ;;  %v2807_v62 = vmul.f32 %v2653_v23, %v5603_v44  ;;  %v2809_v13 = vmul.f32 %v2653_v23, %v5607_v58 }
 0x107   : > { %v2806_v37 = vmul.f32 %v2649_v52, %v5601_v28  ;;  %v2808_v35 = vmul.f32 %v2649_v52, %v5605_v60  ;;  %2457 = vmatprep.subr.bf16.mxu0 %v2426_v24  ;;  %v2661_v26 = vrot.slane %v2584_v61, %v4759_v7  ;;  %v2657_v56 = vrot.slane %v2584_v61, %v4757_v6 }
 0x108   : > { %v2669_v48 = vrot.slane %v2592_v18, %v4759_v7  ;;  %v2665_v1 = vrot.slane %v2592_v18, %v4757_v6  ;;  %v2871_v21 = vpack.c.bf16 %v2809_v13, %v2807_v62  ;;  %v2594_v31 = vcombine.high %v2584_v61, %v2584_v61 }
 0x109   : > { %v2870_v46 = vpack.c.bf16 %v2808_v35, %v2806_v37  ;;  %v2372_v45 = vmul.f32 %v2234_v59, %v5563_v19  ;;  %v2811_v9 = vmul.f32 %v2661_v26, %v5603_v44  ;;  %v2813_v11 = vmul.f32 %v2661_v26, %v5607_v58 }
 0x10a   : > { %v2810_v42 = vmul.f32 %v2657_v56, %v5601_v28  ;;  %v2812_v51 = vmul.f32 %v2657_v56, %v5605_v60  ;;  %2458 = vmatpush1.bf16.msra.mxu0 %v2425_v4  ;;  %2902 = vmatprep.subr.bf16.mxu1 %v2871_v21  ;;  %v2815_v25 = vmul.f32 %v2669_v48, %v5603_v44 }
 0x10b   : > { %v2817_v24 = vmul.f32 %v2669_v48, %v5607_v58  ;;  %v2814_v30 = vmul.f32 %v2665_v1, %v5601_v28  ;;  %v2816_v23 = vmul.f32 %v2665_v1, %v5605_v60  ;;  %2903 = vmatpush1.bf16.msra.mxu1 %v2870_v46  ;;  %v2873_v52 = vpack.c.bf16 %v2813_v11, %v2811_v9 }
 0x10c   : > { %v2872_v61 = vpack.c.bf16 %v2812_v51, %v2810_v42  ;;  %v2677_v18 = vrot.slane %v2594_v31, %v4759_v7  ;;  %v2673_v62 = vrot.slane %v2594_v31, %v4757_v6  ;;  %v2374_v4 = vmul.f32 %v2234_v59, %v5569_v36 }
 0x10d   : > { %v2875_v13 = vpack.c.bf16 %v2817_v24, %v2815_v25  ;;  %v2874_v37 = vpack.c.bf16 %v2816_v23, %v2814_v30  ;;  %v2685_v35 = vrot.slane %v5693_v63, %v4759_v7  ;;  %2904 = vmatprep.subr.bf16.mxu1 %v2873_v52  ;;  %v2371_v9 = vmul.f32 %v2230_v54, %v5593_v20 }
 0x10e   : > { %v2819_v26 = vmul.f32 %v2677_v18, %v5603_v44  ;;  %v2821_v56 = vmul.f32 %v2677_v18, %v5607_v58  ;;  %v2818_v48 = vmul.f32 %v2673_v62, %v5601_v28  ;;  %v2820_v1 = vmul.f32 %v2673_v62, %v5605_v60 }
 0x10f   : > { %v2428_v21 = vpack.c.bf16 %v2374_v4, %v2372_v45  ;;  %v2823_v46 = vmul.f32 %v2685_v35, %v5603_v44  ;;  %v2825_v31 = vmul.f32 %v2685_v35, %v5607_v58  ;;  %2905 = vmatpush1.bf16.msra.mxu1 %v2872_v61  ;;  %v2373_v42 = vmul.f32 %v2230_v54, %v5597_v3 }
 0x110   : > { %v2877_v59 = vpack.c.bf16 %v2821_v56, %v2819_v26  ;;  %v2876_v11 = vpack.c.bf16 %v2820_v1, %v2818_v48  ;;  %v2681_v51 = vrot.slane %v5693_v63, %v4757_v6  ;;  %v5734_v25 = vmax.f32 %v3436_v16, 0.0  ;;  %2906 = vmatprep.subr.bf16.mxu1 %v2875_v13 }
 0x111   : > { %2459 = vmatprep.subr.bf16.mxu0 %v2428_v21  ;;  %v2879_v45 = vpack.c.bf16 %v2825_v31, %v2823_v46  ;;  %v2242_v24 = vrot.slane %v5698_v34, %v4759_v7  ;;  %v2563_v30 = vcombine.high %v5682_v0, %v5682_v0  ;;  %v2427_v23 = vpack.c.bf16 %v2373_v42, %v2371_v9 }
 0x112   : > { %v2822_v52 = vmul.f32 %v2681_v51, %v5601_v28  ;;  %v2824_v54 = vmul.f32 %v2681_v51, %v5605_v60  ;;  %v2238_v61 = vrot.slane %v5698_v34, %v4757_v6  ;;  %v2142_v62 = vcombine.high %v5679_v50, %v5679_v50 }
 0x113   : > { %v2376_v53 = vmul.f32 %v2242_v24, %v5563_v19  ;;  %v2378_v16 = vmul.f32 %v2242_v24, %v5569_v36  ;;  %v2591_v18 = vrot.slane %v2563_v30, %v4783_v15  ;;  %v5751_v0 = vmax.f32 %v3437_v47, 0.0  ;;  %2907 = vmatpush1.bf16.msra.mxu1 %v2874_v37  ;;  %2460 = vmatpush1.bf16.msra.mxu0 %v2427_v23 }
 0x114   : > { %v2878_v13 = vpack.c.bf16 %v2824_v54, %v2822_v52  ;;  %v2375_v4 = vmul.f32 %v2238_v61, %v5593_v20  ;;  %v2377_v35 = vmul.f32 %v2238_v61, %v5597_v3  ;;  %2908 = vmatprep.subr.bf16.mxu1 %v2877_v59  ;;  %v2250_v1 = vrot.slane %v2142_v62, %v4759_v7 }
 0x115   : > { %v2430_v26 = vpack.c.bf16 %v2378_v16, %v2376_v53  ;;  %v2693_v56 = vrot.slane %v2591_v18, %v4759_v7  ;;  %v2689_v48 = vrot.slane %v2591_v18, %v4757_v6  ;;  %v2593_v8 = vcombine.high %v5693_v63, %v5693_v63 }
 0x116   : > { %v2429_v50 = vpack.c.bf16 %v2377_v35, %v2375_v4  ;;  %v2246_v47 = vrot.slane %v2142_v62, %v4757_v6  ;;  %v2144_v37 = vcombine.high %v5698_v34, %v5698_v34  ;;  %v2380_v59 = vmul.f32 %v2250_v1, %v5563_v19 }
 0x117   : > { %2461 = vmatprep.subr.bf16.mxu0 %v2430_v26  ;;  %v2827_v21 = vmul.f32 %v2693_v56, %v5603_v44  ;;  %v2829_v46 = vmul.f32 %v2693_v56, %v5607_v58  ;;  %v2826_v31 = vmul.f32 %v2689_v48, %v5601_v28  ;;  %v2828_v9 = vmul.f32 %v2689_v48, %v5605_v60 }
 0x118   : > { %2909 = vmatpush1.bf16.msra.mxu1 %v2876_v11  ;;  %2462 = vmatpush1.bf16.msra.mxu0 %v2429_v50  ;;  %v2382_v63 = vmul.f32 %v2250_v1, %v5569_v36  ;;  %v2701_v42 = vrot.slane %v2593_v8, %v4759_v7  ;;  %v2057_v34 = vand.u32 2147483647, %v2053_v29  ;;  %v2379_v30 = vmul.f32 %v2246_v47, %v5593_v20 }
 0x119   : > { %2910 = vmatprep.subr.bf16.mxu1 %v2879_v45  ;;  %v2881_v51 = vpack.c.bf16 %v2829_v46, %v2827_v21  ;;  %v2880_v24 = vpack.c.bf16 %v2828_v9, %v2826_v31  ;;  %v2381_v23 = vmul.f32 %v2246_v47, %v5597_v3  ;;  %v2697_v61 = vrot.slane %v2593_v8, %v4757_v6 }
 0x11a   : > { %v2432_v52 = vpack.c.bf16 %v2382_v63, %v2380_v59  ;;  %v2831_v11 = vmul.f32 %v2701_v42, %v5603_v44  ;;  %v2833_v54 = vmul.f32 %v2701_v42, %v5607_v58  ;;  %v2258_v16 = vrot.slane %v2144_v37, %v4759_v7 }
 0x11b   : > { %v2431_v53 = vpack.c.bf16 %v2381_v23, %v2379_v30  ;;  %v2595_v62 = vcombine.high %v2591_v18, %v2591_v18  ;;  %v2254_v14 = vrot.slane %v2144_v37, %v4757_v6  ;;  %v5782_v29 = vmax.f32 %v3438_v40, 0.0  ;;  %v6509_v23 = vld [vmem:[#allocation9_spill] sm:$0xff] }
 0x11c   : > { %2911 = vmatpush1.bf16.msra.mxu1 %v2878_v13  ;;  %2463 = vmatprep.subr.bf16.mxu0 %v2432_v52  ;;  %v2883_v45 = vpack.c.bf16 %v2833_v54, %v2831_v11  ;;  %v2830_v4 = vmul.f32 %v2697_v61, %v5601_v28  ;;  %v2832_v35 = vmul.f32 %v2697_v61, %v5605_v60  ;;  %v2061_v48 = vsub.f32 1.0, %v2057_v34  ;;  %v6508_v34 = vld [vmem:[#allocation8_spill] sm:$0xff] }
 0x11d   : > { %2912 = vmatprep.subr.bf16.mxu1 %v2881_v51  ;;  %2464 = vmatpush1.bf16.msra.mxu0 %v2431_v53  ;;  %v2384_v26 = vmul.f32 %v2258_v16, %v5563_v19  ;;  %v2386_v56 = vmul.f32 %v2258_v16, %v5569_v36  ;;  %v2709_v18 = vrot.slane %v2595_v62, %v4759_v7 }
 0x11e   : > { %v2882_v1 = vpack.c.bf16 %v2832_v35, %v2830_v4  ;;  %v2383_v41 = vmul.f32 %v2254_v14, %v5593_v20  ;;  %v2385_v40 = vmul.f32 %v2254_v14, %v5597_v3  ;;  %v2705_v13 = vrot.slane %v2595_v62, %v4757_v6 }
 0x11f   : > { %v2434_v50 = vpack.c.bf16 %v2386_v56, %v2384_v26  ;;  %v2835_v8 = vmul.f32 %v2709_v18, %v5603_v44  ;;  %v2837_v47 = vmul.f32 %v2709_v18, %v5607_v58  ;;  %v2054_v37 = vsub.f32 %v4775_v12, %v5370_v2 }
 0x120   : > { %2913 = vmatpush1.bf16.msra.mxu1 %v2880_v24  ;;  %v2433_v21 = vpack.c.bf16 %v2385_v40, %v2383_v41  ;;  %v2834_v46 = vmul.f32 %v2705_v13, %v5601_v28  ;;  %v2836_v31 = vmul.f32 %v2705_v13, %v5605_v60  ;;  %v2504_v9 = vsub.f32 %v4775_v12, %v5615_v38 }
 0x121   : > { %2914 = vmatprep.subr.bf16.mxu1 %v2883_v45  ;;  %2465 = vmatprep.subr.bf16.mxu0 %v2434_v50  ;;  %v2885_v59 = vpack.c.bf16 %v2837_v47, %v2835_v8  ;;  %v2058_v63 = vand.u32 2147483647, %v2054_v37  ;;  %v2505_v42 = vsub.f32 %v4775_v12, %v5625_v39  ;;  %v2948_v51 = vrot.slane %v5355_v57, %v6508_v34 }
 0x122   : > { %2466 = vmatpush1.bf16.msra.mxu0 %v2433_v21  ;;  %v2065_v2 = vmax.f32 %v2061_v48, 0.0  ;;  %v2508_v24 = vand.u32 2147483647, %v2504_v9  ;;  %v5806_v30 = vrot.slane %v5358_v27, %v6508_v34  ;;  %v5810_v38 = vrot.slane %v5355_v57, %v6509_v23 }
 0x123   : > { %v2062_v52 = vsub.f32 1.0, %v2058_v63  ;;  %v2509_v11 = vand.u32 2147483647, %v2505_v42  ;;  %v2953_v54 = vsub.f32 %v4773_v10, %v2948_v51  ;;  %v5815_v39 = vrot.slane %v5358_v27, %v6509_v23 }
 0x124   : > { %2915 = vmatpush1.bf16.msra.mxu1 %v2882_v1  ;;  %v2884_v61 = vpack.c.bf16 %v2836_v31, %v2834_v46  ;;  %v2512_v53 = vsub.f32 1.0, %v2508_v24  ;;  %v2954_v16 = vsub.f32 %v4773_v10, %v5806_v30  ;;  %v3404_v62 = vsub.f32 %v4773_v10, %v5810_v38 }
 0x125   : > { %2916 = vmatprep.subr.bf16.mxu1 %v2885_v59  ;;  %v2066_v57 = vmax.f32 %v2062_v52, 0.0  ;;  %v2513_v14 = vsub.f32 1.0, %v2509_v11  ;;  %v2957_v45 = vand.u32 2147483647, %v2953_v54  ;;  %v3405_v4 = vsub.f32 %v4773_v10, %v5815_v39 }
 0x126   : > { %v2516_v35 = vmax.f32 %v2512_v53, 0.0  ;;  %v2958_v26 = vand.u32 2147483647, %v2954_v16  ;;  %v5823_v27 = vand.u32 2147483647, %v3404_v62  ;;  %v2955_v56 = vsub.f32 %v4775_v12, %v2948_v51 }
 0x127   : > { %v2145_v18 = vcombine.low %v2065_v2, %v2066_v57  ;;  %v2517_v48 = vmax.f32 %v2513_v14, 0.0  ;;  %v2146_v1 = vcombine.high %v2065_v2, %v2066_v57  ;;  %v2961_v41 = vsub.f32 1.0, %v2957_v45 }
 0x128   : > { %v5828_v40 = vmax.f32 %v3439_v22, 0.0  ;;  %2917 = vmatpush1.bf16.msra.mxu1 %v2884_v61  ;;  %v2962_v13 = vsub.f32 1.0, %v2958_v26  ;;  %v5830_v50 = vand.u32 2147483647, %v3405_v4  ;;  %v2956_v8 = vsub.f32 %v4775_v12, %v5806_v30 }
 0x129   : > { %v2153_v47 = vrot.slane %v2145_v18, %v4783_v15  ;;  %v2596_v37 = vcombine.low %v2516_v35, %v2517_v48  ;;  %v5836_v21 = vrot.slane %v2146_v1, %v4783_v15  ;;  %v2597_v46 = vcombine.high %v2516_v35, %v2517_v48 }
 0x12a   : > { %v5838_v31 = vmax.f32 %v2961_v41, 0.0  ;;  %v5840_v9 = vmax.f32 %v2962_v13, 0.0  ;;  %v3412_v43 = vsub.f32 1.0, %v5823_v27  ;;  %v5843_v22 = vand.u32 2147483647, %v2955_v56 }
 0x12b   : > { %v2169_v59 = vrot.slane %v2153_v47, %v4783_v15  ;;  %v2604_v63 = vrot.slane %v2596_v37, %v4783_v15  ;;  %v2161_v42 = vcombine.high %v2153_v47, %v2153_v47  ;;  %v5849_v34 = vrot.slane %v5836_v21, %v4783_v15 }
 0x12c   : > { %v5852_v51 = vrot.slane %v2597_v46, %v4783_v15  ;;  %v2162_v2 = vcombine.high %v5836_v21, %v5836_v21  ;;  %v2997_v24 = vcombine.low %v5838_v31, %v5840_v9  ;;  %v3413_v23 = vsub.f32 1.0, %v5830_v50 }
 0x12d   : > { %v2266_v52 = vrot.slane %v2169_v59, %v4759_v7  ;;  %v2620_v11 = vrot.slane %v2604_v63, %v4783_v15  ;;  %v2262_v54 = vrot.slane %v2169_v59, %v4757_v6  ;;  %v2183_v61 = vrot.slane %v2161_v42, %v4783_v15 }
 0x12e   : > { %v2612_v53 = vcombine.high %v2604_v63, %v2604_v63  ;;  %v2191_v16 = vcombine.high %v2169_v59, %v2169_v59  ;;  %v5865_v62 = vrot.slane %v5849_v34, %v4759_v7  ;;  %v5869_v57 = vrot.slane %v5852_v51, %v4783_v15 }
 0x12f   : > { %v2388_v14 = vmul.f32 %v2266_v52, %v5563_v19  ;;  %v2390_v45 = vmul.f32 %v2266_v52, %v5569_v36  ;;  %v2717_v4 = vrot.slane %v2620_v11, %v4759_v7  ;;  %v2387_v35 = vmul.f32 %v2262_v54, %v5593_v20 }
 0x130   : > { %v2389_v26 = vmul.f32 %v2262_v54, %v5597_v3  ;;  %v2713_v56 = vrot.slane %v2620_v11, %v4757_v6  ;;  %v2274_v18 = vrot.slane %v2183_v61, %v4759_v7  ;;  %v2634_v48 = vrot.slane %v2612_v53, %v4783_v15 }
 0x131   : > { %v2436_v1 = vpack.c.bf16 %v2390_v45, %v2388_v14  ;;  %v2839_v41 = vmul.f32 %v2717_v4, %v5603_v44  ;;  %v2841_v13 = vmul.f32 %v2717_v4, %v5607_v58  ;;  %v2270_v47 = vrot.slane %v2183_v61, %v4757_v6 }
 0x132   : > { %v2435_v37 = vpack.c.bf16 %v2389_v26, %v2387_v35  ;;  %v2838_v46 = vmul.f32 %v2713_v56, %v5601_v28  ;;  %v2840_v59 = vmul.f32 %v2713_v56, %v5605_v60  ;;  %v2392_v63 = vmul.f32 %v2274_v18, %v5563_v19 }
 0x133   : > { %2467 = vmatprep.subr.bf16.mxu0 %v2436_v1  ;;  %v2887_v42 = vpack.c.bf16 %v2841_v13, %v2839_v41  ;;  %v2394_v52 = vmul.f32 %v2274_v18, %v5569_v36  ;;  %v2725_v54 = vrot.slane %v2634_v48, %v4759_v7  ;;  %v2391_v53 = vmul.f32 %v2270_v47, %v5593_v20 }
 0x134   : > { %2468 = vmatpush1.bf16.msra.mxu0 %v2435_v37  ;;  %v2886_v14 = vpack.c.bf16 %v2840_v59, %v2838_v46  ;;  %v2393_v45 = vmul.f32 %v2270_v47, %v5597_v3  ;;  %v2721_v4 = vrot.slane %v2634_v48, %v4757_v6  ;;  %v2282_v35 = vrot.slane %v2191_v16, %v4759_v7 }
 0x135   : > { %2918 = vmatprep.subr.bf16.mxu1 %v2887_v42  ;;  %v2438_v26 = vpack.c.bf16 %v2394_v52, %v2392_v63  ;;  %v2843_v56 = vmul.f32 %v2725_v54, %v5603_v44  ;;  %v2845_v1 = vmul.f32 %v2725_v54, %v5607_v58  ;;  %v2642_v41 = vcombine.high %v2620_v11, %v2620_v11 }
 0x136   : > { %2919 = vmatpush1.bf16.msra.mxu1 %v2886_v14  ;;  %v2437_v18 = vpack.c.bf16 %v2393_v45, %v2391_v53  ;;  %v2842_v13 = vmul.f32 %v2721_v4, %v5601_v28  ;;  %v2844_v37 = vmul.f32 %v2721_v4, %v5605_v60  ;;  %v2396_v46 = vmul.f32 %v2282_v35, %v5563_v19 }
 0x137   : > { %2469 = vmatprep.subr.bf16.mxu0 %v2438_v26  ;;  %v2889_v47 = vpack.c.bf16 %v2845_v1, %v2843_v56  ;;  %v2398_v59 = vmul.f32 %v2282_v35, %v5569_v36  ;;  %v2733_v42 = vrot.slane %v2642_v41, %v4759_v7  ;;  %v2278_v63 = vrot.slane %v2191_v16, %v4757_v6 }
 0x138   : > { %2470 = vmatpush1.bf16.msra.mxu0 %v2437_v18  ;;  %v2888_v52 = vpack.c.bf16 %v2844_v37, %v2842_v13  ;;  %v2729_v11 = vrot.slane %v2642_v41, %v4757_v6  ;;  %v2193_v54 = vcombine.high %v2183_v61, %v2183_v61  ;;  %v2644_v53 = vcombine.high %v2634_v48, %v2634_v48 }
 0x139   : > { %2920 = vmatprep.subr.bf16.mxu1 %v2889_v47  ;;  %v2440_v14 = vpack.c.bf16 %v2398_v59, %v2396_v46  ;;  %v2847_v45 = vmul.f32 %v2733_v42, %v5603_v44  ;;  %v2849_v4 = vmul.f32 %v2733_v42, %v5607_v58  ;;  %v2395_v26 = vmul.f32 %v2278_v63, %v5593_v20 }
 0x13a   : > { %2921 = vmatpush1.bf16.msra.mxu1 %v2888_v52  ;;  %v2397_v35 = vmul.f32 %v2278_v63, %v5597_v3  ;;  %v2846_v56 = vmul.f32 %v2729_v11, %v5601_v28  ;;  %v2848_v16 = vmul.f32 %v2729_v11, %v5605_v60  ;;  %v2290_v1 = vrot.slane %v2193_v54, %v4759_v7 }
 0x13b   : > { %2471 = vmatprep.subr.bf16.mxu0 %v2440_v14  ;;  %v2891_v61 = vpack.c.bf16 %v2849_v4, %v2847_v45  ;;  %v2741_v48 = vrot.slane %v2644_v53, %v4759_v7  ;;  %v2286_v41 = vrot.slane %v2193_v54, %v4757_v6  ;;  %v2737_v18 = vrot.slane %v2644_v53, %v4757_v6 }
 0x13c   : > { %v2439_v13 = vpack.c.bf16 %v2397_v35, %v2395_v26  ;;  %v2890_v37 = vpack.c.bf16 %v2848_v16, %v2846_v56  ;;  %v2400_v46 = vmul.f32 %v2290_v1, %v5563_v19  ;;  %v2402_v47 = vmul.f32 %v2290_v1, %v5569_v36 }
 0x13d   : > { %2922 = vmatprep.subr.bf16.mxu1 %v2891_v61  ;;  %v2851_v59 = vmul.f32 %v2741_v48, %v5603_v44  ;;  %v2853_v42 = vmul.f32 %v2741_v48, %v5607_v58  ;;  %v2399_v63 = vmul.f32 %v2286_v41, %v5593_v20  ;;  %v2401_v52 = vmul.f32 %v2286_v41, %v5597_v3 }
 0x13e   : > { %2472 = vmatpush1.bf16.msra.mxu0 %v2439_v13  ;;  %2923 = vmatpush1.bf16.msra.mxu1 %v2890_v37  ;;  %v2442_v11 = vpack.c.bf16 %v2402_v47, %v2400_v46  ;;  %v2850_v54 = vmul.f32 %v2737_v18, %v5601_v28  ;;  %v2852_v53 = vmul.f32 %v2737_v18, %v5605_v60  ;;  %v5920_v14 = vmax.f32 %v3412_v43, 0.0 }
 0x13f   : > { %v2893_v45 = vpack.c.bf16 %v2853_v42, %v2851_v59  ;;  %v2441_v4 = vpack.c.bf16 %v2401_v52, %v2399_v63  ;;  %v2404_v26 = vmul.f32 %v5865_v62, %v5563_v19  ;;  %v2406_v35 = vmul.f32 %v5865_v62, %v5569_v36 }
 0x140   : > { %2473 = vmatprep.subr.bf16.mxu0 %v2442_v11  ;;  %v2892_v56 = vpack.c.bf16 %v2852_v53, %v2850_v54  ;;  %v2749_v16 = vrot.slane %v5869_v57, %v4759_v7  ;;  %v2294_v1 = vrot.slane %v5849_v34, %v4757_v6  ;;  %v2745_v27 = vrot.slane %v5869_v57, %v4757_v6 }
 0x141   : > { %2924 = vmatprep.subr.bf16.mxu1 %v2893_v45  ;;  %v2444_v43 = vpack.c.bf16 %v2406_v35, %v2404_v26  ;;  %v2190_v61 = vrot.slane %v2162_v2, %v4783_v15  ;;  %v2613_v62 = vcombine.high %v5852_v51, %v5852_v51  ;;  %v2192_v48 = vcombine.high %v5849_v34, %v5849_v34 }
 0x142   : > { %2474 = vmatpush1.bf16.msra.mxu0 %v2441_v4  ;;  %2925 = vmatpush1.bf16.msra.mxu1 %v2892_v56  ;;  %v2855_v41 = vmul.f32 %v2749_v16, %v5603_v44  ;;  %v2857_v18 = vmul.f32 %v2749_v16, %v5607_v58  ;;  %v2403_v13 = vmul.f32 %v2294_v1, %v5593_v20  ;;  %v5945_v37 = vmax.f32 %v3413_v23, 0.0 }
 0x143   : > { %2475 = vmatprep.subr.bf16.mxu0 %v2444_v43  ;;  %v2405_v21 = vmul.f32 %v2294_v1, %v5597_v3  ;;  %v2854_v51 = vmul.f32 %v2745_v27, %v5601_v28  ;;  %v2856_v2 = vmul.f32 %v2745_v27, %v5605_v60  ;;  %v2306_v34 = vrot.slane %v2190_v61, %v4759_v7 }
 0x144   : > { %v2895_v46 = vpack.c.bf16 %v2857_v18, %v2855_v41  ;;  %v2641_v47 = vrot.slane %v2613_v62, %v4783_v15  ;;  %v2302_v59 = vrot.slane %v2190_v61, %v4757_v6  ;;  %v2314_v42 = vrot.slane %v2192_v48, %v4759_v7 }
 0x145   : > { %v2443_v63 = vpack.c.bf16 %v2405_v21, %v2403_v13  ;;  %v2894_v50 = vpack.c.bf16 %v2856_v2, %v2854_v51  ;;  %v2408_v23 = vmul.f32 %v2306_v34, %v5563_v19  ;;  %v2410_v52 = vmul.f32 %v2306_v34, %v5569_v36 }
 0x146   : > { %2926 = vmatprep.subr.bf16.mxu1 %v2895_v46  ;;  %v2757_v11 = vrot.slane %v2641_v47, %v4759_v7  ;;  %v2407_v54 = vmul.f32 %v2302_v59, %v5593_v20  ;;  %v2409_v53 = vmul.f32 %v2302_v59, %v5597_v3  ;;  %v2753_v45 = vrot.slane %v2641_v47, %v4757_v6 }
 0x147   : > { %2476 = vmatpush1.bf16.msra.mxu0 %v2443_v63  ;;  %2927 = vmatpush1.bf16.msra.mxu1 %v2894_v50  ;;  %v2446_v4 = vpack.c.bf16 %v2410_v52, %v2408_v23  ;;  %v2412_v26 = vmul.f32 %v2314_v42, %v5563_v19  ;;  %v2414_v35 = vmul.f32 %v2314_v42, %v5569_v36  ;;  %v5965_v56 = vand.u32 2147483647, %v2956_v8 }
 0x148   : > { %v2859_v16 = vmul.f32 %v2757_v11, %v5603_v44  ;;  %v2861_v1 = vmul.f32 %v2757_v11, %v5607_v58  ;;  %v2445_v27 = vpack.c.bf16 %v2409_v53, %v2407_v54  ;;  %v2858_v43 = vmul.f32 %v2753_v45, %v5601_v28 }
 0x149   : > { %2477 = vmatprep.subr.bf16.mxu0 %v2446_v4  ;;  %v2860_v62 = vmul.f32 %v2753_v45, %v5605_v60  ;;  %v2448_v41 = vpack.c.bf16 %v2414_v35, %v2412_v26  ;;  %v2643_v18 = vcombine.high %v5869_v57, %v5869_v57  ;;  %v2310_v13 = vrot.slane %v2192_v48, %v4757_v6 }
 0x14a   : > { %v2897_v21 = vpack.c.bf16 %v2861_v1, %v2859_v16  ;;  %v2194_v30 = vcombine.high %v2190_v61, %v2190_v61  ;;  %v2645_v8 = vcombine.high %v2641_v47, %v2641_v47  ;;  %v3005_v51 = vrot.slane %v2997_v24, %v4783_v15 }
 0x14b   : > { %2478 = vmatpush1.bf16.msra.mxu0 %v2445_v27  ;;  %v2896_v2 = vpack.c.bf16 %v2860_v62, %v2858_v43  ;;  %v2765_v34 = vrot.slane %v2643_v18, %v4759_v7  ;;  %v2411_v46 = vmul.f32 %v2310_v13, %v5593_v20  ;;  %v2413_v59 = vmul.f32 %v2310_v13, %v5597_v3 }
 0x14c   : > { %2928 = vmatprep.subr.bf16.mxu1 %v2897_v21  ;;  %2479 = vmatprep.subr.bf16.mxu0 %v2448_v41  ;;  %v2761_v57 = vrot.slane %v2643_v18, %v4757_v6  ;;  %v2322_v61 = vrot.slane %v2194_v30, %v4759_v7  ;;  %v2773_v48 = vrot.slane %v2645_v8, %v4759_v7  ;;  %v2963_v47 = vsub.f32 1.0, %v5843_v22 }
 0x14d   : > { %2929 = vmatpush1.bf16.msra.mxu1 %v2896_v2  ;;  %v2863_v24 = vmul.f32 %v2765_v34, %v5603_v44  ;;  %v2865_v42 = vmul.f32 %v2765_v34, %v5607_v58  ;;  %v2447_v63 = vpack.c.bf16 %v2413_v59, %v2411_v46  ;;  %v2318_v50 = vrot.slane %v2194_v30, %v4757_v6 }
 0x14e   : > { %v2862_v23 = vmul.f32 %v2761_v57, %v5601_v28  ;;  %v2864_v52 = vmul.f32 %v2761_v57, %v5605_v60  ;;  %v2416_v11 = vmul.f32 %v2322_v61, %v5563_v19  ;;  %v2418_v54 = vmul.f32 %v2322_v61, %v5569_v36 }
 0x14f   : > { %v2899_v53 = vpack.c.bf16 %v2865_v42, %v2863_v24  ;;  %2480 = vmatpush1.bf16.msra.mxu0 %v2447_v63  ;;  %v2867_v45 = vmul.f32 %v2773_v48, %v5603_v44  ;;  %v2869_v4 = vmul.f32 %v2773_v48, %v5607_v58  ;;  %v2415_v26 = vmul.f32 %v2318_v50, %v5593_v20 }
 0x150   : > { %v2898_v35 = vpack.c.bf16 %v2864_v52, %v2862_v23  ;;  %v2450_v16 = vpack.c.bf16 %v2418_v54, %v2416_v11  ;;  %v2417_v1 = vmul.f32 %v2318_v50, %v5597_v3  ;;  %v2769_v27 = vrot.slane %v2645_v8, %v4757_v6 }
 0x151   : > { %2930 = vmatprep.subr.bf16.mxu1 %v2899_v53  ;;  %v2901_v43 = vpack.c.bf16 %v2869_v4, %v2867_v45  ;;  %v3021_v19 = vrot.slane %v3005_v51, %v4783_v15  ;;  %v3448_v36 = vcombine.low %v5920_v14, %v5945_v37  ;;  %v3013_v62 = vcombine.high %v3005_v51, %v3005_v51 }
 0x152   : > { %2931 = vmatpush1.bf16.msra.mxu1 %v2898_v35  ;;  %2481 = vmatprep.subr.bf16.mxu0 %v2450_v16  ;;  %v2449_v44 = vpack.c.bf16 %v2417_v1, %v2415_v26  ;;  %v2866_v58 = vmul.f32 %v2769_v27, %v5601_v28  ;;  %v2868_v20 = vmul.f32 %v2769_v27, %v5605_v60  ;;  %v2964_v41 = vsub.f32 1.0, %v5965_v56 }
 0x153   : > { %2932 = vmatprep.subr.bf16.mxu1 %v2901_v43  ;;  %v3104_v3 = vrot.slane %v3021_v19, %v4759_v7  ;;  %v3456_v18 = vrot.slane %v3448_v36, %v4783_v15  ;;  %v3100_v13 = vrot.slane %v3021_v19, %v4757_v6  ;;  %v3035_v21 = vrot.slane %v3013_v62, %v4783_v15 }
 0x154   : > { %2482 = vmatpush1.bf16.msra.mxu0 %v2449_v44  ;;  %v2900_v30 = vpack.c.bf16 %v2868_v20, %v2866_v58  ;;  %v3043_v8 = vcombine.high %v3021_v19, %v3021_v19  ;;  %v2998_v51 = vcombine.high %v5838_v31, %v5840_v9  ;;  %v3449_v28 = vcombine.high %v5920_v14, %v5945_v37 }
 0x155   : > { %v3258_v60 = vmul.f32 %v3104_v3, %v5643_v5  ;;  %v3260_v2 = vmul.f32 %v3104_v3, %v5648_v49  ;;  %v3472_v34 = vrot.slane %v3456_v18, %v4783_v15  ;;  %v3257_v46 = vmul.f32 %v3100_v13, %v5617_v33 }
 0x156   : > { %2933 = vmatpush1.bf16.msra.mxu1 %v2900_v30  ;;  %v3259_v59 = vmul.f32 %v3100_v13, %v5645_v32  ;;  %v3112_v57 = vrot.slane %v3035_v21, %v4759_v7  ;;  %v3464_v61 = vcombine.high %v3456_v18, %v3456_v18  ;;  %v3108_v48 = vrot.slane %v3035_v21, %v4757_v6 }
 0x157   : > { %2484 = vmatmul.mubr.bf16.vlgmr.msra.gmra.mrb[8].mxu0 %v4829_v55  ;;  %v3322_v24 = vpack.c.bf16 %v3260_v2, %v3258_v60  ;;  %v3555_v42 = vrot.slane %v3472_v34, %v4759_v7  ;;  %v3551_v63 = vrot.slane %v3472_v34, %v4757_v6  ;;  %v3120_v50 = vrot.slane %v3043_v8, %v4759_v7 }
 0x158   : > { %v3321_v23 = vpack.c.bf16 %v3259_v59, %v3257_v46  ;;  %v3262_v52 = vmul.f32 %v3112_v57, %v5643_v5  ;;  %v3264_v11 = vmul.f32 %v3112_v57, %v5648_v49  ;;  %v3486_v54 = vrot.slane %v3464_v61, %v4783_v15  ;;  %3385 = vmatprep.mubr.bf16.mxu0 %v4787_v17 }
 0x159   : > { %2935 = vmatmul.mubr.bf16.vlgmr.msra.gmra.mrb[8].mxu1 %v4829_v55  ;;  %3353 = vmatprep.subr.bf16.mxu0 %v3322_v24  ;;  %v3709_v53 = vmul.f32 %v3555_v42, %v5751_v0  ;;  %v3711_v45 = vmul.f32 %v3555_v42, %v5828_v40  ;;  %v3708_v4 = vmul.f32 %v3551_v63, %v5734_v25  ;;  %v6032_v26 = vmax.f32 %v2963_v47, 0.0 }
 0x15a   : > { %3354 = vmatpush1.bf16.msra.mxu0 %v3321_v23  ;;  %v3710_v35 = vmul.f32 %v3551_v63, %v5782_v29  ;;  %v3324_v16 = vpack.c.bf16 %v3264_v11, %v3262_v52  ;;  %v3563_v1 = vrot.slane %v3486_v54, %v4759_v7  ;;  %v3261_v27 = vmul.f32 %v3108_v48, %v5617_v33 }
 0x15b   : > { %v3773_v43 = vpack.c.bf16 %v3711_v45, %v3709_v53  ;;  %v3263_v19 = vmul.f32 %v3108_v48, %v5645_v32  ;;  %v3559_v36 = vrot.slane %v3486_v54, %v4757_v6  ;;  %v3266_v62 = vmul.f32 %v3120_v50, %v5643_v5  ;;  %3836 = vmatprep.mubr.bf16.mxu1 %v4787_v17 }
 0x15c   : > { %v3772_v22 = vpack.c.bf16 %v3710_v35, %v3708_v4  ;;  %3355 = vmatprep.subr.bf16.mxu0 %v3324_v16  ;;  %v3713_v47 = vmul.f32 %v3563_v1, %v5751_v0  ;;  %v3715_v44 = vmul.f32 %v3563_v1, %v5828_v40  ;;  %v3268_v58 = vmul.f32 %v3120_v50, %v5648_v49 }
 0x15d   : > { %3804 = vmatprep.subr.bf16.mxu1 %v3773_v43  ;;  %v3323_v20 = vpack.c.bf16 %v3263_v19, %v3261_v27  ;;  %v3712_v3 = vmul.f32 %v3559_v36, %v5734_v25  ;;  %v3714_v18 = vmul.f32 %v3559_v36, %v5782_v29  ;;  %v3494_v13 = vcombine.high %v3472_v34, %v3472_v34 }
 0x15e   : > { %3805 = vmatpush1.bf16.msra.mxu1 %v3772_v22  ;;  %v3775_v30 = vpack.c.bf16 %v3715_v44, %v3713_v47  ;;  %v3326_v60 = vpack.c.bf16 %v3268_v58, %v3266_v62  ;;  %v3116_v2 = vrot.slane %v3043_v8, %v4757_v6  ;;  %v3045_v46 = vcombine.high %v3035_v21, %v3035_v21 }
 0x15f   : > { %3356 = vmatpush1.bf16.msra.mxu0 %v3323_v20  ;;  %v3774_v59 = vpack.c.bf16 %v3714_v18, %v3712_v3  ;;  %v3571_v57 = vrot.slane %v3494_v13, %v4759_v7  ;;  %v3567_v61 = vrot.slane %v3494_v13, %v4757_v6  ;;  %v3496_v48 = vcombine.high %v3486_v54, %v3486_v54 }
 0x160   : > { %3806 = vmatprep.subr.bf16.mxu1 %v3775_v30  ;;  %3357 = vmatprep.subr.bf16.mxu0 %v3326_v60  ;;  %v3265_v24 = vmul.f32 %v3116_v2, %v5617_v33  ;;  %v3267_v42 = vmul.f32 %v3116_v2, %v5645_v32  ;;  %v3128_v34 = vrot.slane %v3045_v46, %v4759_v7  ;;  %v6054_v63 = vmax.f32 %v2964_v41, 0.0 }
 0x161   : > { %v3717_v21 = vmul.f32 %v3571_v57, %v5751_v0  ;;  %v3719_v8 = vmul.f32 %v3571_v57, %v5828_v40  ;;  %v3716_v50 = vmul.f32 %v3567_v61, %v5734_v25  ;;  %v3718_v23 = vmul.f32 %v3567_v61, %v5782_v29 }
 0x162   : > { %3807 = vmatpush1.bf16.msra.mxu1 %v3774_v59  ;;  %v3325_v52 = vpack.c.bf16 %v3267_v42, %v3265_v24  ;;  %v3270_v11 = vmul.f32 %v3128_v34, %v5643_v5  ;;  %v3272_v54 = vmul.f32 %v3128_v34, %v5648_v49  ;;  %v3579_v53 = vrot.slane %v3496_v48, %v4759_v7 }
 0x163   : > { %v3777_v45 = vpack.c.bf16 %v3719_v8, %v3717_v21  ;;  %v3776_v56 = vpack.c.bf16 %v3718_v23, %v3716_v50  ;;  %v3124_v41 = vrot.slane %v3045_v46, %v4757_v6  ;;  %v3575_v4 = vrot.slane %v3496_v48, %v4757_v6 }
 0x164   : > { %3358 = vmatpush1.bf16.msra.mxu0 %v3325_v52  ;;  %v3328_v35 = vpack.c.bf16 %v3272_v54, %v3270_v11  ;;  %v3721_v16 = vmul.f32 %v3579_v53, %v5751_v0  ;;  %v3723_v1 = vmul.f32 %v3579_v53, %v5828_v40  ;;  %v3012_v27 = vrot.slane %v2998_v51, %v4783_v15 }
 0x165   : > { %3808 = vmatprep.subr.bf16.mxu1 %v3777_v45  ;;  %v3269_v43 = vmul.f32 %v3124_v41, %v5617_v33  ;;  %v3271_v19 = vmul.f32 %v3124_v41, %v5645_v32  ;;  %v3720_v36 = vmul.f32 %v3575_v4, %v5734_v25  ;;  %v3722_v62 = vmul.f32 %v3575_v4, %v5782_v29 }
 0x166   : > { %3809 = vmatpush1.bf16.msra.mxu1 %v3776_v56  ;;  %3359 = vmatprep.subr.bf16.mxu0 %v3328_v35  ;;  %v3779_v22 = vpack.c.bf16 %v3723_v1, %v3721_v16  ;;  %v3028_v47 = vrot.slane %v3012_v27, %v4783_v15  ;;  %v3463_v31 = vrot.slane %v3449_v28, %v4783_v15  ;;  %v6080_v9 = vpop.f32.mrb[0].mxu0 }
 0x167   : > { %v3327_v51 = vpack.c.bf16 %v3271_v19, %v3269_v43  ;;  %v3778_v44 = vpack.c.bf16 %v3722_v62, %v3720_v36  ;;  %v3014_v58 = vcombine.high %v3012_v27, %v3012_v27  ;;  %v3047_v20 = vcombine.low %v6032_v26, %v6054_v63  ;;  %v6084_v3 = vpop.f32.mrb[0].mxu1  ;;  %v6086_v18 = vpop.f32.mrb[1].mxu0 }
 0x168   : > { %3810 = vmatprep.subr.bf16.mxu1 %v3779_v22  ;;  %v3136_v13 = vrot.slane %v3028_v47, %v4759_v7  ;;  %v3479_v30 = vrot.slane %v3463_v31, %v4783_v15  ;;  %v3132_v14 = vrot.slane %v3028_v47, %v4757_v6  ;;  %v3465_v37 = vcombine.high %v3463_v31, %v3463_v31  ;;  %v6091_v28 = vpop.f32.mrb[1].mxu1  ;;  %v685_v60 = vpop.f32.mrb[2].mxu0 }
 0x169   : > { %3360 = vmatpush1.bf16.msra.mxu0 %v3327_v51  ;;  %v3042_v2 = vrot.slane %v3014_v58, %v4783_v15  ;;  %v3044_v46 = vcombine.high %v3028_v47, %v3028_v47  ;;  %v6095_v59 = vrot.slane %v3047_v20, %v4783_v15  ;;  %v3406_v57 = vsub.f32 %v4775_v12, %v5810_v38  ;;  %v686_v61 = vpop.f32.mrb[3].mxu0  ;;  %v1136_v48 = vpop.f32.mrb[2].mxu1 }
 0x16a   : > { %3811 = vmatpush1.bf16.msra.mxu1 %v3778_v44  ;;  %v3274_v24 = vmul.f32 %v3136_v13, %v5643_v5  ;;  %v3276_v42 = vmul.f32 %v3136_v13, %v5648_v49  ;;  %v3587_v34 = vrot.slane %v3479_v30, %v4759_v7  ;;  %v3273_v21 = vmul.f32 %v3132_v14, %v5617_v33  ;;  %v1137_v8 = vpop.f32.mrb[3].mxu1 }
 0x16b   : > { %v3275_v50 = vmul.f32 %v3132_v14, %v5645_v32  ;;  %v3583_v23 = vrot.slane %v3479_v30, %v4757_v6  ;;  %v3144_v52 = vrot.slane %v3042_v2, %v4759_v7  ;;  %v3493_v11 = vrot.slane %v3465_v37, %v4783_v15 }
 0x16c   : > { %v3330_v54 = vpack.c.bf16 %v3276_v42, %v3274_v24  ;;  %v3725_v53 = vmul.f32 %v3587_v34, %v5751_v0  ;;  %v3727_v45 = vmul.f32 %v3587_v34, %v5828_v40  ;;  %v3140_v56 = vrot.slane %v3042_v2, %v4757_v6 }
 0x16d   : > { %v3329_v41 = vpack.c.bf16 %v3275_v50, %v3273_v21  ;;  %v3724_v4 = vmul.f32 %v3583_v23, %v5734_v25  ;;  %v3726_v35 = vmul.f32 %v3583_v23, %v5782_v29  ;;  %v3278_v16 = vmul.f32 %v3144_v52, %v5643_v5 }
 0x16e   : > { %3361 = vmatprep.subr.bf16.mxu0 %v3330_v54  ;;  %v3781_v1 = vpack.c.bf16 %v3727_v45, %v3725_v53  ;;  %v3280_v27 = vmul.f32 %v3144_v52, %v5648_v49  ;;  %v3595_v43 = vrot.slane %v3493_v11, %v4759_v7  ;;  %v3277_v19 = vmul.f32 %v3140_v56, %v5617_v33 }
 0x16f   : > { %3362 = vmatpush1.bf16.msra.mxu0 %v3329_v41  ;;  %v3780_v36 = vpack.c.bf16 %v3726_v35, %v3724_v4  ;;  %v3279_v62 = vmul.f32 %v3140_v56, %v5645_v32  ;;  %v3591_v22 = vrot.slane %v3493_v11, %v4757_v6  ;;  %v3152_v47 = vrot.slane %v3044_v46, %v4759_v7 }
 0x170   : > { %3812 = vmatprep.subr.bf16.mxu1 %v3781_v1  ;;  %v3332_v31 = vpack.c.bf16 %v3280_v27, %v3278_v16  ;;  %v3729_v51 = vmul.f32 %v3595_v43, %v5751_v0  ;;  %v3731_v44 = vmul.f32 %v3595_v43, %v5828_v40  ;;  %v3495_v58 = vcombine.high %v3479_v30, %v3479_v30 }
 0x171   : > { %3813 = vmatpush1.bf16.msra.mxu1 %v3780_v36  ;;  %v3331_v20 = vpack.c.bf16 %v3279_v62, %v3277_v19  ;;  %v3728_v13 = vmul.f32 %v3591_v22, %v5734_v25  ;;  %v3730_v14 = vmul.f32 %v3591_v22, %v5782_v29  ;;  %v3282_v37 = vmul.f32 %v3152_v47, %v5643_v5 }
 0x172   : > { %3363 = vmatprep.subr.bf16.mxu0 %v3332_v31  ;;  %v3783_v60 = vpack.c.bf16 %v3731_v44, %v3729_v51  ;;  %v3284_v61 = vmul.f32 %v3152_v47, %v5648_v49  ;;  %v3603_v48 = vrot.slane %v3495_v58, %v4759_v7  ;;  %v3148_v24 = vrot.slane %v3044_v46, %v4757_v6 }
 0x173   : > { %3364 = vmatpush1.bf16.msra.mxu0 %v3331_v20  ;;  %v3782_v42 = vpack.c.bf16 %v3730_v14, %v3728_v13  ;;  %v3599_v30 = vrot.slane %v3495_v58, %v4757_v6  ;;  %v3046_v34 = vcombine.high %v3042_v2, %v3042_v2  ;;  %v3497_v21 = vcombine.high %v3493_v11, %v3493_v11  ;;  %v6154_v13 = vld [vmem:[%s4771_s7 + $0x20] sm:$0x3] }
 0x174   : > { %3814 = vmatprep.subr.bf16.mxu1 %v3783_v60  ;;  %v3334_v8 = vpack.c.bf16 %v3284_v61, %v3282_v37  ;;  %v3733_v50 = vmul.f32 %v3603_v48, %v5751_v0  ;;  %v3735_v23 = vmul.f32 %v3603_v48, %v5828_v40  ;;  %v3281_v52 = vmul.f32 %v3148_v24, %v5617_v33 }
 0x175   : > { %3815 = vmatpush1.bf16.msra.mxu1 %v3782_v42  ;;  %v3283_v54 = vmul.f32 %v3148_v24, %v5645_v32  ;;  %v3732_v53 = vmul.f32 %v3599_v30, %v5734_v25  ;;  %v3734_v46 = vmul.f32 %v3599_v30, %v5782_v29  ;;  %v3160_v45 = vrot.slane %v3046_v34, %v4759_v7 }
 0x176   : > { %3365 = vmatprep.subr.bf16.mxu0 %v3334_v8  ;;  %v3785_v2 = vpack.c.bf16 %v3735_v23, %v3733_v50  ;;  %v3611_v11 = vrot.slane %v3497_v21, %v4759_v7  ;;  %v3156_v56 = vrot.slane %v3046_v34, %v4757_v6  ;;  %v3607_v41 = vrot.slane %v3497_v21, %v4757_v6 }
 0x177   : > { %v3333_v4 = vpack.c.bf16 %v3283_v54, %v3281_v52  ;;  %v3784_v35 = vpack.c.bf16 %v3734_v46, %v3732_v53  ;;  %v3286_v16 = vmul.f32 %v3160_v45, %v5643_v5  ;;  %v3288_v1 = vmul.f32 %v3160_v45, %v5648_v49 }
 0x178   : > { %3816 = vmatprep.subr.bf16.mxu1 %v3785_v2  ;;  %v3737_v27 = vmul.f32 %v3611_v11, %v5751_v0  ;;  %v3739_v43 = vmul.f32 %v3611_v11, %v5828_v40  ;;  %v3285_v19 = vmul.f32 %v3156_v56, %v5617_v33  ;;  %v3287_v36 = vmul.f32 %v3156_v56, %v5645_v32 }
 0x179   : > { %3366 = vmatpush1.bf16.msra.mxu0 %v3333_v4  ;;  %3817 = vmatpush1.bf16.msra.mxu1 %v3784_v35  ;;  %v3336_v62 = vpack.c.bf16 %v3288_v1, %v3286_v16  ;;  %v3736_v22 = vmul.f32 %v3607_v41, %v5734_v25  ;;  %v3738_v47 = vmul.f32 %v3607_v41, %v5782_v29  ;;  %v3410_v31 = vand.u32 2147483647, %v3406_v57 }
 0x17a   : > { %v3787_v51 = vpack.c.bf16 %v3739_v43, %v3737_v27  ;;  %v3335_v44 = vpack.c.bf16 %v3287_v36, %v3285_v19  ;;  %v3071_v58 = vrot.slane %v6095_v59, %v4783_v15  ;;  %v3407_v20 = vsub.f32 %v4775_v12, %v5815_v39 }
 0x17b   : > { %3367 = vmatprep.subr.bf16.mxu0 %v3336_v62  ;;  %v3786_v14 = vpack.c.bf16 %v3738_v47, %v3736_v22  ;;  %v3414_v37 = vsub.f32 1.0, %v3410_v31  ;;  %v3063_v60 = vcombine.high %v6095_v59, %v6095_v59  ;;  %v3048_v38 = vcombine.high %v6032_v26, %v6054_v63 }
 0x17c   : > { %3818 = vmatprep.subr.bf16.mxu1 %v3787_v51  ;;  %v3168_v57 = vrot.slane %v3071_v58, %v4759_v7  ;;  %v3411_v61 = vand.u32 2147483647, %v3407_v20  ;;  %v3164_v48 = vrot.slane %v3071_v58, %v4757_v6  ;;  %v3093_v24 = vcombine.high %v3071_v58, %v3071_v58 }
 0x17d   : > { %3368 = vmatpush1.bf16.msra.mxu0 %v3335_v44  ;;  %3819 = vmatpush1.bf16.msra.mxu1 %v3786_v14  ;;  %v3418_v39 = vmax.f32 %v3414_v37, 0.0  ;;  %v3085_v42 = vrot.slane %v3063_v60, %v4783_v15  ;;  %v6164_v30 = vrot.slane %v3048_v38, %v4783_v15  ;;  %v6168_v59 = vrot.slane %v6154_v13, %v4757_v6 }
 0x17e   : > { %v3290_v26 = vmul.f32 %v3168_v57, %v5643_v5  ;;  %v3292_v63 = vmul.f32 %v3168_v57, %v5648_v49  ;;  %v3415_v34 = vsub.f32 1.0, %v3411_v61  ;;  %v3289_v21 = vmul.f32 %v3164_v48, %v5617_v33 }
 0x17f   : > { %v3291_v8 = vmul.f32 %v3164_v48, %v5645_v32  ;;  %v3176_v50 = vrot.slane %v3085_v42, %v4759_v7  ;;  %v3172_v23 = vrot.slane %v3085_v42, %v4757_v6  ;;  %v3184_v52 = vrot.slane %v3093_v24, %v4759_v7 }
 0x180   : > { %v3338_v54 = vpack.c.bf16 %v3292_v63, %v3290_v26  ;;  %v3419_v53 = vmax.f32 %v3415_v34, 0.0  ;;  %v3180_v46 = vrot.slane %v3093_v24, %v4757_v6  ;;  %v3095_v45 = vcombine.high %v3085_v42, %v3085_v42 }
 0x181   : > { %v3337_v2 = vpack.c.bf16 %v3291_v8, %v3289_v21  ;;  %v3294_v11 = vmul.f32 %v3176_v50, %v5643_v5  ;;  %v3296_v56 = vmul.f32 %v3176_v50, %v5648_v49  ;;  %v3293_v41 = vmul.f32 %v3172_v23, %v5617_v33 }
 0x182   : > { %3369 = vmatprep.subr.bf16.mxu0 %v3338_v54  ;;  %v3498_v4 = vcombine.low %v3418_v39, %v3419_v53  ;;  %v3295_v35 = vmul.f32 %v3172_v23, %v5645_v32  ;;  %v3298_v16 = vmul.f32 %v3184_v52, %v5643_v5  ;;  %v3300_v1 = vmul.f32 %v3184_v52, %v5648_v49 }
 0x183   : > { %3370 = vmatpush1.bf16.msra.mxu0 %v3337_v2  ;;  %v3340_v27 = vpack.c.bf16 %v3296_v56, %v3294_v11  ;;  %v3297_v43 = vmul.f32 %v3180_v46, %v5617_v33  ;;  %v3299_v19 = vmul.f32 %v3180_v46, %v5645_v32  ;;  %v3192_v36 = vrot.slane %v3095_v45, %v4759_v7 }
 0x184   : > { %v3506_v62 = vrot.slane %v3498_v4, %v4783_v15  ;;  %v3339_v22 = vpack.c.bf16 %v3295_v35, %v3293_v41  ;;  %v3342_v47 = vpack.c.bf16 %v3300_v1, %v3298_v16  ;;  %v3188_v31 = vrot.slane %v3095_v45, %v4757_v6 }
 0x185   : > { %3371 = vmatprep.subr.bf16.mxu0 %v3340_v27  ;;  %v3341_v51 = vpack.c.bf16 %v3299_v19, %v3297_v43  ;;  %v3302_v44 = vmul.f32 %v3192_v36, %v5643_v5  ;;  %v3304_v58 = vmul.f32 %v3192_v36, %v5648_v49  ;;  %v6193_v20 = vrot.slane %v6164_v30, %v4783_v15 }
 0x186   : > { %v3522_v14 = vrot.slane %v3506_v62, %v4783_v15  ;;  %v3514_v37 = vcombine.high %v3506_v62, %v3506_v62  ;;  %v3301_v60 = vmul.f32 %v3188_v31, %v5617_v33  ;;  %v3303_v38 = vmul.f32 %v3188_v31, %v5645_v32 }
 0x187   : > { %3372 = vmatpush1.bf16.msra.mxu0 %v3339_v22  ;;  %v3344_v57 = vpack.c.bf16 %v3304_v58, %v3302_v44  ;;  %v3200_v61 = vrot.slane %v6193_v20, %v4759_v7  ;;  %v3499_v48 = vcombine.high %v3418_v39, %v3419_v53  ;;  %v3196_v24 = vrot.slane %v6193_v20, %v4757_v6 }
 0x188   : > { %v3619_v42 = vrot.slane %v3522_v14, %v4759_v7  ;;  %v3615_v26 = vrot.slane %v3522_v14, %v4757_v6  ;;  %v3536_v63 = vrot.slane %v3514_v37, %v4783_v15  ;;  %3373 = vmatprep.subr.bf16.mxu0 %v3342_v47  ;;  %v3544_v34 = vcombine.high %v3522_v14, %v3522_v14 }
 0x189   : > { %v3343_v21 = vpack.c.bf16 %v3303_v38, %v3301_v60  ;;  %v3306_v8 = vmul.f32 %v3200_v61, %v5643_v5  ;;  %v3308_v50 = vmul.f32 %v3200_v61, %v5648_v49  ;;  %v3513_v23 = vrot.slane %v3499_v48, %v4783_v15 }
 0x18a   : > { %v3741_v39 = vmul.f32 %v3619_v42, %v5751_v0  ;;  %v3743_v52 = vmul.f32 %v3619_v42, %v5828_v40  ;;  %v3740_v54 = vmul.f32 %v3615_v26, %v5734_v25  ;;  %v3742_v53 = vmul.f32 %v3615_v26, %v5782_v29 }
 0x18b   : > { %v3627_v46 = vrot.slane %v3536_v63, %v4759_v7  ;;  %v3623_v45 = vrot.slane %v3536_v63, %v4757_v6  ;;  %v3635_v2 = vrot.slane %v3544_v34, %v4759_v7  ;;  %3374 = vmatpush1.bf16.msra.mxu0 %v3341_v51  ;;  %v3631_v11 = vrot.slane %v3544_v34, %v4757_v6 }
 0x18c   : > { %v3789_v56 = vpack.c.bf16 %v3743_v52, %v3741_v39  ;;  %v3788_v41 = vpack.c.bf16 %v3742_v53, %v3740_v54  ;;  %3375 = vmatprep.subr.bf16.mxu0 %v3344_v57  ;;  %v3546_v4 = vcombine.high %v3536_v63, %v3536_v63  ;;  %v3346_v35 = vpack.c.bf16 %v3308_v50, %v3306_v8  ;;  %v6238_v39 = vld [vmem:[%s4771_s7 + $0x28] sm:$0x3] }
 0x18d   : > { %v3745_v16 = vmul.f32 %v3627_v46, %v5751_v0  ;;  %v3747_v1 = vmul.f32 %v3627_v46, %v5828_v40  ;;  %v3744_v27 = vmul.f32 %v3623_v45, %v5734_v25  ;;  %v3746_v43 = vmul.f32 %v3623_v45, %v5782_v29 }
 0x18e   : > { %3820 = vmatprep.subr.bf16.mxu1 %v3789_v56  ;;  %v3749_v19 = vmul.f32 %v3635_v2, %v5751_v0  ;;  %v3751_v36 = vmul.f32 %v3635_v2, %v5828_v40  ;;  %v3748_v62 = vmul.f32 %v3631_v11, %v5734_v25  ;;  %v3750_v22 = vmul.f32 %v3631_v11, %v5782_v29 }
 0x18f   : > { %3821 = vmatpush1.bf16.msra.mxu1 %v3788_v41  ;;  %v3791_v47 = vpack.c.bf16 %v3747_v1, %v3745_v16  ;;  %v3790_v31 = vpack.c.bf16 %v3746_v43, %v3744_v27  ;;  %v3643_v51 = vrot.slane %v3546_v4, %v4759_v7  ;;  %3376 = vmatpush1.bf16.msra.mxu0 %v3343_v21 }
 0x190   : > { %v3793_v44 = vpack.c.bf16 %v3751_v36, %v3749_v19  ;;  %v3792_v58 = vpack.c.bf16 %v3750_v22, %v3748_v62  ;;  %v3639_v14 = vrot.slane %v3546_v4, %v4757_v6  ;;  %3377 = vmatprep.subr.bf16.mxu0 %v3346_v35  ;;  %v3529_v37 = vrot.slane %v3513_v23, %v4783_v15 }
 0x191   : > { %3822 = vmatprep.subr.bf16.mxu1 %v3791_v47  ;;  %v3753_v60 = vmul.f32 %v3643_v51, %v5751_v0  ;;  %v3755_v38 = vmul.f32 %v3643_v51, %v5828_v40  ;;  %v3305_v57 = vmul.f32 %v3196_v24, %v5617_v33  ;;  %v3307_v61 = vmul.f32 %v3196_v24, %v5645_v32 }
 0x192   : > { %v3752_v48 = vmul.f32 %v3639_v14, %v5734_v25  ;;  %v3754_v42 = vmul.f32 %v3639_v14, %v5782_v29  ;;  %v3651_v26 = vrot.slane %v3529_v37, %v4759_v7  ;;  %v3647_v63 = vrot.slane %v3529_v37, %v4757_v6 }
 0x193   : > { %3823 = vmatpush1.bf16.msra.mxu1 %v3790_v31  ;;  %v3795_v34 = vpack.c.bf16 %v3755_v38, %v3753_v60  ;;  %v3345_v21 = vpack.c.bf16 %v3307_v61, %v3305_v57  ;;  %v3064_v8 = vcombine.high %v6164_v30, %v6164_v30  ;;  %v3515_v50 = vcombine.high %v3513_v23, %v3513_v23 }
 0x194   : > { %3824 = vmatprep.subr.bf16.mxu1 %v3793_v44  ;;  %v3794_v52 = vpack.c.bf16 %v3754_v42, %v3752_v48  ;;  %v3757_v24 = vmul.f32 %v3651_v26, %v5751_v0  ;;  %v3759_v54 = vmul.f32 %v3651_v26, %v5828_v40  ;;  %v3756_v53 = vmul.f32 %v3647_v63, %v5734_v25 }
 0x195   : > { %3378 = vmatpush1.bf16.msra.mxu0 %v3345_v21  ;;  %v3758_v46 = vmul.f32 %v3647_v63, %v5782_v29  ;;  %v3092_v45 = vrot.slane %v3064_v8, %v4783_v15  ;;  %v3543_v2 = vrot.slane %v3515_v50, %v4783_v15  ;;  %v3094_v30 = vcombine.high %v6193_v20, %v6193_v20 }
 0x196   : > { %v3797_v23 = vpack.c.bf16 %v3759_v54, %v3757_v24  ;;  %v3545_v11 = vcombine.high %v3529_v37, %v3529_v37  ;;  %v6250_v56 = vrot.slane %v6238_v39, %v4757_v6  ;;  %v3855_v41 = vsub.f32 %v4773_v10, %v6168_v59 }
 0x197   : > { %3825 = vmatpush1.bf16.msra.mxu1 %v3792_v58  ;;  %v3796_v4 = vpack.c.bf16 %v3758_v46, %v3756_v53  ;;  %v3208_v35 = vrot.slane %v3092_v45, %v4759_v7  ;;  %v3659_v16 = vrot.slane %v3543_v2, %v4759_v7  ;;  %v3204_v1 = vrot.slane %v3092_v45, %v4757_v6 }
 0x198   : > { %3826 = vmatprep.subr.bf16.mxu1 %v3795_v34  ;;  %v3655_v20 = vrot.slane %v3543_v2, %v4757_v6  ;;  %v3216_v27 = vrot.slane %v3094_v30, %v4759_v7  ;;  %v3667_v43 = vrot.slane %v3545_v11, %v4759_v7  ;;  %v3212_v19 = vrot.slane %v3094_v30, %v4757_v6 }
 0x199   : > { %v3310_v36 = vmul.f32 %v3208_v35, %v5643_v5  ;;  %v3312_v62 = vmul.f32 %v3208_v35, %v5648_v49  ;;  %v3761_v22 = vmul.f32 %v3659_v16, %v5751_v0  ;;  %v3763_v47 = vmul.f32 %v3659_v16, %v5828_v40 }
 0x19a   : > { %v3309_v31 = vmul.f32 %v3204_v1, %v5617_v33  ;;  %v3311_v51 = vmul.f32 %v3204_v1, %v5645_v32  ;;  %v3760_v44 = vmul.f32 %v3655_v20, %v5734_v25  ;;  %v3762_v58 = vmul.f32 %v3655_v20, %v5782_v29 }
 0x19b   : > { %3827 = vmatpush1.bf16.msra.mxu1 %v3794_v52  ;;  %v3348_v14 = vpack.c.bf16 %v3312_v62, %v3310_v36  ;;  %v3799_v37 = vpack.c.bf16 %v3763_v47, %v3761_v22  ;;  %v3314_v60 = vmul.f32 %v3216_v27, %v5643_v5  ;;  %v3316_v38 = vmul.f32 %v3216_v27, %v5648_v49 }
 0x19c   : > { %3828 = vmatprep.subr.bf16.mxu1 %v3797_v23  ;;  %v3347_v57 = vpack.c.bf16 %v3311_v51, %v3309_v31  ;;  %v3798_v61 = vpack.c.bf16 %v3762_v58, %v3760_v44  ;;  %v3765_v48 = vmul.f32 %v3667_v43, %v5751_v0  ;;  %v3767_v42 = vmul.f32 %v3667_v43, %v5828_v40 }
 0x19d   : > { %3379 = vmatprep.subr.bf16.mxu0 %v3348_v14  ;;  %v3350_v26 = vpack.c.bf16 %v3316_v38, %v3314_v60  ;;  %v3313_v63 = vmul.f32 %v3212_v19, %v5617_v33  ;;  %v3315_v34 = vmul.f32 %v3212_v19, %v5645_v32  ;;  %v3663_v21 = vrot.slane %v3545_v11, %v4757_v6 }
 0x19e   : > { %3380 = vmatpush1.bf16.msra.mxu0 %v3347_v57  ;;  %v3801_v8 = vpack.c.bf16 %v3767_v42, %v3765_v48  ;;  %v3096_v50 = vcombine.high %v3092_v45, %v3092_v45  ;;  %v3547_v52 = vcombine.high %v3543_v2, %v3543_v2  ;;  %v3856_v24 = vsub.f32 %v4773_v10, %v6250_v56 }
 0x19f   : > { %3829 = vmatpush1.bf16.msra.mxu1 %v3796_v4  ;;  %3381 = vmatprep.subr.bf16.mxu0 %v3350_v26  ;;  %v3349_v54 = vpack.c.bf16 %v3315_v34, %v3313_v63  ;;  %v3764_v53 = vmul.f32 %v3663_v21, %v5734_v25  ;;  %v3766_v46 = vmul.f32 %v3663_v21, %v5782_v29  ;;  %v3859_v30 = vand.u32 2147483647, %v3855_v41 }
 0x1a0   : > { %3830 = vmatprep.subr.bf16.mxu1 %v3799_v37  ;;  %v3224_v23 = vrot.slane %v3096_v50, %v4759_v7  ;;  %v3675_v11 = vrot.slane %v3547_v52, %v4759_v7  ;;  %v3220_v35 = vrot.slane %v3096_v50, %v4757_v6  ;;  %v3671_v45 = vrot.slane %v3547_v52, %v4757_v6 }
 0x1a1   : > { %v3800_v2 = vpack.c.bf16 %v3766_v46, %v3764_v53  ;;  %v3860_v16 = vand.u32 2147483647, %v3856_v24  ;;  %v3863_v1 = vsub.f32 1.0, %v3859_v30  ;;  %v3874_v4 = vrot.slane %v6154_v13, %v4759_v7 }
 0x1a2   : > { %3382 = vmatpush1.bf16.msra.mxu0 %v3349_v54  ;;  %v3318_v20 = vmul.f32 %v3224_v23, %v5643_v5  ;;  %v3320_v41 = vmul.f32 %v3224_v23, %v5648_v49  ;;  %v3769_v27 = vmul.f32 %v3675_v11, %v5751_v0  ;;  %v3771_v43 = vmul.f32 %v3675_v11, %v5828_v40 }
 0x1a3   : > { %3831 = vmatpush1.bf16.msra.mxu1 %v3798_v61  ;;  %v3317_v19 = vmul.f32 %v3220_v35, %v5617_v33  ;;  %v3319_v36 = vmul.f32 %v3220_v35, %v5645_v32  ;;  %v3768_v62 = vmul.f32 %v3671_v45, %v5734_v25  ;;  %v3770_v22 = vmul.f32 %v3671_v45, %v5782_v29 }
 0x1a4   : > { %3832 = vmatprep.subr.bf16.mxu1 %v3801_v8  ;;  %v3352_v13 = vpack.c.bf16 %v3320_v41, %v3318_v20  ;;  %v3803_v47 = vpack.c.bf16 %v3771_v43, %v3769_v27  ;;  %v3864_v31 = vsub.f32 1.0, %v3860_v16  ;;  %v3867_v5 = vmax.f32 %v3863_v1, 0.0 }
 0x1a5   : > { %v3351_v51 = vpack.c.bf16 %v3319_v36, %v3317_v19  ;;  %v3878_v49 = vrot.slane %v6238_v39, %v4759_v7  ;;  %v3879_v0 = vsub.f32 %v4773_v10, %v3874_v4  ;;  %v3881_v33 = vsub.f32 %v4775_v12, %v3874_v4 }
 0x1a6   : > { %3383 = vmatprep.subr.bf16.mxu0 %v3352_v13  ;;  %v3868_v40 = vmax.f32 %v3864_v31, 0.0  ;;  %v4523_v32 = vpack.c.bf16 %v6084_v3, %v6080_v9  ;;  %v4521_v25 = vpack.c.bf16 %v6091_v28, %v6086_v18  ;;  %v3802_v29 = vpack.c.bf16 %v3770_v22, %v3768_v62 }
 0x1a7   : > { %3833 = vmatpush1.bf16.msra.mxu1 %v3800_v2  ;;  %3384 = vmatpush1.bf16.msra.mxu0 %v3351_v51  ;;  %v3880_v44 = vsub.f32 %v4773_v10, %v3878_v49  ;;  %v3882_v58 = vsub.f32 %v4775_v12, %v3878_v49  ;;  %v3883_v39 = vand.u32 2147483647, %v3879_v0  ;;  %v3885_v14 = vand.u32 2147483647, %v3881_v33 }
 0x1a8   : > { %3834 = vmatprep.subr.bf16.mxu1 %v3803_v47  ;;  %v3899_v37 = vcombine.low %v3867_v5, %v3868_v40  ;;  %v3900_v60 = vcombine.high %v3867_v5, %v3868_v40  ;;  %v3857_v48 = vsub.f32 %v4775_v12, %v6168_v59  ;;  %v3858_v53 = vsub.f32 %v4775_v12, %v6250_v56 }
 0x1a9   : > { %v3884_v38 = vand.u32 2147483647, %v3880_v44  ;;  %v3886_v57 = vand.u32 2147483647, %v3882_v58  ;;  %v3887_v61 = vsub.f32 1.0, %v3883_v39  ;;  %v3889_v9 = vsub.f32 1.0, %v3885_v14 }
 0x1aa   : > { %3386 = vmatmul.mubr.bf16.vlgmr.msra.gmra.mrb[12].mxu0 %v4829_v55  ;;  %v3907_v3 = vrot.slane %v3899_v37, %v4783_v15  ;;  %v3914_v18 = vrot.slane %v3900_v60, %v4783_v15  ;;  %v3861_v46 = vand.u32 2147483647, %v3857_v48 }
 0x1ab   : > { %3835 = vmatpush1.bf16.msra.mxu1 %v3802_v29  ;;  %v3888_v28 = vsub.f32 1.0, %v3884_v38  ;;  %v3890_v10 = vsub.f32 1.0, %v3886_v57  ;;  %4287 = vmatprep.mubr.bf16.mxu0 %v4787_v17  ;;  %v6310_v42 = vmax.f32 %v3887_v61, 0.0  ;;  %v6312_v26 = vmax.f32 %v3889_v9, 0.0 }
 0x1ac   : > { %v3923_v63 = vrot.slane %v3907_v3, %v4783_v15  ;;  %v3915_v34 = vcombine.high %v3907_v3, %v3907_v3  ;;  %4522 = vmatprep.subr.bf16.mxu1 %v4521_v25  ;;  %v3930_v50 = vrot.slane %v3914_v18, %v4783_v15  ;;  %v3916_v54 = vcombine.high %v3914_v18, %v3914_v18 }
 0x1ad   : > { %v6315_v21 = vmax.f32 %v3888_v28, 0.0  ;;  %v6317_v8 = vmax.f32 %v3890_v10, 0.0  ;;  %v3865_v58 = vsub.f32 1.0, %v3861_v46 }
 0x1ae   : > { %3837 = vmatmul.mubr.bf16.vlgmr.msra.gmra.mrb[12].mxu1 %v4829_v55  ;;  %v4006_v59 = vrot.slane %v3923_v63, %v4759_v7  ;;  %v4002_v17 = vrot.slane %v3923_v63, %v4757_v6  ;;  %v3937_v52 = vrot.slane %v3915_v34, %v4783_v15  ;;  %v3945_v24 = vcombine.high %v3923_v63, %v3923_v63 }
 0x1af   : > { %4524 = vmatpush1.bf16.msra.mxu1 %v4523_v32  ;;  %v4038_v56 = vrot.slane %v3930_v50, %v4759_v7  ;;  %v3944_v0 = vrot.slane %v3916_v54, %v4783_v15  ;;  %v3862_v32 = vand.u32 2147483647, %v3858_v53  ;;  %v4034_v44 = vrot.slane %v3930_v50, %v4757_v6 }
 0x1b0   : > { %v4160_v30 = vmul.f32 %v4006_v59, %v6315_v21  ;;  %v4162_v23 = vmul.f32 %v4006_v59, %v6317_v8  ;;  %v4159_v11 = vmul.f32 %v4002_v17, %v6310_v42  ;;  %v4161_v35 = vmul.f32 %v4002_v17, %v6312_v26 }
 0x1b1   : > { %v4014_v45 = vrot.slane %v3937_v52, %v4759_v7  ;;  %v4010_v2 = vrot.slane %v3937_v52, %v4757_v6  ;;  %v4022_v16 = vrot.slane %v3945_v24, %v4759_v7  ;;  %v4018_v1 = vrot.slane %v3945_v24, %v4757_v6 }
 0x1b2   : > { %v4224_v4 = vpack.c.bf16 %v4162_v23, %v4160_v30  ;;  %v4223_v20 = vpack.c.bf16 %v4161_v35, %v4159_v11  ;;  %v3947_v12 = vcombine.high %v3937_v52, %v3937_v52  ;;  %v4176_v25 = vmul.f32 %v4038_v56, %v6315_v21 }
 0x1b3   : > { %v4164_v41 = vmul.f32 %v4014_v45, %v6315_v21  ;;  %v4166_v27 = vmul.f32 %v4014_v45, %v6317_v8  ;;  %v4163_v43 = vmul.f32 %v4010_v2, %v6310_v42  ;;  %v4165_v19 = vmul.f32 %v4010_v2, %v6312_v26 }
 0x1b4   : > { %4255 = vmatprep.subr.bf16.mxu0 %v4224_v4  ;;  %v4168_v36 = vmul.f32 %v4022_v16, %v6315_v21  ;;  %v4170_v62 = vmul.f32 %v4022_v16, %v6317_v8  ;;  %v4167_v22 = vmul.f32 %v4018_v1, %v6310_v42  ;;  %v4169_v13 = vmul.f32 %v4018_v1, %v6312_v26 }
 0x1b5   : > { %4256 = vmatpush1.bf16.msra.mxu0 %v4223_v20  ;;  %v4226_v47 = vpack.c.bf16 %v4166_v27, %v4164_v41  ;;  %v4225_v31 = vpack.c.bf16 %v4165_v19, %v4163_v43  ;;  %v4030_v5 = vrot.slane %v3947_v12, %v4759_v7  ;;  %v4026_v51 = vrot.slane %v3947_v12, %v4757_v6 }
 0x1b6   : > { %v4228_v49 = vpack.c.bf16 %v4170_v62, %v4168_v36  ;;  %v4178_v29 = vmul.f32 %v4038_v56, %v6317_v8  ;;  %v4227_v39 = vpack.c.bf16 %v4169_v13, %v4167_v22  ;;  %v3946_v60 = vcombine.high %v3930_v50, %v3930_v50 }
 0x1b7   : > { %4257 = vmatprep.subr.bf16.mxu0 %v4226_v47  ;;  %v4172_v40 = vmul.f32 %v4030_v5, %v6315_v21  ;;  %v4174_v33 = vmul.f32 %v4030_v5, %v6317_v8  ;;  %v4171_v14 = vmul.f32 %v4026_v51, %v6310_v42  ;;  %v4173_v37 = vmul.f32 %v4026_v51, %v6312_v26 }
 0x1b8   : > { %v4046_v57 = vrot.slane %v3944_v0, %v4759_v7  ;;  %v4232_v61 = vpack.c.bf16 %v4178_v29, %v4176_v25  ;;  %v4175_v9 = vmul.f32 %v4034_v44, %v6310_v42  ;;  %v4177_v3 = vmul.f32 %v4034_v44, %v6312_v26 }
 0x1b9   : > { %4258 = vmatpush1.bf16.msra.mxu0 %v4225_v31  ;;  %v4230_v38 = vpack.c.bf16 %v4174_v33, %v4172_v40  ;;  %v3866_v18 = vsub.f32 1.0, %v3862_v32  ;;  %v4229_v28 = vpack.c.bf16 %v4173_v37, %v4171_v14  ;;  %v4042_v10 = vrot.slane %v3944_v0, %v4757_v6 }
 0x1ba   : > { %4259 = vmatprep.subr.bf16.mxu0 %v4228_v49  ;;  %v4054_v48 = vrot.slane %v3946_v60, %v4759_v7  ;;  %v3869_v63 = vmax.f32 %v3865_v58, 0.0  ;;  %v4180_v34 = vmul.f32 %v4046_v57, %v6315_v21  ;;  %v4182_v50 = vmul.f32 %v4046_v57, %v6317_v8 }
 0x1bb   : > { %v3948_v59 = vcombine.high %v3944_v0, %v3944_v0  ;;  %v3870_v17 = vmax.f32 %v3866_v18, 0.0  ;;  %v4231_v24 = vpack.c.bf16 %v4177_v3, %v4175_v9  ;;  %v4050_v54 = vrot.slane %v3946_v60, %v4757_v6 }
 0x1bc   : > { %v4179_v46 = vmul.f32 %v4042_v10, %v6310_v42  ;;  %v4181_v30 = vmul.f32 %v4042_v10, %v6312_v26  ;;  %v4184_v23 = vmul.f32 %v4054_v48, %v6315_v21  ;;  %v4234_v2 = vpack.c.bf16 %v4182_v50, %v4180_v34 }
 0x1bd   : > { %4260 = vmatpush1.bf16.msra.mxu0 %v4227_v39  ;;  %v3949_v11 = vcombine.low %v3869_v63, %v3870_v17  ;;  %v4186_v16 = vmul.f32 %v4054_v48, %v6317_v8  ;;  %v4062_v1 = vrot.slane %v3948_v59, %v4759_v7  ;;  %v4183_v43 = vmul.f32 %v4050_v54, %v6310_v42 }
 0x1be   : > { %4261 = vmatprep.subr.bf16.mxu0 %v4230_v38  ;;  %v4058_v19 = vrot.slane %v3948_v59, %v4757_v6  ;;  %v4233_v62 = vpack.c.bf16 %v4181_v30, %v4179_v46  ;;  %v4185_v22 = vmul.f32 %v4050_v54, %v6312_v26  ;;  %v3950_v32 = vcombine.high %v3869_v63, %v3870_v17 }
 0x1bf   : > { %v1583_v52 = vpop.f32.mrb[4].mxu0  ;;  %v3957_v56 = vrot.slane %v3949_v11, %v4783_v15  ;;  %v4236_v31 = vpack.c.bf16 %v4186_v16, %v4184_v23  ;;  %v4188_v5 = vmul.f32 %v4062_v1, %v6315_v21  ;;  %v4190_v51 = vmul.f32 %v4062_v1, %v6317_v8 }
 0x1c0   : > { %v1585_v53 = vpop.f32.mrb[5].mxu0  ;;  %v4187_v40 = vmul.f32 %v4058_v19, %v6310_v42  ;;  %v4189_v33 = vmul.f32 %v4058_v19, %v6312_v26  ;;  %v4235_v25 = vpack.c.bf16 %v4185_v22, %v4183_v43  ;;  %v3964_v38 = vrot.slane %v3950_v32, %v4783_v15 }
 0x1c1   : > { %4262 = vmatpush1.bf16.msra.mxu0 %v4229_v28  ;;  %v2034_v35 = vpop.f32.mrb[4].mxu1  ;;  %v1587_v45 = vpop.f32.mrb[6].mxu0  ;;  %v3973_v13 = vrot.slane %v3957_v56, %v4783_v15  ;;  %v3965_v47 = vcombine.high %v3957_v56, %v3957_v56  ;;  %v4238_v58 = vpack.c.bf16 %v4190_v51, %v4188_v5 }
 0x1c2   : > { %4263 = vmatprep.subr.bf16.mxu0 %v4232_v61  ;;  %v4527_v4 = vpack.c.bf16 %v2034_v35, %v1583_v52  ;;  %v2036_v20 = vpop.f32.mrb[5].mxu1  ;;  %v1588_v12 = vpop.f32.mrb[7].mxu0  ;;  %v4237_v60 = vpack.c.bf16 %v4189_v33, %v4187_v40  ;;  %v3980_v63 = vrot.slane %v3964_v38, %v4783_v15  ;;  %v3966_v34 = vcombine.high %v3964_v38, %v3964_v38 }
 0x1c3   : > { %v4525_v41 = vpack.c.bf16 %v2036_v20, %v1585_v53  ;;  %v2038_v27 = vpop.f32.mrb[6].mxu1  ;;  %v4070_v49 = vrot.slane %v3973_v13, %v4759_v7  ;;  %v3987_v0 = vrot.slane %v3965_v47, %v4783_v15  ;;  %v4066_v29 = vrot.slane %v3973_v13, %v4757_v6 }
 0x1c4   : > { %v2039_v36 = vpop.f32.mrb[7].mxu1  ;;  %v3995_v44 = vcombine.high %v3973_v13, %v3973_v13  ;;  %v4102_v30 = vrot.slane %v3980_v63, %v4759_v7  ;;  %v4098_v12 = vrot.slane %v3980_v63, %v4757_v6 }
 0x1c5   : > { %4264 = vmatpush1.bf16.msra.mxu0 %v4231_v24  ;;  %4526 = vmatprep.subr.bf16.mxu1 %v4525_v41  ;;  %v4192_v39 = vmul.f32 %v4070_v49, %v6315_v21  ;;  %v4194_v14 = vmul.f32 %v4070_v49, %v6317_v8  ;;  %v4078_v37 = vrot.slane %v3987_v0, %v4759_v7 }
 0x1c6   : > { %4265 = vmatprep.subr.bf16.mxu0 %v4234_v2  ;;  %4528 = vmatpush1.bf16.msra.mxu1 %v4527_v4  ;;  %v4191_v57 = vmul.f32 %v4066_v29, %v6310_v42  ;;  %v4193_v61 = vmul.f32 %v4066_v29, %v6312_v26  ;;  %v4074_v9 = vrot.slane %v3987_v0, %v4757_v6 }
 0x1c7   : > { %v4086_v3 = vrot.slane %v3995_v44, %v4759_v7  ;;  %v4240_v18 = vpack.c.bf16 %v4194_v14, %v4192_v39  ;;  %v4196_v28 = vmul.f32 %v4078_v37, %v6315_v21  ;;  %v4198_v10 = vmul.f32 %v4078_v37, %v6317_v8 }
 0x1c8   : > { %v3997_v48 = vcombine.high %v3987_v0, %v3987_v0  ;;  %v4239_v50 = vpack.c.bf16 %v4193_v61, %v4191_v57  ;;  %v4195_v59 = vmul.f32 %v4074_v9, %v6310_v42  ;;  %v4197_v17 = vmul.f32 %v4074_v9, %v6312_v26 }
 0x1c9   : > { %4266 = vmatpush1.bf16.msra.mxu0 %v4233_v62  ;;  %v4082_v52 = vrot.slane %v3995_v44, %v4757_v6  ;;  %v4242_v24 = vpack.c.bf16 %v4198_v10, %v4196_v28  ;;  %v4200_v54 = vmul.f32 %v4086_v3, %v6315_v21  ;;  %v4202_v53 = vmul.f32 %v4086_v3, %v6317_v8 }
 0x1ca   : > { %4267 = vmatprep.subr.bf16.mxu0 %v4236_v31  ;;  %v4094_v46 = vrot.slane %v3997_v48, %v4759_v7  ;;  %v4241_v23 = vpack.c.bf16 %v4197_v17, %v4195_v59  ;;  %v4090_v45 = vrot.slane %v3997_v48, %v4757_v6  ;;  %v3994_v4 = vrot.slane %v3966_v34, %v4783_v15 }
 0x1cb   : > { %v4199_v11 = vmul.f32 %v4082_v52, %v6310_v42  ;;  %v4201_v35 = vmul.f32 %v4082_v52, %v6312_v26  ;;  %v4244_v2 = vpack.c.bf16 %v4202_v53, %v4200_v54  ;;  %v4208_v20 = vmul.f32 %v4102_v30, %v6315_v21 }
 0x1cc   : > { %v4204_v16 = vmul.f32 %v4094_v46, %v6315_v21  ;;  %v4206_v1 = vmul.f32 %v4094_v46, %v6317_v8  ;;  %v4203_v41 = vmul.f32 %v4090_v45, %v6310_v42  ;;  %v4205_v27 = vmul.f32 %v4090_v45, %v6312_v26 }
 0x1cd   : > { %4268 = vmatpush1.bf16.msra.mxu0 %v4235_v25  ;;  %v4243_v56 = vpack.c.bf16 %v4201_v35, %v4199_v11  ;;  %v4210_v43 = vmul.f32 %v4102_v30, %v6317_v8  ;;  %v4110_v36 = vrot.slane %v3994_v4, %v4759_v7  ;;  %v3996_v62 = vcombine.high %v3980_v63, %v3980_v63 }
 0x1ce   : > { %4269 = vmatprep.subr.bf16.mxu0 %v4238_v58  ;;  %v4246_v19 = vpack.c.bf16 %v4206_v1, %v4204_v16  ;;  %v4207_v22 = vmul.f32 %v4098_v12, %v6310_v42  ;;  %v4245_v15 = vpack.c.bf16 %v4205_v27, %v4203_v41  ;;  %v4209_v47 = vmul.f32 %v4098_v12, %v6312_v26  ;;  %v4298_v16 = vld [vmem:[%s6485_s2] sm:$0xf] }
 0x1cf   : > { %v4248_v13 = vpack.c.bf16 %v4210_v43, %v4208_v20  ;;  %v4106_v31 = vrot.slane %v3994_v4, %v4757_v6  ;;  %v4212_v5 = vmul.f32 %v4110_v36, %v6315_v21  ;;  %v4214_v51 = vmul.f32 %v4110_v36, %v6317_v8 }
 0x1d0   : > { %v4118_v49 = vrot.slane %v3996_v62, %v4759_v7  ;;  %v3998_v0 = vcombine.high %v3994_v4, %v3994_v4  ;;  %v4247_v40 = vpack.c.bf16 %v4209_v47, %v4207_v22  ;;  %v4114_v25 = vrot.slane %v3996_v62, %v4757_v6 }
 0x1d1   : > { %4270 = vmatpush1.bf16.msra.mxu0 %v4237_v60  ;;  %v4211_v33 = vmul.f32 %v4106_v31, %v6310_v42  ;;  %v4213_v32 = vmul.f32 %v4106_v31, %v6312_v26  ;;  %v4250_v29 = vpack.c.bf16 %v4214_v51, %v4212_v5 }
 0x1d2   : > { %4271 = vmatprep.subr.bf16.mxu0 %v4240_v18  ;;  %v4216_v44 = vmul.f32 %v4118_v49, %v6315_v21  ;;  %v4218_v58 = vmul.f32 %v4118_v49, %v6317_v8  ;;  %v4126_v39 = vrot.slane %v3998_v0, %v4759_v7  ;;  %v4215_v37 = vmul.f32 %v4114_v25, %v6310_v42 }
 0x1d3   : > { %v4249_v14 = vpack.c.bf16 %v4213_v32, %v4211_v33  ;;  %v4217_v60 = vmul.f32 %v4114_v25, %v6312_v26  ;;  %v4122_v38 = vrot.slane %v3998_v0, %v4757_v6 }
 0x1d4   : > { %v4252_v57 = vpack.c.bf16 %v4218_v58, %v4216_v44  ;;  %v4220_v61 = vmul.f32 %v4126_v39, %v6315_v21  ;;  %v4222_v9 = vmul.f32 %v4126_v39, %v6317_v8 }
 0x1d5   : > { %4272 = vmatpush1.bf16.msra.mxu0 %v4239_v50  ;;  %v4251_v3 = vpack.c.bf16 %v4217_v60, %v4215_v37  ;;  %v4219_v18 = vmul.f32 %v4122_v38, %v6310_v42  ;;  %v4221_v7 = vmul.f32 %v4122_v38, %v6312_v26  ;;  %v4678_v26 = vmov 0.0  }
 0x1d6   : > { %4273 = vmatprep.subr.bf16.mxu0 %v4242_v24  ;;  %v4254_v28 = vpack.c.bf16 %v4222_v9, %v4220_v61  ;;  %4385 = vmatprep.mubr.f32.mxu1 %v4678_v26 }
 0x1d7   : > { %v4253_v10 = vpack.c.bf16 %v4221_v7, %v4219_v18 }
 0x1d9   : > { %4274 = vmatpush1.bf16.msra.mxu0 %v4241_v23 }
 0x1da   : > { %4275 = vmatprep.subr.bf16.mxu0 %v4244_v2 }
 0x1dd   : > { %4276 = vmatpush1.bf16.msra.mxu0 %v4243_v56 }
 0x1de   : > { %4277 = vmatprep.subr.bf16.mxu0 %v4246_v19 }
 0x1e1   : > { %4278 = vmatpush1.bf16.msra.mxu0 %v4245_v15 }
 0x1e2   : > { %4279 = vmatprep.subr.bf16.mxu0 %v4248_v13 }
 0x1e5   : > { %4280 = vmatpush1.bf16.msra.mxu0 %v4247_v40 }
 0x1e6   : > { %4281 = vmatprep.subr.bf16.mxu0 %v4250_v29 }
 0x1e9   : > { %4282 = vmatpush1.bf16.msra.mxu0 %v4249_v14 }
 0x1ea   : > { %4283 = vmatprep.subr.bf16.mxu0 %v4252_v57 }
 0x1ed   : > { %4284 = vmatpush1.bf16.msra.mxu0 %v4251_v3 }
 0x1ee   : > { %4285 = vmatprep.subr.bf16.mxu0 %v4254_v28 }
 0x1f1   : > { %4286 = vmatpush1.bf16.msra.mxu0 %v4253_v10 }
 0x1f4   : > { %4288 = vmatmul.mubr.bf16.vlgmr.msra.gmra.mrb[16].mxu0 %v4829_v55 }
 0x22a   : > { %v2485_v6 = vpop.f32.mrb[8].mxu0 }
 0x22b   : > { %v2487_v48 = vpop.f32.mrb[9].mxu0 }
 0x22c   : > { %v2936_v63 = vpop.f32.mrb[8].mxu1  ;;  %v2489_v21 = vpop.f32.mrb[10].mxu0 }
 0x22d   : > { %v4531_v34 = vpack.c.bf16 %v2936_v63, %v2485_v6  ;;  %v2938_v8 = vpop.f32.mrb[9].mxu1  ;;  %v2490_v50 = vpop.f32.mrb[11].mxu0 }
 0x22e   : > { %v4529_v59 = vpack.c.bf16 %v2938_v8, %v2487_v48  ;;  %v2940_v17 = vpop.f32.mrb[10].mxu1 }
 0x22f   : > { %v2941_v42 = vpop.f32.mrb[11].mxu1 }
 0x230   : > { %4530 = vmatprep.subr.bf16.mxu1 %v4529_v59 }
 0x231   : > { %4532 = vmatpush1.bf16.msra.mxu1 %v4531_v34 }
 0x27d   : > { %v3387_v52 = vpop.f32.mrb[12].mxu0 }
 0x27e   : > { %v3389_v24 = vpop.f32.mrb[13].mxu0 }
 0x27f   : > { %v3391_v54 = vpop.f32.mrb[14].mxu0 }
 0x280   : > { %v3392_v53 = vpop.f32.mrb[15].mxu0 }
 0x281   : > { %v3838_v46 = vpop.f32.mrb[12].mxu1 }
 0x282   : > { %v4535_v55 = vpack.c.bf16 %v3838_v46, %v3387_v52  ;;  %v3840_v30 = vpop.f32.mrb[13].mxu1 }
 0x283   : > { %v4533_v23 = vpack.c.bf16 %v3840_v30, %v3389_v24  ;;  %v3842_v11 = vpop.f32.mrb[14].mxu1 }
 0x284   : > { %v3843_v35 = vpop.f32.mrb[15].mxu1 }
 0x285   : > { %4534 = vmatprep.subr.bf16.mxu1 %v4533_v23 }
 0x286   : > { %4536 = vmatpush1.bf16.msra.mxu1 %v4535_v55 }
 0x2c7   : > { %v4289_v45 = vpop.f32.mrb[16].mxu0 }
 0x2c8   : > { %v4291_v2 = vpop.f32.mrb[17].mxu0 }
 0x2c9   : > { %v4293_v1 = vpop.f32.mrb[18].mxu0  ;;  %4337 = vmatprep.subr.mxu1 %v4291_v2 }
 0x2ca   : > { %v4294_v4 = vpop.f32.mrb[19].mxu0  ;;  %4338 = vmatpush1.msra.mxu1 %v4289_v45 }
 0x2cb   : > { %4513 = vmatmul.mubr.msk.f32.vlgmr.msra.gmra.mrb[16].mxu1 %vm4317_vm0, %v4298_v16 }
 0x39e   : > { %v4387_v20 = vpop.f32.mrb[16].mxu1 }
 0x39f   : > { %v4389_v12 = vpop.f32.mrb[17].mxu1 }
 0x3a0   : > { %v4394_v56 = vcombine.low %v4387_v20, %v4389_v12 }
 0x3a2   : > { %4396 = vst [vmem:[%s203_s19] sm:$0xff] %v4394_v56 }
 0x3a3   : > { %4610 = shalt.err (!%p4607_p5)
}
 0x3a4   : > { %s4611_s5 = scalar_lea.hbm %s6436_s27, 128  ;;  %s4615_s8 = scalar_lea.hbm %s6486_s3, 256 }
 0x3a5   : > { %p4612_p6 = scmp.ne.s32.totalorder %s6436_s27, %s4611_s5  ;;  %p4616_p10 = scmp.lt.u32.totalorder %s6436_s27, %s6486_s3 }
 0x3a6   : > { %p4617_p11 = scmp.lt.u32.totalorder %s4615_s8, %s4611_s5  ;;  %p4619_p13 = scmp.lt.u32.totalorder %s4611_s5, %s6436_s27 }
 0x3a7   : > { %p4613_p7 = pnand %p4612_p6, %p4740_p4 }
 0x3a8   : > { %p4618_p12 = por %p4617_p11, %p4616_p10 }
 0x3a9   : > { %p4614_p9 = pneg %p4613_p7 }
 0x3aa   : > { %p4620_p0 = por %p4619_p13, %p4618_p12 }
 0x3ac   : > { %p4621_p1 = pnand %p4620_p0, %p4614_p9 }
 0x3ae   : > { %4624 = shalt.err (!%p4621_p1)
}
 0x3af   : > { %4538 = dma.vmem_to_hbm [thread:$0]  (%p4740_p4), %s6438_s21, 128, %s6436_s27, %s4398_s28  }
 0x3b0 PF: > { %p4544_p2 = scmp.ge.s32.totalorder %s4675_s17, 2  ;;  %s4426_s11 = sand.u32 1, %s4655_s12  }
 0x3b1   : > { %s4427_s18 = scalar_lea.sflag [#allocation4], %s4426_s11 }
 0x3b2   : > { %p4541_p3 = pnand %p4544_p2, %p4747_p8 }
 0x3b4   : > { %4650 = dma.done.wait (!%p4541_p3), %s4427_s18, 128  }
 0x3b5   : > { %4652 = vsyncadd (!%p4541_p3), %s4427_s18, 4294967168  ;;  %s16_s17 = sadd.s32 1, %s4675_s17   ;;  %s6510_s12 = smov %s4659_s13 }
 0x3b6   : > { %p13_p5 = scmp.ge.s32.totalorder %s16_s17, 4   ;;  %s6511_s13 = smov %s4663_s14 }
 0x3b7   : > { %s6512_s14 = smov %s4753_s25  ;;  %s6513_s15 = smov %s4671_s16 }
 0x3b8   : > { %s6514_s16 = smov %s6516_s20  ;;  %15 = sbr.rel (!%p13_p5) target bundleno = 4 (0x4), region = 70 }
 0x3bf   :  { %4432 = vsyncpa [#allocation4], 1 }
 0x3c0   :  { %4434 = vsyncpa [#allocation4 + $0x1], 1 }

</bundles_post_ra>
